<compile_context>
chip_gen: v7x
topology: tpu7x:2x2x1
jax: 0.10.0
libtpu: 0.0.40
codegen_flags: <defaults>
</compile_context>

<pallas_src>
import math
import functools

import jax
import jax.numpy as jnp
from jax.experimental import pallas as pl
from jax.experimental.pallas import tpu as pltpu

# ----------------- small synthetic configuration -----------------
IN_FEATURES = 16            # must be divisible by groups=16 (here: depthwise)
D_MODEL = 3 * IN_FEATURES   # 48  (= in_features * 3)
HEADS = 4                   # d_model % heads == 0
LAYERS = 2
DIM_FF = 64                 # hidden_feedforward (small synthetic value)
POS_K = 9                   # position_encoder kernel size (odd -> same length)
POS_PAD = POS_K // 2
START_TOKEN = -5.0
LN_EPS = 1e-5
BATCH = 2
SEQ = 16


def _gelu(x):
    # tanh-approx GELU: the transcendental goes to the (otherwise idle) EUP slot.
    c = 0.7978845608028654  # sqrt(2/pi)
    return 0.5 * x * (1.0 + jnp.tanh(c * (x + 0.044715 * x * x * x)))


# ----------------- fused forward kernel (one program per batch element) -----------------
def _bendr_fused_kernel(x_ref, pos_w_ref, pos_b_ref, ln_w_ref, ln_b_ref,
                        win_ref, bin_ref,
                        wqkv_ref, bqkv_ref, wo_ref, bo_ref,
                        w1_ref, b1_ref, w2_ref, b2_ref,
                        wout_t_ref, bout_ref,
                        o_ref,
                        xpad_s, h_s, ctx_s,
                        *, heads, layers):
    # layouts (per batch element):
    #   x (1, C, S), pos_w (C, K), pos_b/ln_w/ln_b/bout (C, 1),
    #   win (C, D), bin (1, D), wout_t (C, D),
    #   stacked layer weights: wqkv (L, D, 3D), bqkv (L, 1, 3D), wo (L, D, D),
    #   bo (L, 1, D), w1 (L, D, F), b1 (L, 1, F), w2 (L, F, D), b2 (L, 1, D),
    #   o (1, C, S+1)
    C = x_ref.shape[1]
    S = x_ref.shape[2]
    S1 = S + 1
    D = win_ref.shape[1]
    dh = D // heads
    scale = 1.0 / math.sqrt(dh)

    x = x_ref[0]                                           # (C, S)

    # ---- 1) depthwise position conv (+weight_norm folded) + GELU + residual ----
    xpad_s[...] = jnp.zeros_like(xpad_s)                   # zero halo
    xpad_s[:, POS_PAD:POS_PAD + S] = x                     # centre = x
    acc = jnp.zeros((C, S), jnp.float32)
    for k in range(POS_K):                                 # static unroll: 9 VPU FMAs
        acc = acc + pos_w_ref[:, k:k + 1] * xpad_s[:, k:k + S]
    x1 = x + _gelu(acc + pos_b_ref[...])                   # (C, S)

    # ---- 2) LayerNorm over channels + 1x1 conv to d_model (input conditioning) ----
    mu = jnp.mean(x1, axis=0, keepdims=True)               # (1, S)
    var = jnp.mean(jnp.square(x1 - mu), axis=0, keepdims=True)
    xn = (x1 - mu) * jax.lax.rsqrt(var + LN_EPS)
    xn = xn * ln_w_ref[...] + ln_b_ref[...]                # (C, S)
    # h_body (S, D) = xn^T @ win   (contract channel axis of both operands)
    h_body = jax.lax.dot_general(
        xn, win_ref[...], (((0,), (0,)), ((), ())),
        preferred_element_type=jnp.float32) + bin_ref[...]

    # ---- 3) prepend start token row directly in VMEM ----
    h_s[0:1, :] = jnp.full((1, D), START_TOKEN, jnp.float32)
    h_s[1:S1, :] = h_body
    h = h_s[...]                                           # (S1, D)

    # ---- 4) transformer encoder layers (norm1/norm2 == identity, eval mode) ----
    for l in range(layers):                                # static unroll (tiny)
        wqkv = wqkv_ref[l]
        wo = wo_ref[l]
        w1 = w1_ref[l]
        w2 = w2_ref[l]

        qkv = jnp.dot(h, wqkv, preferred_element_type=jnp.float32) + bqkv_ref[l]
        q, kk, v = qkv[:, :D], qkv[:, D:2 * D], qkv[:, 2 * D:]

        for hd in range(heads):                            # static unroll over heads
            sl = slice(hd * dh, (hd + 1) * dh)
            # scores = (q_h * scale) @ k_h^T  (contract last dims; no transpose)
            sc = jax.lax.dot_general(q[:, sl] * scale, kk[:, sl],
                                     (((1,), (1,)), ((), ())),
                                     preferred_element_type=jnp.float32)  # (S1, S1)
            sc = sc - jnp.max(sc, axis=-1, keepdims=True)
            p = jnp.exp(sc)
            denom = jnp.sum(p, axis=-1, keepdims=True)
            ctx_h = jnp.dot(p, v[:, sl], preferred_element_type=jnp.float32)
            # normalize after P@V (equivalent); approx reciprocal -> EUP slot
            ctx_s[:, sl] = ctx_h * pl.reciprocal(denom, approx=True)

        # single (S1, D) x (D, D) output projection over all heads
        attn = jnp.dot(ctx_s[...], wo, preferred_element_type=jnp.float32) + bo_ref[l]
        h = h + attn                                       # residual 1
        h1 = _gelu(jnp.dot(h, w1, preferred_element_type=jnp.float32) + b1_ref[l])
        h = h + jnp.dot(h1, w2, preferred_element_type=jnp.float32) + b2_ref[l]

    # ---- 5) output 1x1 conv, computed directly in (C, S1) layout ----
    out = jax.lax.dot_general(wout_t_ref[...], h, (((1,), (1,)), ((), ())),
                              preferred_element_type=jnp.float32) + bout_ref[...]
    o_ref[0] = out                                         # (C, S1)


# ----------------- wrapper: one fused pallas_call, grid over batch -----------------
def bendr_contextualizer_forward(x, params):
    # x: (batch, in_features, seq)  ->  (batch, in_features, seq + 1)
    bs, c, s = x.shape
    s1 = s + 1
    d = params["win"].shape[1]
    f = params["w1"].shape[2]
    L = params["wqkv"].shape[0]

    kern = functools.partial(_bendr_fused_kernel, heads=HEADS, layers=L)
    return pl.pallas_call(
        kern,
        out_shape=jax.ShapeDtypeStruct((bs, c, s1), jnp.float32),
        grid=(bs,),
        in_specs=[
            pl.BlockSpec((1, c, s), lambda b: (b, 0, 0)),          # x
            pl.BlockSpec((c, POS_K), lambda b: (0, 0)),            # pos_w
            pl.BlockSpec((c, 1), lambda b: (0, 0)),                # pos_b
            pl.BlockSpec((c, 1), lambda b: (0, 0)),                # ln_w
            pl.BlockSpec((c, 1), lambda b: (0, 0)),                # ln_b
            pl.BlockSpec((c, d), lambda b: (0, 0)),                # win
            pl.BlockSpec((1, d), lambda b: (0, 0)),                # bin
            pl.BlockSpec((L, d, 3 * d), lambda b: (0, 0, 0)),      # wqkv (stacked)
            pl.BlockSpec((L, 1, 3 * d), lambda b: (0, 0, 0)),      # bqkv
            pl.BlockSpec((L, d, d), lambda b: (0, 0, 0)),          # wo
            pl.BlockSpec((L, 1, d), lambda b: (0, 0, 0)),          # bo
            pl.BlockSpec((L, d, f), lambda b: (0, 0, 0)),          # w1
            pl.BlockSpec((L, 1, f), lambda b: (0, 0, 0)),          # b1
            pl.BlockSpec((L, f, d), lambda b: (0, 0, 0)),          # w2
            pl.BlockSpec((L, 1, d), lambda b: (0, 0, 0)),          # b2
            pl.BlockSpec((c, d), lambda b: (0, 0)),                # wout_t
            pl.BlockSpec((c, 1), lambda b: (0, 0)),                # bout
        ],
        out_specs=pl.BlockSpec((1, c, s1), lambda b: (b, 0, 0)),
        scratch_shapes=[
            pltpu.VMEM((c, s + 2 * POS_PAD), jnp.float32),         # conv halo buffer
            pltpu.VMEM((s1, d), jnp.float32),                      # [start_token; h]
            pltpu.VMEM((s1, d), jnp.float32),                      # per-layer attn context
        ],
        # batch axis parallel: 2 TensorCores on v7x; 2 cheap sequential steps on v5e/v6e
        compiler_params=pltpu.CompilerParams(dimension_semantics=("parallel",)),
    )(x, params["pos_w"], params["pos_b"], params["ln_w"], params["ln_b"],
      params["win"], params["bin"],
      params["wqkv"], params["bqkv"], params["wo"], params["bo"],
      params["w1"], params["b1"], params["w2"], params["b2"],
      params["wout_t"], params["bout"])


# ----------------- deterministic parameter initialization -----------------
def init_params(key):
    keys = jax.random.split(key, 32)
    it = iter(keys)
    p = {}

    # position encoder: Conv1d(C, C, K, padding=K//2, groups=16) + weight_norm(dim=2)
    # groups == in_features == 16 -> depthwise; fold weight_norm into a (C, K) weight.
    v = jax.random.normal(next(it), (IN_FEATURES, 1, POS_K)) * (2.0 / D_MODEL)
    g = 1.0 + 0.1 * jax.random.normal(next(it), (1, 1, POS_K))
    vnorm = jnp.sqrt(jnp.sum(v * v, axis=(0, 1), keepdims=True))
    w_eff = g * v / vnorm                                   # (C, 1, K)
    p["pos_w"] = jnp.asarray(w_eff[:, 0, :], jnp.float32)   # (C, K)
    p["pos_b"] = 0.01 * jax.random.normal(next(it), (IN_FEATURES, 1))

    # input conditioning: LayerNorm(in_features) + Conv1d(in_features, d_model, 1)
    p["ln_w"] = 1.0 + 0.1 * jax.random.normal(next(it), (IN_FEATURES, 1))
    p["ln_b"] = 0.1 * jax.random.normal(next(it), (IN_FEATURES, 1))
    p["win"] = jax.random.normal(next(it), (IN_FEATURES, D_MODEL)) / math.sqrt(IN_FEATURES)
    p["bin"] = 0.1 * jax.random.normal(next(it), (1, D_MODEL))

    # transformer layers, stacked along a leading LAYERS axis (weights (in, out))
    scale = 0.67 * LAYERS ** (-0.25)   # init_bert_params scaling of Linear weights
    wqkv, bqkv, wo, bo, w1, b1, w2, b2 = ([] for _ in range(8))
    for _ in range(LAYERS):
        wqkv.append(jax.random.normal(next(it), (D_MODEL, 3 * D_MODEL)) / math.sqrt(D_MODEL))
        bqkv.append(0.02 * jax.random.normal(next(it), (1, 3 * D_MODEL)))
        wo.append(scale * jax.random.normal(next(it), (D_MODEL, D_MODEL)) / math.sqrt(D_MODEL))
        bo.append(jnp.zeros((1, D_MODEL), jnp.float32))
        w1.append(scale * jax.random.normal(next(it), (D_MODEL, DIM_FF)) / math.sqrt(D_MODEL))
        b1.append(jnp.zeros((1, DIM_FF), jnp.float32))
        w2.append(scale * jax.random.normal(next(it), (DIM_FF, D_MODEL)) / math.sqrt(DIM_FF))
        b2.append(jnp.zeros((1, D_MODEL), jnp.float32))
    p["wqkv"], p["bqkv"] = jnp.stack(wqkv), jnp.stack(bqkv)
    p["wo"], p["bo"] = jnp.stack(wo), jnp.stack(bo)
    p["w1"], p["b1"] = jnp.stack(w1), jnp.stack(b1)
    p["w2"], p["b2"] = jnp.stack(w2), jnp.stack(b2)

    # output layer: Conv1d(d_model, in_features, 1); stored pre-transposed (C, D)
    p["wout_t"] = jax.random.normal(next(it), (IN_FEATURES, D_MODEL)) / math.sqrt(D_MODEL)
    p["bout"] = 0.1 * jax.random.normal(next(it), (IN_FEATURES, 1))
    return p


if __name__ == "__main__":
    key = jax.random.PRNGKey(0)
    k_x, k_p = jax.random.split(key)
    x = jax.random.normal(k_x, (BATCH, IN_FEATURES, SEQ), jnp.float32)
    params = init_params(k_p)

    out = bendr_contextualizer_forward(x, params)
    out = jax.block_until_ready(out)
    assert out.shape == (BATCH, IN_FEATURES, SEQ + 1), out.shape
    assert bool(jnp.all(jnp.isfinite(out)))
    print("KERNEL_OK")
</pallas_src>

<mosaic_0001>
module attributes {stable_mosaic.version = 11 : i64} {
  func.func @_bendr_fused_kernel(%arg0: i32, %arg1: memref<1x16x16xf32, #tpu.memory_space<vmem>>, %arg2: memref<16x9xf32, #tpu.memory_space<vmem>>, %arg3: memref<16x1xf32, #tpu.memory_space<vmem>>, %arg4: memref<16x1xf32, #tpu.memory_space<vmem>>, %arg5: memref<16x1xf32, #tpu.memory_space<vmem>>, %arg6: memref<16x48xf32, #tpu.memory_space<vmem>>, %arg7: memref<1x48xf32, #tpu.memory_space<vmem>>, %arg8: memref<2x48x144xf32, #tpu.memory_space<vmem>>, %arg9: memref<2x1x144xf32, #tpu.memory_space<vmem>>, %arg10: memref<2x48x48xf32, #tpu.memory_space<vmem>>, %arg11: memref<2x1x48xf32, #tpu.memory_space<vmem>>, %arg12: memref<2x48x64xf32, #tpu.memory_space<vmem>>, %arg13: memref<2x1x64xf32, #tpu.memory_space<vmem>>, %arg14: memref<2x64x48xf32, #tpu.memory_space<vmem>>, %arg15: memref<2x1x48xf32, #tpu.memory_space<vmem>>, %arg16: memref<16x48xf32, #tpu.memory_space<vmem>>, %arg17: memref<16x1xf32, #tpu.memory_space<vmem>>, %arg18: memref<1x16x17xf32, #tpu.memory_space<vmem>>, %arg19: memref<16x24xf32, #tpu.memory_space<vmem>>, %arg20: memref<17x48xf32, #tpu.memory_space<vmem>>, %arg21: memref<17x48xf32, #tpu.memory_space<vmem>>) attributes {dimension_semantics = [#tpu.dimension_semantics<parallel>], iteration_bounds = array<i64: 2>, scalar_prefetch = 0 : i64, scratch_operands = 3 : i64, tpu.core_type = #tpu.core_type<tc>, window_params = [{transform_indices = @transform_0, window_bounds = array<i64: 1, 16, 16>}, {pipeline_mode = #tpu.pipeline_mode<synchronous>, transform_indices = @transform_1, window_bounds = array<i64: 16, 9>}, {pipeline_mode = #tpu.pipeline_mode<synchronous>, transform_indices = @transform_2, window_bounds = array<i64: 16, 1>}, {pipeline_mode = #tpu.pipeline_mode<synchronous>, transform_indices = @transform_3, window_bounds = array<i64: 16, 1>}, {pipeline_mode = #tpu.pipeline_mode<synchronous>, transform_indices = @transform_4, window_bounds = array<i64: 16, 1>}, {pipeline_mode = #tpu.pipeline_mode<synchronous>, transform_indices = @transform_5, window_bounds = array<i64: 16, 48>}, {pipeline_mode = #tpu.pipeline_mode<synchronous>, transform_indices = @transform_6, window_bounds = array<i64: 1, 48>}, {pipeline_mode = #tpu.pipeline_mode<synchronous>, transform_indices = @transform_7, window_bounds = array<i64: 2, 48, 144>}, {pipeline_mode = #tpu.pipeline_mode<synchronous>, transform_indices = @transform_8, window_bounds = array<i64: 2, 1, 144>}, {pipeline_mode = #tpu.pipeline_mode<synchronous>, transform_indices = @transform_9, window_bounds = array<i64: 2, 48, 48>}, {pipeline_mode = #tpu.pipeline_mode<synchronous>, transform_indices = @transform_10, window_bounds = array<i64: 2, 1, 48>}, {pipeline_mode = #tpu.pipeline_mode<synchronous>, transform_indices = @transform_11, window_bounds = array<i64: 2, 48, 64>}, {pipeline_mode = #tpu.pipeline_mode<synchronous>, transform_indices = @transform_12, window_bounds = array<i64: 2, 1, 64>}, {pipeline_mode = #tpu.pipeline_mode<synchronous>, transform_indices = @transform_13, window_bounds = array<i64: 2, 64, 48>}, {pipeline_mode = #tpu.pipeline_mode<synchronous>, transform_indices = @transform_14, window_bounds = array<i64: 2, 1, 48>}, {pipeline_mode = #tpu.pipeline_mode<synchronous>, transform_indices = @transform_15, window_bounds = array<i64: 16, 48>}, {pipeline_mode = #tpu.pipeline_mode<synchronous>, transform_indices = @transform_16, window_bounds = array<i64: 16, 1>}, {transform_indices = @transform_17, window_bounds = array<i64: 1, 16, 17>}]} {
    %c0 = arith.constant 0 : index
    %c0_0 = arith.constant 0 : index
    %c0_1 = arith.constant 0 : index
    %0 = vector.load %arg1[%c0, %c0_0, %c0_1] : memref<1x16x16xf32, #tpu.memory_space<vmem>>, vector<1x16x16xf32>
    %1 = vector.shape_cast %0 : vector<1x16x16xf32> to vector<16x16xf32>
    %cst = arith.constant 0.000000e+00 : f32
    %2 = vector.broadcast %cst : f32 to vector<16x24xf32>
    %c0_2 = arith.constant 0 : index
    %c0_3 = arith.constant 0 : index
    %3 = vector.load %arg19[%c0_2, %c0_3] : memref<16x24xf32, #tpu.memory_space<vmem>>, vector<16x24xf32>
    tpu.vector_store %arg19[%c0_2, %c0_3], %2 {strides = array<i32>} : memref<16x24xf32, #tpu.memory_space<vmem>>, vector<16x24xf32>,
    %c0_4 = arith.constant 0 : index
    %c4 = arith.constant 4 : index
    %4 = vector.load %arg19[%c0_4, %c4] : memref<16x24xf32, #tpu.memory_space<vmem>>, vector<16x16xf32>
    tpu.vector_store %arg19[%c0_4, %c4], %1 {strides = array<i32>} : memref<16x24xf32, #tpu.memory_space<vmem>>, vector<16x16xf32>,
    %cst_5 = arith.constant 0.000000e+00 : f32
    %5 = vector.broadcast %cst_5 : f32 to vector<16x16xf32>
    %c0_6 = arith.constant 0 : index
    %c0_7 = arith.constant 0 : index
    %6 = vector.load %arg2[%c0_6, %c0_7] : memref<16x9xf32, #tpu.memory_space<vmem>>, vector<16x1xf32>
    %c0_8 = arith.constant 0 : index
    %c0_9 = arith.constant 0 : index
    %7 = vector.load %arg19[%c0_8, %c0_9] : memref<16x24xf32, #tpu.memory_space<vmem>>, vector<16x16xf32>
    %8 = vector.broadcast %6 : vector<16x1xf32> to vector<16x16xf32>
    %9 = arith.mulf %8, %7 : vector<16x16xf32>
    %10 = arith.addf %5, %9 : vector<16x16xf32>
    %c0_10 = arith.constant 0 : index
    %c1 = arith.constant 1 : index
    %11 = vector.load %arg2[%c0_10, %c1] : memref<16x9xf32, #tpu.memory_space<vmem>>, vector<16x1xf32>
    %c0_11 = arith.constant 0 : index
    %c1_12 = arith.constant 1 : index
    %12 = vector.load %arg19[%c0_11, %c1_12] : memref<16x24xf32, #tpu.memory_space<vmem>>, vector<16x16xf32>
    %13 = vector.broadcast %11 : vector<16x1xf32> to vector<16x16xf32>
    %14 = arith.mulf %13, %12 : vector<16x16xf32>
    %15 = arith.addf %10, %14 : vector<16x16xf32>
    %c0_13 = arith.constant 0 : index
    %c2 = arith.constant 2 : index
    %16 = vector.load %arg2[%c0_13, %c2] : memref<16x9xf32, #tpu.memory_space<vmem>>, vector<16x1xf32>
    %c0_14 = arith.constant 0 : index
    %c2_15 = arith.constant 2 : index
    %17 = vector.load %arg19[%c0_14, %c2_15] : memref<16x24xf32, #tpu.memory_space<vmem>>, vector<16x16xf32>
    %18 = vector.broadcast %16 : vector<16x1xf32> to vector<16x16xf32>
    %19 = arith.mulf %18, %17 : vector<16x16xf32>
    %20 = arith.addf %15, %19 : vector<16x16xf32>
    %c0_16 = arith.constant 0 : index
    %c3 = arith.constant 3 : index
    %21 = vector.load %arg2[%c0_16, %c3] : memref<16x9xf32, #tpu.memory_space<vmem>>, vector<16x1xf32>
    %c0_17 = arith.constant 0 : index
    %c3_18 = arith.constant 3 : index
    %22 = vector.load %arg19[%c0_17, %c3_18] : memref<16x24xf32, #tpu.memory_space<vmem>>, vector<16x16xf32>
    %23 = vector.broadcast %21 : vector<16x1xf32> to vector<16x16xf32>
    %24 = arith.mulf %23, %22 : vector<16x16xf32>
    %25 = arith.addf %20, %24 : vector<16x16xf32>
    %c0_19 = arith.constant 0 : index
    %c4_20 = arith.constant 4 : index
    %26 = vector.load %arg2[%c0_19, %c4_20] : memref<16x9xf32, #tpu.memory_space<vmem>>, vector<16x1xf32>
    %c0_21 = arith.constant 0 : index
    %c4_22 = arith.constant 4 : index
    %27 = vector.load %arg19[%c0_21, %c4_22] : memref<16x24xf32, #tpu.memory_space<vmem>>, vector<16x16xf32>
    %28 = vector.broadcast %26 : vector<16x1xf32> to vector<16x16xf32>
    %29 = arith.mulf %28, %27 : vector<16x16xf32>
    %30 = arith.addf %25, %29 : vector<16x16xf32>
    %c0_23 = arith.constant 0 : index
    %c5 = arith.constant 5 : index
    %31 = vector.load %arg2[%c0_23, %c5] : memref<16x9xf32, #tpu.memory_space<vmem>>, vector<16x1xf32>
    %c0_24 = arith.constant 0 : index
    %c5_25 = arith.constant 5 : index
    %32 = vector.load %arg19[%c0_24, %c5_25] : memref<16x24xf32, #tpu.memory_space<vmem>>, vector<16x16xf32>
    %33 = vector.broadcast %31 : vector<16x1xf32> to vector<16x16xf32>
    %34 = arith.mulf %33, %32 : vector<16x16xf32>
    %35 = arith.addf %30, %34 : vector<16x16xf32>
    %c0_26 = arith.constant 0 : index
    %c6 = arith.constant 6 : index
    %36 = vector.load %arg2[%c0_26, %c6] : memref<16x9xf32, #tpu.memory_space<vmem>>, vector<16x1xf32>
    %c0_27 = arith.constant 0 : index
    %c6_28 = arith.constant 6 : index
    %37 = vector.load %arg19[%c0_27, %c6_28] : memref<16x24xf32, #tpu.memory_space<vmem>>, vector<16x16xf32>
    %38 = vector.broadcast %36 : vector<16x1xf32> to vector<16x16xf32>
    %39 = arith.mulf %38, %37 : vector<16x16xf32>
    %40 = arith.addf %35, %39 : vector<16x16xf32>
    %c0_29 = arith.constant 0 : index
    %c7 = arith.constant 7 : index
    %41 = vector.load %arg2[%c0_29, %c7] : memref<16x9xf32, #tpu.memory_space<vmem>>, vector<16x1xf32>
    %c0_30 = arith.constant 0 : index
    %c7_31 = arith.constant 7 : index
    %42 = vector.load %arg19[%c0_30, %c7_31] : memref<16x24xf32, #tpu.memory_space<vmem>>, vector<16x16xf32>
    %43 = vector.broadcast %41 : vector<16x1xf32> to vector<16x16xf32>
    %44 = arith.mulf %43, %42 : vector<16x16xf32>
    %45 = arith.addf %40, %44 : vector<16x16xf32>
    %c0_32 = arith.constant 0 : index
    %c8 = arith.constant 8 : index
    %46 = vector.load %arg2[%c0_32, %c8] : memref<16x9xf32, #tpu.memory_space<vmem>>, vector<16x1xf32>
    %c0_33 = arith.constant 0 : index
    %c8_34 = arith.constant 8 : index
    %47 = vector.load %arg19[%c0_33, %c8_34] : memref<16x24xf32, #tpu.memory_space<vmem>>, vector<16x16xf32>
    %48 = vector.broadcast %46 : vector<16x1xf32> to vector<16x16xf32>
    %49 = arith.mulf %48, %47 : vector<16x16xf32>
    %50 = arith.addf %45, %49 : vector<16x16xf32>
    %c0_35 = arith.constant 0 : index
    %c0_36 = arith.constant 0 : index
    %51 = vector.load %arg3[%c0_35, %c0_36] : memref<16x1xf32, #tpu.memory_space<vmem>>, vector<16x1xf32>
    %52 = vector.broadcast %51 : vector<16x1xf32> to vector<16x16xf32>
    %53 = arith.addf %50, %52 : vector<16x16xf32>
    %cst_37 = arith.constant 5.000000e-01 : f32
    %54 = vector.broadcast %cst_37 : f32 to vector<16x16xf32>
    %55 = arith.mulf %54, %53 : vector<16x16xf32>
    %cst_38 = arith.constant 4.471500e-02 : f32
    %56 = vector.broadcast %cst_38 : f32 to vector<16x16xf32>
    %57 = arith.mulf %56, %53 : vector<16x16xf32>
    %58 = arith.mulf %57, %53 : vector<16x16xf32>
    %59 = arith.mulf %58, %53 : vector<16x16xf32>
    %60 = arith.addf %53, %59 : vector<16x16xf32>
    %cst_39 = arith.constant 0.797884583 : f32
    %61 = vector.broadcast %cst_39 : f32 to vector<16x16xf32>
    %62 = arith.mulf %61, %60 : vector<16x16xf32>
    %63 = math.tanh %62 : vector<16x16xf32>
    %cst_40 = arith.constant 1.000000e+00 : f32
    %64 = vector.broadcast %cst_40 : f32 to vector<16x16xf32>
    %65 = arith.addf %64, %63 : vector<16x16xf32>
    %66 = arith.mulf %55, %65 : vector<16x16xf32>
    %67 = arith.addf %1, %66 : vector<16x16xf32>
    %cst_41 = arith.constant dense<0.000000e+00> : vector<16xf32>
    %68 = vector.multi_reduction <add>, %67, %cst_41 [0] : vector<16x16xf32> to vector<16xf32>
    %69 = vector.shape_cast %68 : vector<16xf32> to vector<1x16xf32>
    %cst_42 = arith.constant 1.600000e+01 : f32
    %70 = vector.broadcast %cst_42 : f32 to vector<1x16xf32>
    %71 = arith.divf %69, %70 : vector<1x16xf32>
    %72 = vector.broadcast %71 : vector<1x16xf32> to vector<16x16xf32>
    %73 = arith.subf %67, %72 : vector<16x16xf32>
    %74 = arith.mulf %73, %73 : vector<16x16xf32>
    %cst_43 = arith.constant dense<0.000000e+00> : vector<16xf32>
    %75 = vector.multi_reduction <add>, %74, %cst_43 [0] : vector<16x16xf32> to vector<16xf32>
    %76 = vector.shape_cast %75 : vector<16xf32> to vector<1x16xf32>
    %cst_44 = arith.constant 1.600000e+01 : f32
    %77 = vector.broadcast %cst_44 : f32 to vector<1x16xf32>
    %78 = arith.divf %76, %77 : vector<1x16xf32>
    %79 = vector.broadcast %71 : vector<1x16xf32> to vector<16x16xf32>
    %80 = arith.subf %67, %79 : vector<16x16xf32>
    %cst_45 = arith.constant 9.99999974E-6 : f32
    %81 = vector.broadcast %cst_45 : f32 to vector<1x16xf32>
    %82 = arith.addf %78, %81 : vector<1x16xf32>
    %83 = math.rsqrt %82 : vector<1x16xf32>
    %84 = vector.broadcast %83 : vector<1x16xf32> to vector<16x16xf32>
    %85 = arith.mulf %80, %84 : vector<16x16xf32>
    %c0_46 = arith.constant 0 : index
    %c0_47 = arith.constant 0 : index
    %86 = vector.load %arg4[%c0_46, %c0_47] : memref<16x1xf32, #tpu.memory_space<vmem>>, vector<16x1xf32>
    %87 = vector.broadcast %86 : vector<16x1xf32> to vector<16x16xf32>
    %88 = arith.mulf %85, %87 : vector<16x16xf32>
    %c0_48 = arith.constant 0 : index
    %c0_49 = arith.constant 0 : index
    %89 = vector.load %arg5[%c0_48, %c0_49] : memref<16x1xf32, #tpu.memory_space<vmem>>, vector<16x1xf32>
    %90 = vector.broadcast %89 : vector<16x1xf32> to vector<16x16xf32>
    %91 = arith.addf %88, %90 : vector<16x16xf32>
    %c0_50 = arith.constant 0 : index
    %c0_51 = arith.constant 0 : index
    %92 = vector.load %arg6[%c0_50, %c0_51] : memref<16x48xf32, #tpu.memory_space<vmem>>, vector<16x48xf32>
    %cst_52 = arith.constant dense<0.000000e+00> : vector<16x48xf32>
    %93 = tpu.matmul %91, %92, %cst_52 {dimension_numbers = #tpu.dot_dimension_numbers<[0], [0], [1], [1], [0, 1, 1, 1], [], []>} : vector<16x16xf32>, vector<16x48xf32>, vector<16x48xf32> -> vector<16x48xf32>
    %c0_53 = arith.constant 0 : index
    %c0_54 = arith.constant 0 : index
    %94 = vector.load %arg7[%c0_53, %c0_54] : memref<1x48xf32, #tpu.memory_space<vmem>>, vector<1x48xf32>
    %95 = vector.broadcast %94 : vector<1x48xf32> to vector<16x48xf32>
    %96 = arith.addf %93, %95 : vector<16x48xf32>
    %cst_55 = arith.constant -5.000000e+00 : f32
    %97 = vector.broadcast %cst_55 : f32 to vector<1x48xf32>
    %c0_56 = arith.constant 0 : index
    %c0_57 = arith.constant 0 : index
    %98 = vector.load %arg20[%c0_56, %c0_57] : memref<17x48xf32, #tpu.memory_space<vmem>>, vector<1x48xf32>
    tpu.vector_store %arg20[%c0_56, %c0_57], %97 {strides = array<i32>} : memref<17x48xf32, #tpu.memory_space<vmem>>, vector<1x48xf32>,
    %c1_58 = arith.constant 1 : index
    %c0_59 = arith.constant 0 : index
    %99 = vector.load %arg20[%c1_58, %c0_59] : memref<17x48xf32, #tpu.memory_space<vmem>>, vector<16x48xf32>
    tpu.vector_store %arg20[%c1_58, %c0_59], %96 {strides = array<i32>} : memref<17x48xf32, #tpu.memory_space<vmem>>, vector<16x48xf32>,
    %c0_60 = arith.constant 0 : index
    %c0_61 = arith.constant 0 : index
    %100 = vector.load %arg20[%c0_60, %c0_61] : memref<17x48xf32, #tpu.memory_space<vmem>>, vector<17x48xf32>
    %c0_62 = arith.constant 0 : index
    %c0_63 = arith.constant 0 : index
    %c0_64 = arith.constant 0 : index
    %101 = vector.load %arg8[%c0_62, %c0_63, %c0_64] : memref<2x48x144xf32, #tpu.memory_space<vmem>>, vector<1x48x144xf32>
    %102 = vector.shape_cast %101 : vector<1x48x144xf32> to vector<48x144xf32>
    %c0_65 = arith.constant 0 : index
    %c0_66 = arith.constant 0 : index
    %c0_67 = arith.constant 0 : index
    %103 = vector.load %arg10[%c0_65, %c0_66, %c0_67] : memref<2x48x48xf32, #tpu.memory_space<vmem>>, vector<1x48x48xf32>
    %104 = vector.shape_cast %103 : vector<1x48x48xf32> to vector<48x48xf32>
    %c0_68 = arith.constant 0 : index
    %c0_69 = arith.constant 0 : index
    %c0_70 = arith.constant 0 : index
    %105 = vector.load %arg12[%c0_68, %c0_69, %c0_70] : memref<2x48x64xf32, #tpu.memory_space<vmem>>, vector<1x48x64xf32>
    %106 = vector.shape_cast %105 : vector<1x48x64xf32> to vector<48x64xf32>
    %c0_71 = arith.constant 0 : index
    %c0_72 = arith.constant 0 : index
    %c0_73 = arith.constant 0 : index
    %107 = vector.load %arg14[%c0_71, %c0_72, %c0_73] : memref<2x64x48xf32, #tpu.memory_space<vmem>>, vector<1x64x48xf32>
    %108 = vector.shape_cast %107 : vector<1x64x48xf32> to vector<64x48xf32>
    %cst_74 = arith.constant dense<0.000000e+00> : vector<17x144xf32>
    %109 = tpu.matmul %100, %102, %cst_74 {dimension_numbers = #tpu.dot_dimension_numbers<[1], [0], [0], [1], [0, 0, 1, 1], [], []>} : vector<17x48xf32>, vector<48x144xf32>, vector<17x144xf32> -> vector<17x144xf32>
    %c0_75 = arith.constant 0 : index
    %c0_76 = arith.constant 0 : index
    %c0_77 = arith.constant 0 : index
    %110 = vector.load %arg9[%c0_75, %c0_76, %c0_77] : memref<2x1x144xf32, #tpu.memory_space<vmem>>, vector<1x1x144xf32>
    %111 = vector.shape_cast %110 : vector<1x1x144xf32> to vector<1x144xf32>
    %112 = vector.broadcast %111 : vector<1x144xf32> to vector<17x144xf32>
    %113 = arith.addf %109, %112 : vector<17x144xf32>
    %114 = vector.extract_strided_slice %113 {offsets = [0, 0], sizes = [17, 48], strides = [1, 1]} : vector<17x144xf32> to vector<17x48xf32>
    %115 = vector.extract_strided_slice %113 {offsets = [0, 48], sizes = [17, 48], strides = [1, 1]} : vector<17x144xf32> to vector<17x48xf32>
    %116 = vector.extract_strided_slice %113 {offsets = [0, 96], sizes = [17, 48], strides = [1, 1]} : vector<17x144xf32> to vector<17x48xf32>
    %117 = vector.extract_strided_slice %114 {offsets = [0, 0], sizes = [17, 12], strides = [1, 1]} : vector<17x48xf32> to vector<17x12xf32>
    %cst_78 = arith.constant 0.288675129 : f32
    %118 = vector.broadcast %cst_78 : f32 to vector<17x12xf32>
    %119 = arith.mulf %117, %118 : vector<17x12xf32>
    %120 = vector.extract_strided_slice %115 {offsets = [0, 0], sizes = [17, 12], strides = [1, 1]} : vector<17x48xf32> to vector<17x12xf32>
    %cst_79 = arith.constant dense<0.000000e+00> : vector<17x17xf32>
    %121 = tpu.matmul %119, %120, %cst_79 {dimension_numbers = #tpu.dot_dimension_numbers<[1], [1], [0], [0], [0, 0, 1, 0], [], []>} : vector<17x12xf32>, vector<17x12xf32>, vector<17x17xf32> -> vector<17x17xf32>
    %cst_80 = arith.constant dense<0xFF800000> : vector<17xf32>
    %122 = vector.multi_reduction <maximumf>, %121, %cst_80 [1] : vector<17x17xf32> to vector<17xf32>
    %123 = vector.shape_cast %122 : vector<17xf32> to vector<17x1xf32>
    %124 = vector.broadcast %123 : vector<17x1xf32> to vector<17x17xf32>
    %125 = arith.subf %121, %124 : vector<17x17xf32>
    %126 = math.exp %125 : vector<17x17xf32>
    %cst_81 = arith.constant dense<0.000000e+00> : vector<17xf32>
    %127 = vector.multi_reduction <add>, %126, %cst_81 [1] : vector<17x17xf32> to vector<17xf32>
    %128 = vector.shape_cast %127 : vector<17xf32> to vector<17x1xf32>
    %129 = vector.extract_strided_slice %116 {offsets = [0, 0], sizes = [17, 12], strides = [1, 1]} : vector<17x48xf32> to vector<17x12xf32>
    %cst_82 = arith.constant dense<0.000000e+00> : vector<17x12xf32>
    %130 = tpu.matmul %126, %129, %cst_82 {dimension_numbers = #tpu.dot_dimension_numbers<[1], [0], [0], [1], [0, 0, 1, 1], [], []>} : vector<17x17xf32>, vector<17x12xf32>, vector<17x12xf32> -> vector<17x12xf32>
    %131 = tpu.reciprocal %128 {approx = true} : vector<17x1xf32> -> vector<17x1xf32>
    %132 = vector.broadcast %131 : vector<17x1xf32> to vector<17x12xf32>
    %133 = arith.mulf %130, %132 : vector<17x12xf32>
    %c0_83 = arith.constant 0 : index
    %c0_84 = arith.constant 0 : index
    %134 = vector.load %arg21[%c0_83, %c0_84] : memref<17x48xf32, #tpu.memory_space<vmem>>, vector<17x12xf32>
    tpu.vector_store %arg21[%c0_83, %c0_84], %133 {strides = array<i32>} : memref<17x48xf32, #tpu.memory_space<vmem>>, vector<17x12xf32>,
    %135 = vector.extract_strided_slice %114 {offsets = [0, 12], sizes = [17, 12], strides = [1, 1]} : vector<17x48xf32> to vector<17x12xf32>
    %cst_85 = arith.constant 0.288675129 : f32
    %136 = vector.broadcast %cst_85 : f32 to vector<17x12xf32>
    %137 = arith.mulf %135, %136 : vector<17x12xf32>
    %138 = vector.extract_strided_slice %115 {offsets = [0, 12], sizes = [17, 12], strides = [1, 1]} : vector<17x48xf32> to vector<17x12xf32>
    %cst_86 = arith.constant dense<0.000000e+00> : vector<17x17xf32>
    %139 = tpu.matmul %137, %138, %cst_86 {dimension_numbers = #tpu.dot_dimension_numbers<[1], [1], [0], [0], [0, 0, 1, 0], [], []>} : vector<17x12xf32>, vector<17x12xf32>, vector<17x17xf32> -> vector<17x17xf32>
    %cst_87 = arith.constant dense<0xFF800000> : vector<17xf32>
    %140 = vector.multi_reduction <maximumf>, %139, %cst_87 [1] : vector<17x17xf32> to vector<17xf32>
    %141 = vector.shape_cast %140 : vector<17xf32> to vector<17x1xf32>
    %142 = vector.broadcast %141 : vector<17x1xf32> to vector<17x17xf32>
    %143 = arith.subf %139, %142 : vector<17x17xf32>
    %144 = math.exp %143 : vector<17x17xf32>
    %cst_88 = arith.constant dense<0.000000e+00> : vector<17xf32>
    %145 = vector.multi_reduction <add>, %144, %cst_88 [1] : vector<17x17xf32> to vector<17xf32>
    %146 = vector.shape_cast %145 : vector<17xf32> to vector<17x1xf32>
    %147 = vector.extract_strided_slice %116 {offsets = [0, 12], sizes = [17, 12], strides = [1, 1]} : vector<17x48xf32> to vector<17x12xf32>
    %cst_89 = arith.constant dense<0.000000e+00> : vector<17x12xf32>
    %148 = tpu.matmul %144, %147, %cst_89 {dimension_numbers = #tpu.dot_dimension_numbers<[1], [0], [0], [1], [0, 0, 1, 1], [], []>} : vector<17x17xf32>, vector<17x12xf32>, vector<17x12xf32> -> vector<17x12xf32>
    %149 = tpu.reciprocal %146 {approx = true} : vector<17x1xf32> -> vector<17x1xf32>
    %150 = vector.broadcast %149 : vector<17x1xf32> to vector<17x12xf32>
    %151 = arith.mulf %148, %150 : vector<17x12xf32>
    %c0_90 = arith.constant 0 : index
    %c12 = arith.constant 12 : index
    %152 = vector.load %arg21[%c0_90, %c12] : memref<17x48xf32, #tpu.memory_space<vmem>>, vector<17x12xf32>
    tpu.vector_store %arg21[%c0_90, %c12], %151 {strides = array<i32>} : memref<17x48xf32, #tpu.memory_space<vmem>>, vector<17x12xf32>,
    %153 = vector.extract_strided_slice %114 {offsets = [0, 24], sizes = [17, 12], strides = [1, 1]} : vector<17x48xf32> to vector<17x12xf32>
    %cst_91 = arith.constant 0.288675129 : f32
    %154 = vector.broadcast %cst_91 : f32 to vector<17x12xf32>
    %155 = arith.mulf %153, %154 : vector<17x12xf32>
    %156 = vector.extract_strided_slice %115 {offsets = [0, 24], sizes = [17, 12], strides = [1, 1]} : vector<17x48xf32> to vector<17x12xf32>
    %cst_92 = arith.constant dense<0.000000e+00> : vector<17x17xf32>
    %157 = tpu.matmul %155, %156, %cst_92 {dimension_numbers = #tpu.dot_dimension_numbers<[1], [1], [0], [0], [0, 0, 1, 0], [], []>} : vector<17x12xf32>, vector<17x12xf32>, vector<17x17xf32> -> vector<17x17xf32>
    %cst_93 = arith.constant dense<0xFF800000> : vector<17xf32>
    %158 = vector.multi_reduction <maximumf>, %157, %cst_93 [1] : vector<17x17xf32> to vector<17xf32>
    %159 = vector.shape_cast %158 : vector<17xf32> to vector<17x1xf32>
    %160 = vector.broadcast %159 : vector<17x1xf32> to vector<17x17xf32>
    %161 = arith.subf %157, %160 : vector<17x17xf32>
    %162 = math.exp %161 : vector<17x17xf32>
    %cst_94 = arith.constant dense<0.000000e+00> : vector<17xf32>
    %163 = vector.multi_reduction <add>, %162, %cst_94 [1] : vector<17x17xf32> to vector<17xf32>
    %164 = vector.shape_cast %163 : vector<17xf32> to vector<17x1xf32>
    %165 = vector.extract_strided_slice %116 {offsets = [0, 24], sizes = [17, 12], strides = [1, 1]} : vector<17x48xf32> to vector<17x12xf32>
    %cst_95 = arith.constant dense<0.000000e+00> : vector<17x12xf32>
    %166 = tpu.matmul %162, %165, %cst_95 {dimension_numbers = #tpu.dot_dimension_numbers<[1], [0], [0], [1], [0, 0, 1, 1], [], []>} : vector<17x17xf32>, vector<17x12xf32>, vector<17x12xf32> -> vector<17x12xf32>
    %167 = tpu.reciprocal %164 {approx = true} : vector<17x1xf32> -> vector<17x1xf32>
    %168 = vector.broadcast %167 : vector<17x1xf32> to vector<17x12xf32>
    %169 = arith.mulf %166, %168 : vector<17x12xf32>
    %c0_96 = arith.constant 0 : index
    %c24 = arith.constant 24 : index
    %170 = vector.load %arg21[%c0_96, %c24] : memref<17x48xf32, #tpu.memory_space<vmem>>, vector<17x12xf32>
    tpu.vector_store %arg21[%c0_96, %c24], %169 {strides = array<i32>} : memref<17x48xf32, #tpu.memory_space<vmem>>, vector<17x12xf32>,
    %171 = vector.extract_strided_slice %114 {offsets = [0, 36], sizes = [17, 12], strides = [1, 1]} : vector<17x48xf32> to vector<17x12xf32>
    %cst_97 = arith.constant 0.288675129 : f32
    %172 = vector.broadcast %cst_97 : f32 to vector<17x12xf32>
    %173 = arith.mulf %171, %172 : vector<17x12xf32>
    %174 = vector.extract_strided_slice %115 {offsets = [0, 36], sizes = [17, 12], strides = [1, 1]} : vector<17x48xf32> to vector<17x12xf32>
    %cst_98 = arith.constant dense<0.000000e+00> : vector<17x17xf32>
    %175 = tpu.matmul %173, %174, %cst_98 {dimension_numbers = #tpu.dot_dimension_numbers<[1], [1], [0], [0], [0, 0, 1, 0], [], []>} : vector<17x12xf32>, vector<17x12xf32>, vector<17x17xf32> -> vector<17x17xf32>
    %cst_99 = arith.constant dense<0xFF800000> : vector<17xf32>
    %176 = vector.multi_reduction <maximumf>, %175, %cst_99 [1] : vector<17x17xf32> to vector<17xf32>
    %177 = vector.shape_cast %176 : vector<17xf32> to vector<17x1xf32>
    %178 = vector.broadcast %177 : vector<17x1xf32> to vector<17x17xf32>
    %179 = arith.subf %175, %178 : vector<17x17xf32>
    %180 = math.exp %179 : vector<17x17xf32>
    %cst_100 = arith.constant dense<0.000000e+00> : vector<17xf32>
    %181 = vector.multi_reduction <add>, %180, %cst_100 [1] : vector<17x17xf32> to vector<17xf32>
    %182 = vector.shape_cast %181 : vector<17xf32> to vector<17x1xf32>
    %183 = vector.extract_strided_slice %116 {offsets = [0, 36], sizes = [17, 12], strides = [1, 1]} : vector<17x48xf32> to vector<17x12xf32>
    %cst_101 = arith.constant dense<0.000000e+00> : vector<17x12xf32>
    %184 = tpu.matmul %180, %183, %cst_101 {dimension_numbers = #tpu.dot_dimension_numbers<[1], [0], [0], [1], [0, 0, 1, 1], [], []>} : vector<17x17xf32>, vector<17x12xf32>, vector<17x12xf32> -> vector<17x12xf32>
    %185 = tpu.reciprocal %182 {approx = true} : vector<17x1xf32> -> vector<17x1xf32>
    %186 = vector.broadcast %185 : vector<17x1xf32> to vector<17x12xf32>
    %187 = arith.mulf %184, %186 : vector<17x12xf32>
    %c0_102 = arith.constant 0 : index
    %c36 = arith.constant 36 : index
    %188 = vector.load %arg21[%c0_102, %c36] : memref<17x48xf32, #tpu.memory_space<vmem>>, vector<17x12xf32>
    tpu.vector_store %arg21[%c0_102, %c36], %187 {strides = array<i32>} : memref<17x48xf32, #tpu.memory_space<vmem>>, vector<17x12xf32>,
    %c0_103 = arith.constant 0 : index
    %c0_104 = arith.constant 0 : index
    %189 = vector.load %arg21[%c0_103, %c0_104] : memref<17x48xf32, #tpu.memory_space<vmem>>, vector<17x48xf32>
    %cst_105 = arith.constant dense<0.000000e+00> : vector<17x48xf32>
    %190 = tpu.matmul %189, %104, %cst_105 {dimension_numbers = #tpu.dot_dimension_numbers<[1], [0], [0], [1], [0, 0, 1, 1], [], []>} : vector<17x48xf32>, vector<48x48xf32>, vector<17x48xf32> -> vector<17x48xf32>
    %c0_106 = arith.constant 0 : index
    %c0_107 = arith.constant 0 : index
    %c0_108 = arith.constant 0 : index
    %191 = vector.load %arg11[%c0_106, %c0_107, %c0_108] : memref<2x1x48xf32, #tpu.memory_space<vmem>>, vector<1x1x48xf32>
    %192 = vector.shape_cast %191 : vector<1x1x48xf32> to vector<1x48xf32>
    %193 = vector.broadcast %192 : vector<1x48xf32> to vector<17x48xf32>
    %194 = arith.addf %190, %193 : vector<17x48xf32>
    %195 = arith.addf %100, %194 : vector<17x48xf32>
    %cst_109 = arith.constant dense<0.000000e+00> : vector<17x64xf32>
    %196 = tpu.matmul %195, %106, %cst_109 {dimension_numbers = #tpu.dot_dimension_numbers<[1], [0], [0], [1], [0, 0, 1, 1], [], []>} : vector<17x48xf32>, vector<48x64xf32>, vector<17x64xf32> -> vector<17x64xf32>
    %c0_110 = arith.constant 0 : index
    %c0_111 = arith.constant 0 : index
    %c0_112 = arith.constant 0 : index
    %197 = vector.load %arg13[%c0_110, %c0_111, %c0_112] : memref<2x1x64xf32, #tpu.memory_space<vmem>>, vector<1x1x64xf32>
    %198 = vector.shape_cast %197 : vector<1x1x64xf32> to vector<1x64xf32>
    %199 = vector.broadcast %198 : vector<1x64xf32> to vector<17x64xf32>
    %200 = arith.addf %196, %199 : vector<17x64xf32>
    %cst_113 = arith.constant 5.000000e-01 : f32
    %201 = vector.broadcast %cst_113 : f32 to vector<17x64xf32>
    %202 = arith.mulf %201, %200 : vector<17x64xf32>
    %cst_114 = arith.constant 4.471500e-02 : f32
    %203 = vector.broadcast %cst_114 : f32 to vector<17x64xf32>
    %204 = arith.mulf %203, %200 : vector<17x64xf32>
    %205 = arith.mulf %204, %200 : vector<17x64xf32>
    %206 = arith.mulf %205, %200 : vector<17x64xf32>
    %207 = arith.addf %200, %206 : vector<17x64xf32>
    %cst_115 = arith.constant 0.797884583 : f32
    %208 = vector.broadcast %cst_115 : f32 to vector<17x64xf32>
    %209 = arith.mulf %208, %207 : vector<17x64xf32>
    %210 = math.tanh %209 : vector<17x64xf32>
    %cst_116 = arith.constant 1.000000e+00 : f32
    %211 = vector.broadcast %cst_116 : f32 to vector<17x64xf32>
    %212 = arith.addf %211, %210 : vector<17x64xf32>
    %213 = arith.mulf %202, %212 : vector<17x64xf32>
    %cst_117 = arith.constant dense<0.000000e+00> : vector<17x48xf32>
    %214 = tpu.matmul %213, %108, %cst_117 {dimension_numbers = #tpu.dot_dimension_numbers<[1], [0], [0], [1], [0, 0, 1, 1], [], []>} : vector<17x64xf32>, vector<64x48xf32>, vector<17x48xf32> -> vector<17x48xf32>
    %215 = arith.addf %195, %214 : vector<17x48xf32>
    %c0_118 = arith.constant 0 : index
    %c0_119 = arith.constant 0 : index
    %c0_120 = arith.constant 0 : index
    %216 = vector.load %arg15[%c0_118, %c0_119, %c0_120] : memref<2x1x48xf32, #tpu.memory_space<vmem>>, vector<1x1x48xf32>
    %217 = vector.shape_cast %216 : vector<1x1x48xf32> to vector<1x48xf32>
    %218 = vector.broadcast %217 : vector<1x48xf32> to vector<17x48xf32>
    %219 = arith.addf %215, %218 : vector<17x48xf32>
    %c1_121 = arith.constant 1 : index
    %c0_122 = arith.constant 0 : index
    %c0_123 = arith.constant 0 : index
    %220 = vector.load %arg8[%c1_121, %c0_122, %c0_123] : memref<2x48x144xf32, #tpu.memory_space<vmem>>, vector<1x48x144xf32>
    %221 = vector.shape_cast %220 : vector<1x48x144xf32> to vector<48x144xf32>
    %c1_124 = arith.constant 1 : index
    %c0_125 = arith.constant 0 : index
    %c0_126 = arith.constant 0 : index
    %222 = vector.load %arg10[%c1_124, %c0_125, %c0_126] : memref<2x48x48xf32, #tpu.memory_space<vmem>>, vector<1x48x48xf32>
    %223 = vector.shape_cast %222 : vector<1x48x48xf32> to vector<48x48xf32>
    %c1_127 = arith.constant 1 : index
    %c0_128 = arith.constant 0 : index
    %c0_129 = arith.constant 0 : index
    %224 = vector.load %arg12[%c1_127, %c0_128, %c0_129] : memref<2x48x64xf32, #tpu.memory_space<vmem>>, vector<1x48x64xf32>
    %225 = vector.shape_cast %224 : vector<1x48x64xf32> to vector<48x64xf32>
    %c1_130 = arith.constant 1 : index
    %c0_131 = arith.constant 0 : index
    %c0_132 = arith.constant 0 : index
    %226 = vector.load %arg14[%c1_130, %c0_131, %c0_132] : memref<2x64x48xf32, #tpu.memory_space<vmem>>, vector<1x64x48xf32>
    %227 = vector.shape_cast %226 : vector<1x64x48xf32> to vector<64x48xf32>
    %cst_133 = arith.constant dense<0.000000e+00> : vector<17x144xf32>
    %228 = tpu.matmul %219, %221, %cst_133 {dimension_numbers = #tpu.dot_dimension_numbers<[1], [0], [0], [1], [0, 0, 1, 1], [], []>} : vector<17x48xf32>, vector<48x144xf32>, vector<17x144xf32> -> vector<17x144xf32>
    %c1_134 = arith.constant 1 : index
    %c0_135 = arith.constant 0 : index
    %c0_136 = arith.constant 0 : index
    %229 = vector.load %arg9[%c1_134, %c0_135, %c0_136] : memref<2x1x144xf32, #tpu.memory_space<vmem>>, vector<1x1x144xf32>
    %230 = vector.shape_cast %229 : vector<1x1x144xf32> to vector<1x144xf32>
    %231 = vector.broadcast %230 : vector<1x144xf32> to vector<17x144xf32>
    %232 = arith.addf %228, %231 : vector<17x144xf32>
    %233 = vector.extract_strided_slice %232 {offsets = [0, 0], sizes = [17, 48], strides = [1, 1]} : vector<17x144xf32> to vector<17x48xf32>
    %234 = vector.extract_strided_slice %232 {offsets = [0, 48], sizes = [17, 48], strides = [1, 1]} : vector<17x144xf32> to vector<17x48xf32>
    %235 = vector.extract_strided_slice %232 {offsets = [0, 96], sizes = [17, 48], strides = [1, 1]} : vector<17x144xf32> to vector<17x48xf32>
    %236 = vector.extract_strided_slice %233 {offsets = [0, 0], sizes = [17, 12], strides = [1, 1]} : vector<17x48xf32> to vector<17x12xf32>
    %cst_137 = arith.constant 0.288675129 : f32
    %237 = vector.broadcast %cst_137 : f32 to vector<17x12xf32>
    %238 = arith.mulf %236, %237 : vector<17x12xf32>
    %239 = vector.extract_strided_slice %234 {offsets = [0, 0], sizes = [17, 12], strides = [1, 1]} : vector<17x48xf32> to vector<17x12xf32>
    %cst_138 = arith.constant dense<0.000000e+00> : vector<17x17xf32>
    %240 = tpu.matmul %238, %239, %cst_138 {dimension_numbers = #tpu.dot_dimension_numbers<[1], [1], [0], [0], [0, 0, 1, 0], [], []>} : vector<17x12xf32>, vector<17x12xf32>, vector<17x17xf32> -> vector<17x17xf32>
    %cst_139 = arith.constant dense<0xFF800000> : vector<17xf32>
    %241 = vector.multi_reduction <maximumf>, %240, %cst_139 [1] : vector<17x17xf32> to vector<17xf32>
    %242 = vector.shape_cast %241 : vector<17xf32> to vector<17x1xf32>
    %243 = vector.broadcast %242 : vector<17x1xf32> to vector<17x17xf32>
    %244 = arith.subf %240, %243 : vector<17x17xf32>
    %245 = math.exp %244 : vector<17x17xf32>
    %cst_140 = arith.constant dense<0.000000e+00> : vector<17xf32>
    %246 = vector.multi_reduction <add>, %245, %cst_140 [1] : vector<17x17xf32> to vector<17xf32>
    %247 = vector.shape_cast %246 : vector<17xf32> to vector<17x1xf32>
    %248 = vector.extract_strided_slice %235 {offsets = [0, 0], sizes = [17, 12], strides = [1, 1]} : vector<17x48xf32> to vector<17x12xf32>
    %cst_141 = arith.constant dense<0.000000e+00> : vector<17x12xf32>
    %249 = tpu.matmul %245, %248, %cst_141 {dimension_numbers = #tpu.dot_dimension_numbers<[1], [0], [0], [1], [0, 0, 1, 1], [], []>} : vector<17x17xf32>, vector<17x12xf32>, vector<17x12xf32> -> vector<17x12xf32>
    %250 = tpu.reciprocal %247 {approx = true} : vector<17x1xf32> -> vector<17x1xf32>
    %251 = vector.broadcast %250 : vector<17x1xf32> to vector<17x12xf32>
    %252 = arith.mulf %249, %251 : vector<17x12xf32>
    %c0_142 = arith.constant 0 : index
    %c0_143 = arith.constant 0 : index
    %253 = vector.load %arg21[%c0_142, %c0_143] : memref<17x48xf32, #tpu.memory_space<vmem>>, vector<17x12xf32>
    tpu.vector_store %arg21[%c0_142, %c0_143], %252 {strides = array<i32>} : memref<17x48xf32, #tpu.memory_space<vmem>>, vector<17x12xf32>,
    %254 = vector.extract_strided_slice %233 {offsets = [0, 12], sizes = [17, 12], strides = [1, 1]} : vector<17x48xf32> to vector<17x12xf32>
    %cst_144 = arith.constant 0.288675129 : f32
    %255 = vector.broadcast %cst_144 : f32 to vector<17x12xf32>
    %256 = arith.mulf %254, %255 : vector<17x12xf32>
    %257 = vector.extract_strided_slice %234 {offsets = [0, 12], sizes = [17, 12], strides = [1, 1]} : vector<17x48xf32> to vector<17x12xf32>
    %cst_145 = arith.constant dense<0.000000e+00> : vector<17x17xf32>
    %258 = tpu.matmul %256, %257, %cst_145 {dimension_numbers = #tpu.dot_dimension_numbers<[1], [1], [0], [0], [0, 0, 1, 0], [], []>} : vector<17x12xf32>, vector<17x12xf32>, vector<17x17xf32> -> vector<17x17xf32>
    %cst_146 = arith.constant dense<0xFF800000> : vector<17xf32>
    %259 = vector.multi_reduction <maximumf>, %258, %cst_146 [1] : vector<17x17xf32> to vector<17xf32>
    %260 = vector.shape_cast %259 : vector<17xf32> to vector<17x1xf32>
    %261 = vector.broadcast %260 : vector<17x1xf32> to vector<17x17xf32>
    %262 = arith.subf %258, %261 : vector<17x17xf32>
    %263 = math.exp %262 : vector<17x17xf32>
    %cst_147 = arith.constant dense<0.000000e+00> : vector<17xf32>
    %264 = vector.multi_reduction <add>, %263, %cst_147 [1] : vector<17x17xf32> to vector<17xf32>
    %265 = vector.shape_cast %264 : vector<17xf32> to vector<17x1xf32>
    %266 = vector.extract_strided_slice %235 {offsets = [0, 12], sizes = [17, 12], strides = [1, 1]} : vector<17x48xf32> to vector<17x12xf32>
    %cst_148 = arith.constant dense<0.000000e+00> : vector<17x12xf32>
    %267 = tpu.matmul %263, %266, %cst_148 {dimension_numbers = #tpu.dot_dimension_numbers<[1], [0], [0], [1], [0, 0, 1, 1], [], []>} : vector<17x17xf32>, vector<17x12xf32>, vector<17x12xf32> -> vector<17x12xf32>
    %268 = tpu.reciprocal %265 {approx = true} : vector<17x1xf32> -> vector<17x1xf32>
    %269 = vector.broadcast %268 : vector<17x1xf32> to vector<17x12xf32>
    %270 = arith.mulf %267, %269 : vector<17x12xf32>
    %c0_149 = arith.constant 0 : index
    %c12_150 = arith.constant 12 : index
    %271 = vector.load %arg21[%c0_149, %c12_150] : memref<17x48xf32, #tpu.memory_space<vmem>>, vector<17x12xf32>
    tpu.vector_store %arg21[%c0_149, %c12_150], %270 {strides = array<i32>} : memref<17x48xf32, #tpu.memory_space<vmem>>, vector<17x12xf32>,
    %272 = vector.extract_strided_slice %233 {offsets = [0, 24], sizes = [17, 12], strides = [1, 1]} : vector<17x48xf32> to vector<17x12xf32>
    %cst_151 = arith.constant 0.288675129 : f32
    %273 = vector.broadcast %cst_151 : f32 to vector<17x12xf32>
    %274 = arith.mulf %272, %273 : vector<17x12xf32>
    %275 = vector.extract_strided_slice %234 {offsets = [0, 24], sizes = [17, 12], strides = [1, 1]} : vector<17x48xf32> to vector<17x12xf32>
    %cst_152 = arith.constant dense<0.000000e+00> : vector<17x17xf32>
    %276 = tpu.matmul %274, %275, %cst_152 {dimension_numbers = #tpu.dot_dimension_numbers<[1], [1], [0], [0], [0, 0, 1, 0], [], []>} : vector<17x12xf32>, vector<17x12xf32>, vector<17x17xf32> -> vector<17x17xf32>
    %cst_153 = arith.constant dense<0xFF800000> : vector<17xf32>
    %277 = vector.multi_reduction <maximumf>, %276, %cst_153 [1] : vector<17x17xf32> to vector<17xf32>
    %278 = vector.shape_cast %277 : vector<17xf32> to vector<17x1xf32>
    %279 = vector.broadcast %278 : vector<17x1xf32> to vector<17x17xf32>
    %280 = arith.subf %276, %279 : vector<17x17xf32>
    %281 = math.exp %280 : vector<17x17xf32>
    %cst_154 = arith.constant dense<0.000000e+00> : vector<17xf32>
    %282 = vector.multi_reduction <add>, %281, %cst_154 [1] : vector<17x17xf32> to vector<17xf32>
    %283 = vector.shape_cast %282 : vector<17xf32> to vector<17x1xf32>
    %284 = vector.extract_strided_slice %235 {offsets = [0, 24], sizes = [17, 12], strides = [1, 1]} : vector<17x48xf32> to vector<17x12xf32>
    %cst_155 = arith.constant dense<0.000000e+00> : vector<17x12xf32>
    %285 = tpu.matmul %281, %284, %cst_155 {dimension_numbers = #tpu.dot_dimension_numbers<[1], [0], [0], [1], [0, 0, 1, 1], [], []>} : vector<17x17xf32>, vector<17x12xf32>, vector<17x12xf32> -> vector<17x12xf32>
    %286 = tpu.reciprocal %283 {approx = true} : vector<17x1xf32> -> vector<17x1xf32>
    %287 = vector.broadcast %286 : vector<17x1xf32> to vector<17x12xf32>
    %288 = arith.mulf %285, %287 : vector<17x12xf32>
    %c0_156 = arith.constant 0 : index
    %c24_157 = arith.constant 24 : index
    %289 = vector.load %arg21[%c0_156, %c24_157] : memref<17x48xf32, #tpu.memory_space<vmem>>, vector<17x12xf32>
    tpu.vector_store %arg21[%c0_156, %c24_157], %288 {strides = array<i32>} : memref<17x48xf32, #tpu.memory_space<vmem>>, vector<17x12xf32>,
    %290 = vector.extract_strided_slice %233 {offsets = [0, 36], sizes = [17, 12], strides = [1, 1]} : vector<17x48xf32> to vector<17x12xf32>
    %cst_158 = arith.constant 0.288675129 : f32
    %291 = vector.broadcast %cst_158 : f32 to vector<17x12xf32>
    %292 = arith.mulf %290, %291 : vector<17x12xf32>
    %293 = vector.extract_strided_slice %234 {offsets = [0, 36], sizes = [17, 12], strides = [1, 1]} : vector<17x48xf32> to vector<17x12xf32>
    %cst_159 = arith.constant dense<0.000000e+00> : vector<17x17xf32>
    %294 = tpu.matmul %292, %293, %cst_159 {dimension_numbers = #tpu.dot_dimension_numbers<[1], [1], [0], [0], [0, 0, 1, 0], [], []>} : vector<17x12xf32>, vector<17x12xf32>, vector<17x17xf32> -> vector<17x17xf32>
    %cst_160 = arith.constant dense<0xFF800000> : vector<17xf32>
    %295 = vector.multi_reduction <maximumf>, %294, %cst_160 [1] : vector<17x17xf32> to vector<17xf32>
    %296 = vector.shape_cast %295 : vector<17xf32> to vector<17x1xf32>
    %297 = vector.broadcast %296 : vector<17x1xf32> to vector<17x17xf32>
    %298 = arith.subf %294, %297 : vector<17x17xf32>
    %299 = math.exp %298 : vector<17x17xf32>
    %cst_161 = arith.constant dense<0.000000e+00> : vector<17xf32>
    %300 = vector.multi_reduction <add>, %299, %cst_161 [1] : vector<17x17xf32> to vector<17xf32>
    %301 = vector.shape_cast %300 : vector<17xf32> to vector<17x1xf32>
    %302 = vector.extract_strided_slice %235 {offsets = [0, 36], sizes = [17, 12], strides = [1, 1]} : vector<17x48xf32> to vector<17x12xf32>
    %cst_162 = arith.constant dense<0.000000e+00> : vector<17x12xf32>
    %303 = tpu.matmul %299, %302, %cst_162 {dimension_numbers = #tpu.dot_dimension_numbers<[1], [0], [0], [1], [0, 0, 1, 1], [], []>} : vector<17x17xf32>, vector<17x12xf32>, vector<17x12xf32> -> vector<17x12xf32>
    %304 = tpu.reciprocal %301 {approx = true} : vector<17x1xf32> -> vector<17x1xf32>
    %305 = vector.broadcast %304 : vector<17x1xf32> to vector<17x12xf32>
    %306 = arith.mulf %303, %305 : vector<17x12xf32>
    %c0_163 = arith.constant 0 : index
    %c36_164 = arith.constant 36 : index
    %307 = vector.load %arg21[%c0_163, %c36_164] : memref<17x48xf32, #tpu.memory_space<vmem>>, vector<17x12xf32>
    tpu.vector_store %arg21[%c0_163, %c36_164], %306 {strides = array<i32>} : memref<17x48xf32, #tpu.memory_space<vmem>>, vector<17x12xf32>,
    %c0_165 = arith.constant 0 : index
    %c0_166 = arith.constant 0 : index
    %308 = vector.load %arg21[%c0_165, %c0_166] : memref<17x48xf32, #tpu.memory_space<vmem>>, vector<17x48xf32>
    %cst_167 = arith.constant dense<0.000000e+00> : vector<17x48xf32>
    %309 = tpu.matmul %308, %223, %cst_167 {dimension_numbers = #tpu.dot_dimension_numbers<[1], [0], [0], [1], [0, 0, 1, 1], [], []>} : vector<17x48xf32>, vector<48x48xf32>, vector<17x48xf32> -> vector<17x48xf32>
    %c1_168 = arith.constant 1 : index
    %c0_169 = arith.constant 0 : index
    %c0_170 = arith.constant 0 : index
    %310 = vector.load %arg11[%c1_168, %c0_169, %c0_170] : memref<2x1x48xf32, #tpu.memory_space<vmem>>, vector<1x1x48xf32>
    %311 = vector.shape_cast %310 : vector<1x1x48xf32> to vector<1x48xf32>
    %312 = vector.broadcast %311 : vector<1x48xf32> to vector<17x48xf32>
    %313 = arith.addf %309, %312 : vector<17x48xf32>
    %314 = arith.addf %219, %313 : vector<17x48xf32>
    %cst_171 = arith.constant dense<0.000000e+00> : vector<17x64xf32>
    %315 = tpu.matmul %314, %225, %cst_171 {dimension_numbers = #tpu.dot_dimension_numbers<[1], [0], [0], [1], [0, 0, 1, 1], [], []>} : vector<17x48xf32>, vector<48x64xf32>, vector<17x64xf32> -> vector<17x64xf32>
    %c1_172 = arith.constant 1 : index
    %c0_173 = arith.constant 0 : index
    %c0_174 = arith.constant 0 : index
    %316 = vector.load %arg13[%c1_172, %c0_173, %c0_174] : memref<2x1x64xf32, #tpu.memory_space<vmem>>, vector<1x1x64xf32>
    %317 = vector.shape_cast %316 : vector<1x1x64xf32> to vector<1x64xf32>
    %318 = vector.broadcast %317 : vector<1x64xf32> to vector<17x64xf32>
    %319 = arith.addf %315, %318 : vector<17x64xf32>
    %cst_175 = arith.constant 5.000000e-01 : f32
    %320 = vector.broadcast %cst_175 : f32 to vector<17x64xf32>
    %321 = arith.mulf %320, %319 : vector<17x64xf32>
    %cst_176 = arith.constant 4.471500e-02 : f32
    %322 = vector.broadcast %cst_176 : f32 to vector<17x64xf32>
    %323 = arith.mulf %322, %319 : vector<17x64xf32>
    %324 = arith.mulf %323, %319 : vector<17x64xf32>
    %325 = arith.mulf %324, %319 : vector<17x64xf32>
    %326 = arith.addf %319, %325 : vector<17x64xf32>
    %cst_177 = arith.constant 0.797884583 : f32
    %327 = vector.broadcast %cst_177 : f32 to vector<17x64xf32>
    %328 = arith.mulf %327, %326 : vector<17x64xf32>
    %329 = math.tanh %328 : vector<17x64xf32>
    %cst_178 = arith.constant 1.000000e+00 : f32
    %330 = vector.broadcast %cst_178 : f32 to vector<17x64xf32>
    %331 = arith.addf %330, %329 : vector<17x64xf32>
    %332 = arith.mulf %321, %331 : vector<17x64xf32>
    %cst_179 = arith.constant dense<0.000000e+00> : vector<17x48xf32>
    %333 = tpu.matmul %332, %227, %cst_179 {dimension_numbers = #tpu.dot_dimension_numbers<[1], [0], [0], [1], [0, 0, 1, 1], [], []>} : vector<17x64xf32>, vector<64x48xf32>, vector<17x48xf32> -> vector<17x48xf32>
    %334 = arith.addf %314, %333 : vector<17x48xf32>
    %c1_180 = arith.constant 1 : index
    %c0_181 = arith.constant 0 : index
    %c0_182 = arith.constant 0 : index
    %335 = vector.load %arg15[%c1_180, %c0_181, %c0_182] : memref<2x1x48xf32, #tpu.memory_space<vmem>>, vector<1x1x48xf32>
    %336 = vector.shape_cast %335 : vector<1x1x48xf32> to vector<1x48xf32>
    %337 = vector.broadcast %336 : vector<1x48xf32> to vector<17x48xf32>
    %338 = arith.addf %334, %337 : vector<17x48xf32>
    %c0_183 = arith.constant 0 : index
    %c0_184 = arith.constant 0 : index
    %339 = vector.load %arg16[%c0_183, %c0_184] : memref<16x48xf32, #tpu.memory_space<vmem>>, vector<16x48xf32>
    %cst_185 = arith.constant dense<0.000000e+00> : vector<16x17xf32>
    %340 = tpu.matmul %339, %338, %cst_185 {dimension_numbers = #tpu.dot_dimension_numbers<[1], [1], [0], [0], [0, 0, 1, 0], [], []>} : vector<16x48xf32>, vector<17x48xf32>, vector<16x17xf32> -> vector<16x17xf32>
    %c0_186 = arith.constant 0 : index
    %c0_187 = arith.constant 0 : index
    %341 = vector.load %arg17[%c0_186, %c0_187] : memref<16x1xf32, #tpu.memory_space<vmem>>, vector<16x1xf32>
    %342 = vector.broadcast %341 : vector<16x1xf32> to vector<16x17xf32>
    %343 = arith.addf %340, %342 : vector<16x17xf32>
    %c0_188 = arith.constant 0 : index
    %c0_189 = arith.constant 0 : index
    %c0_190 = arith.constant 0 : index
    %344 = vector.load %arg18[%c0_188, %c0_189, %c0_190] : memref<1x16x17xf32, #tpu.memory_space<vmem>>, vector<1x16x17xf32>
    %345 = vector.shape_cast %344 : vector<1x16x17xf32> to vector<16x17xf32>
    %346 = vector.shape_cast %343 : vector<16x17xf32> to vector<1x16x17xf32>
    tpu.vector_store %arg18[%c0_188, %c0_189, %c0_190], %346 {strides = array<i32>} : memref<1x16x17xf32, #tpu.memory_space<vmem>>, vector<1x16x17xf32>,
    return
  }
  func.func @transform_0(%arg0: i32) -> (i32, i32, i32) {
    %c0_i32 = arith.constant 0 : i32
    %c0_i32_0 = arith.constant 0 : i32
    %c0_i32_1 = arith.constant 0 : i32
    return %arg0, %c0_i32, %c0_i32_0 : i32, i32, i32
  }
  func.func @transform_1(%arg0: i32) -> (i32, i32) {
    %c0_i32 = arith.constant 0 : i32
    %c0_i32_0 = arith.constant 0 : i32
    %c0_i32_1 = arith.constant 0 : i32
    return %c0_i32, %c0_i32_0 : i32, i32
  }
  func.func @transform_2(%arg0: i32) -> (i32, i32) {
    %c0_i32 = arith.constant 0 : i32
    %c0_i32_0 = arith.constant 0 : i32
    %c0_i32_1 = arith.constant 0 : i32
    return %c0_i32, %c0_i32_0 : i32, i32
  }
  func.func @transform_3(%arg0: i32) -> (i32, i32) {
    %c0_i32 = arith.constant 0 : i32
    %c0_i32_0 = arith.constant 0 : i32
    %c0_i32_1 = arith.constant 0 : i32
    return %c0_i32, %c0_i32_0 : i32, i32
  }
  func.func @transform_4(%arg0: i32) -> (i32, i32) {
    %c0_i32 = arith.constant 0 : i32
    %c0_i32_0 = arith.constant 0 : i32
    %c0_i32_1 = arith.constant 0 : i32
    return %c0_i32, %c0_i32_0 : i32, i32
  }
  func.func @transform_5(%arg0: i32) -> (i32, i32) {
    %c0_i32 = arith.constant 0 : i32
    %c0_i32_0 = arith.constant 0 : i32
    %c0_i32_1 = arith.constant 0 : i32
    return %c0_i32, %c0_i32_0 : i32, i32
  }
  func.func @transform_6(%arg0: i32) -> (i32, i32) {
    %c0_i32 = arith.constant 0 : i32
    %c0_i32_0 = arith.constant 0 : i32
    %c0_i32_1 = arith.constant 0 : i32
    return %c0_i32, %c0_i32_0 : i32, i32
  }
  func.func @transform_7(%arg0: i32) -> (i32, i32, i32) {
    %c0_i32 = arith.constant 0 : i32
    %c0_i32_0 = arith.constant 0 : i32
    %c0_i32_1 = arith.constant 0 : i32
    %c0_i32_2 = arith.constant 0 : i32
    return %c0_i32, %c0_i32_0, %c0_i32_1 : i32, i32, i32
  }
  func.func @transform_8(%arg0: i32) -> (i32, i32, i32) {
    %c0_i32 = arith.constant 0 : i32
    %c0_i32_0 = arith.constant 0 : i32
    %c0_i32_1 = arith.constant 0 : i32
    %c0_i32_2 = arith.constant 0 : i32
    return %c0_i32, %c0_i32_0, %c0_i32_1 : i32, i32, i32
  }
  func.func @transform_9(%arg0: i32) -> (i32, i32, i32) {
    %c0_i32 = arith.constant 0 : i32
    %c0_i32_0 = arith.constant 0 : i32
    %c0_i32_1 = arith.constant 0 : i32
    %c0_i32_2 = arith.constant 0 : i32
    return %c0_i32, %c0_i32_0, %c0_i32_1 : i32, i32, i32
  }
  func.func @transform_10(%arg0: i32) -> (i32, i32, i32) {
    %c0_i32 = arith.constant 0 : i32
    %c0_i32_0 = arith.constant 0 : i32
    %c0_i32_1 = arith.constant 0 : i32
    %c0_i32_2 = arith.constant 0 : i32
    return %c0_i32, %c0_i32_0, %c0_i32_1 : i32, i32, i32
  }
  func.func @transform_11(%arg0: i32) -> (i32, i32, i32) {
    %c0_i32 = arith.constant 0 : i32
    %c0_i32_0 = arith.constant 0 : i32
    %c0_i32_1 = arith.constant 0 : i32
    %c0_i32_2 = arith.constant 0 : i32
    return %c0_i32, %c0_i32_0, %c0_i32_1 : i32, i32, i32
  }
  func.func @transform_12(%arg0: i32) -> (i32, i32, i32) {
    %c0_i32 = arith.constant 0 : i32
    %c0_i32_0 = arith.constant 0 : i32
    %c0_i32_1 = arith.constant 0 : i32
    %c0_i32_2 = arith.constant 0 : i32
    return %c0_i32, %c0_i32_0, %c0_i32_1 : i32, i32, i32
  }
  func.func @transform_13(%arg0: i32) -> (i32, i32, i32) {
    %c0_i32 = arith.constant 0 : i32
    %c0_i32_0 = arith.constant 0 : i32
    %c0_i32_1 = arith.constant 0 : i32
    %c0_i32_2 = arith.constant 0 : i32
    return %c0_i32, %c0_i32_0, %c0_i32_1 : i32, i32, i32
  }
  func.func @transform_14(%arg0: i32) -> (i32, i32, i32) {
    %c0_i32 = arith.constant 0 : i32
    %c0_i32_0 = arith.constant 0 : i32
    %c0_i32_1 = arith.constant 0 : i32
    %c0_i32_2 = arith.constant 0 : i32
    return %c0_i32, %c0_i32_0, %c0_i32_1 : i32, i32, i32
  }
  func.func @transform_15(%arg0: i32) -> (i32, i32) {
    %c0_i32 = arith.constant 0 : i32
    %c0_i32_0 = arith.constant 0 : i32
    %c0_i32_1 = arith.constant 0 : i32
    return %c0_i32, %c0_i32_0 : i32, i32
  }
  func.func @transform_16(%arg0: i32) -> (i32, i32) {
    %c0_i32 = arith.constant 0 : i32
    %c0_i32_0 = arith.constant 0 : i32
    %c0_i32_1 = arith.constant 0 : i32
    return %c0_i32, %c0_i32_0 : i32, i32
  }
  func.func @transform_17(%arg0: i32) -> (i32, i32, i32) {
    %c0_i32 = arith.constant 0 : i32
    %c0_i32_0 = arith.constant 0 : i32
    %c0_i32_1 = arith.constant 0 : i32
    return %arg0, %c0_i32, %c0_i32_0 : i32, i32, i32
  }
}

</mosaic_0001>

<bundles_post_ra>
// kernel: tpu_custom_call.1
= control target key start
LH: loop header
LB: loop body
LE: loop exit
PB: predicated region body
PF: predicated region fallthrough
CT: control target
= control target key end

     0   :  { %s7018_s0 = inlined_call_operand.vmem [shape: f32[2,16,16], index: 0, kind: input, shape index: {}]   ;;  %s7019_s1 = inlined_call_operand.vmem [shape: f32[16,9], index: 1, kind: input, shape index: {}]   ;;  %s7020_s2 = inlined_call_operand.vmem [shape: f32[16,1], index: 2, kind: input, shape index: {}]   ;;  %s7021_s3 = inlined_call_operand.vmem [shape: f32[16,1], index: 3, kind: input, shape index: {}]   ;;  %s7022_s4 = inlined_call_operand.vmem [shape: f32[16,1], index: 4, kind: input, shape index: {}]   ;;  %s7023_s5 = inlined_call_operand.hbm [shape: f32[16,48], index: 5, kind: input, shape index: {}]   ;;  %s7024_s6 = inlined_call_operand.vmem [shape: f32[1,48], index: 6, kind: input, shape index: {}]   ;;  %s7025_s7 = inlined_call_operand.vmem [shape: f32[2,48,144], index: 7, kind: input, shape index: {}]   ;;  %s7026_s8 = inlined_call_operand.vmem [shape: f32[2,1,144], index: 8, kind: input, shape index: {}]   ;;  %s7027_s9 = inlined_call_operand.hbm [shape: f32[2,48,48], index: 9, kind: input, shape index: {}]   ;;  %s7028_s10 = inlined_call_operand.hbm [shape: f32[2,1,48], index: 10, kind: input, shape index: {}]   ;;  %s7029_s11 = inlined_call_operand.hbm [shape: f32[2,48,64], index: 11, kind: input, shape index: {}]   ;;  %s7030_s12 = inlined_call_operand.hbm [shape: f32[2,1,64], index: 12, kind: input, shape index: {}]   ;;  %s7031_s13 = inlined_call_operand.vmem [shape: f32[2,64,48], index: 13, kind: input, shape index: {}]   ;;  %s7032_s14 = inlined_call_operand.vmem [shape: f32[2,1,48], index: 14, kind: input, shape index: {}]   ;;  %s7033_s15 = inlined_call_operand.hbm [shape: f32[16,48], index: 15, kind: input, shape index: {}]   ;;  %s7034_s16 = inlined_call_operand.vmem [shape: f32[16,1], index: 16, kind: input, shape index: {}]   ;;  %s7035_s17 = inlined_call_operand.hbm [shape: f32[2,16,17], index: 17, kind: output, shape index: {}]  }
   0x1   :  { %7072 = sst [smem:[#allocation30_spill]] %s7018_s0 }
   0x2   :  { %7073 = sst [smem:[#allocation31_spill]] %s7019_s1 }
   0x3   :  { %7074 = sst [smem:[#allocation32_spill]] %s7032_s14 }
   0x4   :  { %7075 = sst [smem:[#allocation33_spill]] %s7034_s16 }
   0x5   :  { %7076 = sst [smem:[#allocation34_spill]] %s7035_s17 }
   0x6   :  { %22 = vsyncpa [#allocation6], 0 }
   0x7   :  { %23 = vsyncpa [#allocation9], 0 }
   0x8   :  { %24 = vsyncpa [#allocation12], 0 }
   0x9   :  { %25 = vsyncpa [#allocation15], 0 }
   0xa   :  { %26 = vsyncpa [#allocation7], 0 }
   0xb   :  { %28 = vsyncpa [#allocation7 + $0x1], 0  ;;  %s5869_s24 = smov 0   ;;  %s5871_s25 = smov 0  }
   0xc   :  { %s5873_s26 = smov 0   ;;  %s5875_s27 = smov 0  }
   0xd LB: > { %7077 = sst [smem:[#allocation22_spill]] %s5718_s24  ;;  %s5890_s28 = sadd.s32 4294967295, %s5730_s27   ;;  %s5730_s27 = sphi %s5875_s27, %s7124_s27   ;;  %s5726_s26 = sphi %s5873_s26, %s7127_s26   ;;  %s5722_s25 = sphi %s5871_s25, %s7126_s25   ;;  %s5718_s24 = sphi %s5869_s24, %s7125_s24  }
   0xe   : > { %7078 = sst [smem:[#allocation23_spill]] %s5722_s25  ;;  %s4254_s29 = sadd.s32 4294967294, %s5730_s27  }
   0xf   : > { %7079 = sst [smem:[#allocation24_spill]] %s5726_s26  ;;  %s5894_s0 = sadd.s32 1, %s5730_s27  }
  0x10   : > { %7080 = sst [smem:[#allocation25_spill]] %s5730_s27  ;;  %s403_s30 = sadd.s32 1, %s5726_s26 }
  0x11   : > { %7081 = sst [smem:[#allocation26_spill]] %s5894_s0  ;;  %s400_s18 = ssub.s32 %s5730_s27, %s5894_s0 }
  0x12   : > { %p413_p0 = scmp.ne.s32.totalorder %s5726_s26, %s5722_s25  ;;  %p401_p1 = scmp.eq.s32.totalorder %s400_s18, 0 }
  0x13   : > { %p414_p2 = scmp.eq.s32.totalorder %s5890_s28, 1  ;;  %p419_p3 = scmp.ne.s32.totalorder %s5722_s25, %s5718_s24 }
  0x14   : > { %p420_p4 = scmp.eq.s32.totalorder %s4254_s29, 1  ;;  %p4255_p7 = scmp.ge.s32.totalorder %s5730_s27, 1 }
  0x15   : > { %s5905_s19 = scalar_select %p401_p1, %s5726_s26, %s403_s30  }
  0x16   : > { %p5907_p5 = por %p414_p2, %p413_p0  ;;  %p5911_p6 = por %p420_p4, %p419_p3 }
  0x17   : > { %7082 = sst [smem:[#allocation27_spill]] %s5905_s19  ;;  %p427_p8 = scmp.lt.s32.totalorder %s5730_s27, 3 }
  0x18   : > { %s7083_s1 = scalar_select %p5907_p5, 1, 0 }
  0x19   : > { %s7085_s20 = scalar_select %p5911_p6, 1, 0 }
  0x1a   : > { %7084 = sst [smem:[#allocation28_spill]] %s7083_s1  ;;  %p7044_p9 = scmp.eq.s32.totalorder %s5890_s28, 0 }
  0x1b   : > { %7086 = sst [smem:[#allocation29_spill]] %s7085_s20  ;;  %p5918_p10 = pnand %p4255_p7, %p427_p8 }
  0x1c   : > { %s5732_s22 = smov [#allocation8]   ;;  %s5733_s30 = smov [#allocation11]  }
  0x1d   : > { %s7087_s21 = scalar_select %p5918_p10, 1, 0 }
  0x1e   : > { %p5149_p11 = pneg %p5918_p10  ;;  %s473_s23 = sshll.u32 %s5732_s22, 4  ;;  %s5924_s23 = int_to_ptr.vmem [resolvable:$true] %s473_s23 }
  0x1f   : > { %s499_s18 = sshll.u32 %s5733_s30, 4  ;;  %s5734_s19 = smov [#allocation5]   ;;  %s5932_s18 = int_to_ptr.vmem [resolvable:$true] %s499_s18 }
  0x20   : > { %p5928_p12 = pnand %p7044_p9, %p5149_p11  ;;  %s5934_s26 = sshll.u32 %s5734_s19, 4  ;;  %s452_s26 = int_to_ptr.vmem [resolvable:$true] %s5934_s26 }
  0x21   : > { %s5484_s24 = scalar_lea.hbm %s7027_s9, 1536 }
  0x22   : > { %p5485_p13 = scmp.ne.s32.totalorder %s7027_s9, %s5484_s24  ;;  %p5944_p0 = pneg %p5928_p12 }
  0x23   : > { %p5491_p3 = scmp.lt.u32.totalorder %s5484_s24, %s7027_s9 }
  0x24   : > { %p5487_p1 = pnand %p5944_p0, %p5485_p13 }
  0x26   : > { %p5488_p2 = pneg %p5487_p1 }
  0x28   : > { %p5493_p4 = pnand %p5491_p3, %p5488_p2 }
  0x2a   : > { %5496 = shalt.err (!%p5493_p4)
}
  0x2b   : > { %s5497_s27 = scalar_lea.vmem %s5924_s23, 1536  ;;  %p5505_p9 = scmp.lt.s32.totalorder %s5924_s23, %s5924_s23 }
  0x2c   : > { %p5498_p7 = scmp.ne.s32.totalorder %s5924_s23, %s5497_s27  ;;  %p5506_p6 = scmp.lt.s32.totalorder %s5497_s27, %s5497_s27 }
  0x2e   : > { %p5500_p8 = pnand %p5498_p7, %p5944_p0  ;;  %p5507_p13 = por %p5506_p6, %p5505_p9 }
  0x30   : > { %p5501_p11 = pneg %p5500_p8 }
  0x32   : > { %p5508_p1 = pnand %p5507_p13, %p5501_p11 }
  0x34   : > { %5511 = shalt.err (!%p5508_p1)
}
  0x35   : > { %s7052_s0 = smov 128   ;;  %s7053_s24 = smov 8  }
  0x36   : > { %5155 = dma.hbm_to_vmem [thread:$0]  (!%p5928_p12), %s7027_s9, 1536, %s5924_s23, [#allocation9], %s7052_s0, %s7052_s0, %s7053_s24  }
  0x37   : > { %s5512_s27 = scalar_lea.hbm %s7029_s11, 1536 }
  0x38   : > { %p5513_p6 = scmp.ne.s32.totalorder %s7029_s11, %s5512_s27  ;;  %p5519_p3 = scmp.lt.u32.totalorder %s5512_s27, %s7029_s11 }
  0x3a   : > { %p5515_p9 = pnand %p5513_p6, %p5944_p0 }
  0x3c   : > { %p5516_p2 = pneg %p5515_p9 }
  0x3e   : > { %p5521_p4 = pnand %p5519_p3, %p5516_p2 }
  0x40   : > { %5524 = shalt.err (!%p5521_p4)
}
  0x41   : > { %s5525_s23 = scalar_lea.vmem %s5932_s18, 1536  ;;  %p5533_p13 = scmp.lt.s32.totalorder %s5932_s18, %s5932_s18 }
  0x42   : > { %p5526_p7 = scmp.ne.s32.totalorder %s5932_s18, %s5525_s23  ;;  %p5534_p1 = scmp.lt.s32.totalorder %s5525_s23, %s5525_s23 }
  0x44   : > { %p5528_p8 = pnand %p5526_p7, %p5944_p0  ;;  %p5535_p6 = por %p5534_p1, %p5533_p13 }
  0x46   : > { %p5529_p11 = pneg %p5528_p8 }
  0x48   : > { %p5536_p9 = pnand %p5535_p6, %p5529_p11 }
  0x4a   : > { %5539 = shalt.err (!%p5536_p9)
}
  0x4b   : > { %5161 = dma.hbm_to_vmem [thread:$0]  (!%p5928_p12), %s7029_s11, 1536, %s5932_s18, [#allocation12], %s7052_s0, %s7052_s0, %s7053_s24  }
  0x4c   : > { %s5540_s20 = scalar_lea.hbm %s7023_s5, 256 }
  0x4d   : > { %p5541_p2 = scmp.ne.s32.totalorder %s7023_s5, %s5540_s20  ;;  %p5547_p7 = scmp.lt.u32.totalorder %s5540_s20, %s7023_s5 }
  0x4f   : > { %p5543_p3 = pnand %p5541_p2, %p5944_p0 }
  0x51   : > { %p5544_p4 = pneg %p5543_p3 }
  0x53   : > { %p5549_p8 = pnand %p5547_p7, %p5544_p4 }
  0x55   : > { %5552 = shalt.err (!%p5549_p8)
}
  0x56   : > { %s5553_s23 = scalar_lea.vmem %s452_s26, 256  ;;  %p5561_p6 = scmp.lt.s32.totalorder %s452_s26, %s452_s26 }
  0x57   : > { %p5554_p11 = scmp.ne.s32.totalorder %s452_s26, %s5553_s23  ;;  %p5562_p9 = scmp.lt.s32.totalorder %s5553_s23, %s5553_s23 }
  0x59   : > { %p5556_p13 = pnand %p5554_p11, %p5944_p0  ;;  %p5563_p5 = por %p5562_p9, %p5561_p6 }
  0x5b   : > { %p5557_p1 = pneg %p5556_p13 }
  0x5d   : > { %p5564_p10 = pnand %p5563_p5, %p5557_p1 }
  0x5f   : > { %5567 = shalt.err (!%p5564_p10)
}
  0x60   : > { %5152 = dma.hbm_to_vmem [thread:$0]  (!%p5928_p12), %s7023_s5, 256, %s452_s26, [#allocation6], %s7052_s0, %s7052_s0, %s7053_s24  }
  0x61   : > { %s5737_s16 = smov [#allocation10]   ;;  %s5568_s22 = scalar_lea.hbm %s7028_s10, 32 }
  0x62   : > { %s486_s25 = sshll.u32 %s5737_s16, 4  ;;  %p5569_p5 = scmp.ne.s32.totalorder %s7028_s10, %s5568_s22  ;;  %s487_s25 = int_to_ptr.vmem [resolvable:$true] %s486_s25 }
  0x63   : > { %p5575_p3 = scmp.lt.u32.totalorder %s5568_s22, %s7028_s10 }
  0x64   : > { %p5571_p10 = pnand %p5569_p5, %p5944_p0 }
  0x66   : > { %p5572_p2 = pneg %p5571_p10 }
  0x68   : > { %p5577_p4 = pnand %p5575_p3, %p5572_p2 }
  0x6a   : > { %5580 = shalt.err (!%p5577_p4)
}
  0x6b   : > { %s5581_s26 = scalar_lea.vmem %s487_s25, 32  ;;  %p5589_p13 = scmp.lt.s32.totalorder %s487_s25, %s487_s25 }
  0x6c   : > { %p5582_p7 = scmp.ne.s32.totalorder %s487_s25, %s5581_s26  ;;  %p5590_p1 = scmp.lt.s32.totalorder %s5581_s26, %s5581_s26 }
  0x6e   : > { %p5584_p8 = pnand %p5582_p7, %p5944_p0  ;;  %p5591_p6 = por %p5590_p1, %p5589_p13 }
  0x70   : > { %p5585_p11 = pneg %p5584_p8 }
  0x72   : > { %p5592_p9 = pnand %p5591_p6, %p5585_p11 }
  0x74   : > { %5595 = shalt.err (!%p5592_p9)
}
  0x75   : > { %s5738_s18 = smov 16   ;;  %s5739_s14 = smov 1  }
  0x76   : > { %5158 = dma.hbm_to_vmem [thread:$0]  (!%p5928_p12), %s7028_s10, 32, %s487_s25, [#allocation9], %s5738_s18, %s5738_s18, %s5739_s14  }
  0x77   : > { %s5740_s20 = smov [#allocation13]   ;;  %s5741_s30 = smov [#allocation14]  }
  0x78   : > { %s512_s22 = sshll.u32 %s5740_s20, 4  ;;  %s531_s19 = sshll.u32 %s5741_s30, 4  ;;  %s513_s22 = int_to_ptr.vmem [resolvable:$true] %s512_s22  ;;  %s6034_s19 = int_to_ptr.vmem [resolvable:$true] %s531_s19 }
  0x79   : > { %s5596_s26 = scalar_lea.hbm %s7030_s12, 32 }
  0x7a   : > { %p5597_p5 = scmp.ne.s32.totalorder %s7030_s12, %s5596_s26  ;;  %p5603_p3 = scmp.lt.u32.totalorder %s5596_s26, %s7030_s12 }
  0x7c   : > { %p5599_p10 = pnand %p5597_p5, %p5944_p0 }
  0x7e   : > { %p5600_p2 = pneg %p5599_p10 }
  0x80   : > { %p5605_p4 = pnand %p5603_p3, %p5600_p2 }
  0x82   : > { %5608 = shalt.err (!%p5605_p4)
}
  0x83   : > { %s5609_s1 = scalar_lea.vmem %s513_s22, 32  ;;  %p5617_p13 = scmp.lt.s32.totalorder %s513_s22, %s513_s22 }
  0x84   : > { %p5610_p7 = scmp.ne.s32.totalorder %s513_s22, %s5609_s1  ;;  %p5618_p1 = scmp.lt.s32.totalorder %s5609_s1, %s5609_s1 }
  0x86   : > { %p5612_p8 = pnand %p5610_p7, %p5944_p0  ;;  %p5619_p6 = por %p5618_p1, %p5617_p13 }
  0x88   : > { %p5613_p11 = pneg %p5612_p8 }
  0x8a   : > { %p5620_p9 = pnand %p5619_p6, %p5613_p11 }
  0x8c   : > { %5623 = shalt.err (!%p5620_p9)
}
  0x8d   : > { %5164 = dma.hbm_to_vmem [thread:$0]  (!%p5928_p12), %s7030_s12, 32, %s513_s22, [#allocation12], %s5738_s18, %s5738_s18, %s5739_s14  }
  0x8e   : > { %s5624_s27 = scalar_lea.hbm %s7033_s15, 256 }
  0x8f   : > { %p5625_p5 = scmp.ne.s32.totalorder %s7033_s15, %s5624_s27  ;;  %p5631_p3 = scmp.lt.u32.totalorder %s5624_s27, %s7033_s15 }
  0x91   : > { %p5627_p10 = pnand %p5625_p5, %p5944_p0 }
  0x93   : > { %p5628_p2 = pneg %p5627_p10 }
  0x95   : > { %p5633_p4 = pnand %p5631_p3, %p5628_p2 }
  0x97   : > { %5636 = shalt.err (!%p5633_p4)
}
  0x98   : > { %s5637_s18 = scalar_lea.vmem %s6034_s19, 256  ;;  %p5645_p13 = scmp.lt.s32.totalorder %s6034_s19, %s6034_s19 }
  0x99   : > { %p5638_p7 = scmp.ne.s32.totalorder %s6034_s19, %s5637_s18  ;;  %p5646_p1 = scmp.lt.s32.totalorder %s5637_s18, %s5637_s18 }
  0x9b   : > { %p5640_p8 = pnand %p5638_p7, %p5944_p0  ;;  %p5647_p6 = por %p5646_p1, %p5645_p13 }
  0x9d   : > { %p5641_p11 = pneg %p5640_p8 }
  0x9f   : > { %p5648_p9 = pnand %p5647_p6, %p5641_p11 }
  0xa1   : > { %5651 = shalt.err (!%p5648_p9)
}
  0xa2   : > { %s7090_s14 = smov 8   ;;  %s7091_s22 = smov 128  }
  0xa3   : > { %5167 = dma.hbm_to_vmem [thread:$0]  (!%p5928_p12), %s7033_s15, 256, %s6034_s19, [#allocation15], %s7091_s22, %s7091_s22, %s7090_s14  }
  0xa4   : > { %p7092_p5 = scmp.ne.s32.totalorder %s7087_s21, 0 }
  0xa5   : > { %p7093_p0 = scmp.eq.s32.totalorder (!%p7092_p5), %s5890_s28, 0 }
  0xa6   : > { %558 = sbr.rel (%p7092_p5) target bundleno = 4787 (0x12b3), region = 88 }
  0xad   : > { %5697 = dma.done.wait (%p7093_p0), [#allocation6], 256   ;;  %p7094_p10 = pmov %p7093_p0 }
  0xae   : > { %p7095_p2 = pmov %p7093_p0 }
  0xaf   : > { %5699 = vsyncadd (%p7094_p10), [#allocation6], 4294967040 }
  0xb0   : > { %5701 = dma.done.wait (%p7095_p2), [#allocation9], 1568   ;;  %p7096_p3 = pmov %p7093_p0 }
  0xb1   : > { %p7097_p4 = pmov %p7093_p0 }
  0xb2   : > { %5703 = vsyncadd (%p7096_p3), [#allocation9], 4294965728 }
  0xb3   : > { %5705 = dma.done.wait (%p7097_p4), [#allocation12], 1568   ;;  %p7098_p12 = pmov %p7093_p0 }
  0xb4   : > { %p7099_p7 = pmov %p7093_p0 }
  0xb5   : > { %5707 = vsyncadd (%p7098_p12), [#allocation12], 4294965728 }
  0xb6   : > { %5709 = dma.done.wait (%p7099_p7), [#allocation15], 256   ;;  %p7100_p8 = pmov %p7093_p0 }
  0xb7   : > { %p630_p11 = scmp.lt.s32.totalorder %s5890_s28, 1  ;;  %v5742_v0 = vmov 1   ;;  %v5743_v1 = vmov 2   ;;  %vm637_vm0 = vcmask 195584   ;;  %v5744_v2 = vmov 0.0   ;;  %s7101_s24 = sld [smem:[#allocation30_spill]] }
  0xb8   : > { %5711 = vsyncadd (%p7100_p8), [#allocation15], 4294967040  ;;  %5263 = vset.pattern.permute.xlu1 %v5742_v0  ;;  %5264 = vset.pattern.permute.xlu0 %v5743_v1  ;;  %638 = vst.msk [vmem:[#allocation2] sm:$0xff] %vm637_vm0, %v5744_v2  ;;  %s7102_s23 = sld [smem:[#allocation31_spill]]  ;;  %s5745_s26 = smov 4   ;;  %v5746_v7 = vmov 3  }
  0xb9   : > { %s631_s17 = scalar_select %p630_p11, %s5890_s28, 1  ;;  %639 = vst.msk [vmem:[#allocation2 + $0x8] sm:$0xff] %vm637_vm0, %v5744_v2  ;;  %v5747_v8 = vmov 5   ;;  %v5748_v9 = vmov 4   ;;  %v5749_v10 = vmov 6   ;;  %v5750_v11 = vmov 8  }
  0xba   : > { %v5751_v12 = vmov 0   ;;  %v829_v13 = vld [vmem:[%s7020_s2] sm:$0xff]  ;;  %v5752_v14 = vmov 7   ;;  %v830_v15 = vld [vmem:[%s7020_s2 + $0x8] sm:$0xff]  ;;  %vm648_vm1 = vcmask 162848   ;;  %s5753_s0 = smov 127  }
  0xbb   : > { %s4418_s21 = sshll.u32 %s631_s17, 4  ;;  %s5754_s17 = smov 126   ;;  %v893_v50 = vld [vmem:[%s7021_s3] sm:$0xff]  ;;  %v894_v54 = vld [vmem:[%s7021_s3 + $0x8] sm:$0xff]  ;;  %vm863_vm2 = vcmask 130048   ;;  %vm1043_vm3 = vcmask 385024  }
  0xbc   : > { %s7060_s29 = smov 124   ;;  %s5757_s19 = smov 123   ;;  %v907_v53 = vld [vmem:[%s7022_s4] sm:$0xff]  ;;  %v908_v55 = vld [vmem:[%s7022_s4 + $0x8] sm:$0xff]  ;;  %vm1045_vm4 = vcmask 392192   ;;  %vm5765_vm5 = vmmov 0  }
  0xbd   : > { %s634_s20 = scalar_lea.vmem %s7101_s24, %s4418_s21  ;;  %s5755_s21 = smov 125   ;;  %4596 = vmatprep.mubr.msk.f32.mxu0 %vm5765_vm5, %v5744_v2  ;;  %vm1199_vm6 = vcmask 97280   ;;  %vm1341_vm8 = vcmask 1040384   ;;  %vm1295_vm9 = vcmask 138240   ;;  %vm1302_vm10 = vcmask 131072  }
  0xbe   : > { %v651_v3 = vld [vmem:[%s7102_s23] sm:$0xff]  ;;  %v652_v5 = vld [vmem:[%s7102_s23 + $0x8] sm:$0xff]  ;;  %s5758_s24 = smov 122   ;;  %s5760_s30 = smov 120   ;;  %vm6278_vm7 = vmpackc.low %vm1199_vm6, %vm1199_vm6  ;;  %vm1833_vm11 = vcmask 64512   ;;  %vm1432_vm12 = vcmask 90112  }
  0xbf   : > { %v6108_v4 = vld [vmem:[%s634_s20] sm:$0xff]  ;;  %670 = vperm.xlu1 %5263, %v651_v3   ;;  %v6114_v6 = vld [vmem:[%s634_s20 + $0x8] sm:$0xff]  ;;  %s5759_s20 = smov 121   ;;  %s7070_s22 = smov 44   ;;  %vm1682_vm13 = vcmask 195680   ;;  %vm1948_vm14 = vcmask 294080  }
  0xc0   : > { %642 = vrot.lane.b32.xlu0 %v6108_v4, %s5745_s26  ;;  %s5764_s1 = smov 80   ;;  %s7062_s27 = smov 8   ;;  %vm2201_vm15 = vcmask 392480   ;;  %vm1685_vm0 = vcmask 188512  }
  0xc1   : > { %s7056_s16 = smov 24   ;;  %s7054_s25 = smov 36  }
  0xc2   : > { %s7117_s18 = sld [smem:[#allocation28_spill]] }
  0xc3   : > { %674 = vperm.xlu1 %5263, %v652_v5  }
  0xc4   : > { %644 = vrot.lane.b32.xlu0 %v6114_v6, %s5745_s26  ;;  %s7058_s26 = smov 12  }
  0xc7   : > { %5265 = vset.pattern.permute.xlu1 %v5743_v1 }
  0xc8   : > { %690 = vperm.xlu0 %5264, %v651_v3   ;;  %694 = vperm.xlu1 %5265, %v652_v5   ;;  %p7119_p1 = scmp.ne.s32.totalorder %s7117_s18, 0 }
  0xcc   : > { %5267 = vset.pattern.permute.xlu0 %v5746_v7  ;;  %5266 = vset.pattern.permute.xlu1 %v5746_v7 }
  0xcd   : > { %714 = vperm.xlu0 %5267, %v652_v5   ;;  %710 = vperm.xlu1 %5266, %v651_v3  }
  0xd1   : > { %5269 = vset.pattern.permute.xlu0 %v5747_v8  ;;  %5268 = vset.pattern.permute.xlu1 %v5748_v9 }
  0xd2   : > { %750 = vperm.xlu0 %5269, %v651_v3   ;;  %730 = vperm.xlu1 %5268, %v651_v3  }
  0xd6   : > { %5272 = vset.pattern.permute.xlu0 %v5749_v10  ;;  %734 = vperm.xlu1 %5268, %v652_v5  }
  0xd7   : > { %774 = vperm.xlu0 %5272, %v652_v5  }
  0xda   : > { %5270 = vset.pattern.permute.xlu1 %v5747_v8 }
  0xdb   : > { %5274 = vset.pattern.permute.xlu0 %v5750_v11  ;;  %754 = vperm.xlu1 %5270, %v652_v5  }
  0xdc   : > { %810 = vperm.xlu0 %5274, %v651_v3  }
  0xdf   : > { %5271 = vset.pattern.permute.xlu1 %v5749_v10 }
  0xe0   : > { %5277 = vset.pattern.permute.xlu0 %v5751_v12  ;;  %770 = vperm.xlu1 %5271, %v651_v3  }
  0xe1   : > { %662 = vperm.xlu0 %5277, %v652_v5  }
  0xe4   : > { %5273 = vset.pattern.permute.xlu1 %v5752_v14 }
  0xe5   : > { %833 = vperm.xlu0 %5277, %v829_v13   ;;  %790 = vperm.xlu1 %5273, %v651_v3  }
  0xe9   : > { %794 = vperm.xlu1 %5273, %v652_v5  }
  0xed   : > { %5275 = vset.pattern.permute.xlu1 %v5750_v11 }
  0xee   : > { %814 = vperm.xlu1 %5275, %v652_v5  }
  0xf2   : > { %5276 = vset.pattern.permute.xlu1 %v5751_v12 }
  0xf3   : > { %657 = vperm.xlu1 %5276, %v651_v3  }
  0xf7   : > { %838 = vperm.xlu1 %5276, %v830_v15  }
 0x132   : > { %v643_v16 = vpop.permute.xlu0 %642 }
 0x133   : > { %649 = vst.msk [vmem:[#allocation2] sm:$0xff] %vm648_vm1, %v643_v16 }
 0x136   : > { %v645_v17 = vpop.permute.xlu0 %644 }
 0x137   : > { %650 = vst.msk [vmem:[#allocation2 + $0x8] sm:$0xff] %vm648_vm1, %v645_v17  ;;  %vm1951_vm1 = vcmask 286912  }
 0x13a   : > { %v6123_v18 = vld [vmem:[#allocation2] sm:$0xff] }
 0x13e   : > { %v671_v19 = vpop.permute.xlu1 %670  ;;  %v6126_v21 = vld [vmem:[#allocation2 + $0x8] sm:$0xff] }
 0x13f   : > { %v677_v20 = vmul.f32 %v671_v19, %v6123_v18 }
 0x141   : > { %681 = vrot.lane.b32.xlu1 %v677_v20, %s5753_s0 }
 0x142   : > { %v675_v22 = vpop.permute.xlu1 %674 }
 0x143   : > { %v678_v23 = vmul.f32 %v675_v22, %v6126_v21 }
 0x145   : > { %683 = vrot.lane.b32.xlu1 %v678_v23, %s5753_s0  ;;  %s7066_s0 = smov 32  }
 0x147   : > { %v691_v24 = vpop.permute.xlu0 %690  ;;  %v695_v26 = vpop.permute.xlu1 %694 }
 0x148   : > { %v697_v25 = vmul.f32 %v691_v24, %v6123_v18  ;;  %v698_v27 = vmul.f32 %v695_v26, %v6126_v21 }
 0x14a   : > { %701 = vrot.lane.b32.xlu0 %v697_v25, %s5754_s17  ;;  %703 = vrot.lane.b32.xlu1 %v698_v27, %s5754_s17  ;;  %s5767_s17 = smov 68  }
 0x14c   : > { %v715_v28 = vpop.permute.xlu0 %714  ;;  %v711_v30 = vpop.permute.xlu1 %710 }
 0x14d   : > { %v718_v29 = vmul.f32 %v715_v28, %v6126_v21  ;;  %v717_v31 = vmul.f32 %v711_v30, %v6123_v18 }
 0x14f   : > { %723 = vrot.lane.b32.xlu1 %v718_v29, %s5755_s21  ;;  %721 = vrot.lane.b32.xlu0 %v717_v31, %s5755_s21  ;;  %s7064_s21 = smov 20  }
 0x151   : > { %v731_v32 = vpop.permute.xlu1 %730  ;;  %v751_v34 = vpop.permute.xlu0 %750 }
 0x152   : > { %v737_v33 = vmul.f32 %v731_v32, %v6123_v18  ;;  %v757_v36 = vmul.f32 %v751_v34, %v6123_v18 }
 0x154   : > { %741 = vrot.lane.b32.xlu0 %v737_v33, %s7060_s29 }
 0x155   : > { %v735_v35 = vpop.permute.xlu1 %734 }
 0x156   : > { %v738_v37 = vmul.f32 %v735_v35, %v6126_v21  ;;  %v775_v40 = vpop.permute.xlu0 %774 }
 0x157   : > { %v778_v41 = vmul.f32 %v775_v40, %v6126_v21 }
 0x158   : > { %743 = vrot.lane.b32.xlu1 %v738_v37, %s7060_s29  ;;  %761 = vrot.lane.b32.xlu0 %v757_v36, %s5757_s19 }
 0x15a   : > { %v755_v38 = vpop.permute.xlu1 %754 }
 0x15b   : > { %v758_v39 = vmul.f32 %v755_v38, %v6126_v21  ;;  %v811_v46 = vpop.permute.xlu0 %810 }
 0x15c   : > { %v817_v48 = vmul.f32 %v811_v46, %v6123_v18 }
 0x15d   : > { %763 = vrot.lane.b32.xlu1 %v758_v39, %s5757_s19  ;;  %s5769_s19 = smov 56  }
 0x15f   : > { %v771_v42 = vpop.permute.xlu1 %770 }
 0x160   : > { %v777_v43 = vmul.f32 %v771_v42, %v6123_v18  ;;  %v663_v58 = vpop.permute.xlu0 %662 }
 0x161   : > { %783 = vrot.lane.b32.xlu1 %v778_v41, %s5758_s24  ;;  %v666_v11 = vmul.f32 %v663_v58, %v6126_v21 }
 0x162   : > { %781 = vrot.lane.b32.xlu0 %v777_v43, %s5758_s24  ;;  %s5770_s24 = smov 116  }
 0x164   : > { %v791_v44 = vpop.permute.xlu1 %790  ;;  %v834_v60 = vpop.permute.xlu0 %833 }
 0x165   : > { %v797_v45 = vmul.f32 %v791_v44, %v6123_v18 }
 0x167   : > { %801 = vrot.lane.b32.xlu0 %v797_v45, %s5759_s20 }
 0x168   : > { %v795_v47 = vpop.permute.xlu1 %794 }
 0x169   : > { %v798_v49 = vmul.f32 %v795_v47, %v6126_v21 }
 0x16b   : > { %803 = vrot.lane.b32.xlu1 %v798_v49, %s5759_s20  ;;  %821 = vrot.lane.b32.xlu0 %v817_v48, %s5760_s30  ;;  %s5771_s20 = smov 104  }
 0x16d   : > { %v815_v51 = vpop.permute.xlu1 %814 }
 0x16e   : > { %v818_v52 = vmul.f32 %v815_v51, %v6126_v21 }
 0x16f   : > { %897 = vperm.xlu0 %5277, %v893_v50  }
 0x170   : > { %823 = vrot.lane.b32.xlu1 %v818_v52, %s5760_s30  ;;  %s7068_s30 = smov 92  }
 0x172   : > { %v658_v56 = vpop.permute.xlu1 %657 }
 0x173   : > { %911 = vperm.xlu0 %5277, %v907_v53   ;;  %v665_v7 = vmul.f32 %v658_v56, %v6123_v18 }
 0x174   : > { %902 = vperm.xlu1 %5276, %v894_v54  }
 0x176   : > { %v839_v57 = vpop.permute.xlu1 %838 }
 0x178   : > { %916 = vperm.xlu1 %5276, %v908_v55  }
 0x1b3   : > { %v682_v59 = vpop.permute.xlu1 %681 }
 0x1b4   : > { %v687_v8 = vadd.f32 %v682_v59, %v665_v7 }
 0x1b7   : > { %v684_v61 = vpop.permute.xlu1 %683 }
 0x1b8   : > { %v688_v15 = vadd.f32 %v684_v61, %v666_v11 }
 0x1bc   : > { %v702_v62 = vpop.permute.xlu0 %701  ;;  %v704_v63 = vpop.permute.xlu1 %703 }
 0x1bd   : > { %v707_v10 = vadd.f32 %v702_v62, %v687_v8  ;;  %v708_v17 = vadd.f32 %v704_v63, %v688_v15 }
 0x1c1   : > { %v722_v0 = vpop.permute.xlu0 %721  ;;  %v724_v1 = vpop.permute.xlu1 %723 }
 0x1c2   : > { %v727_v13 = vadd.f32 %v722_v0, %v707_v10  ;;  %v728_v20 = vadd.f32 %v724_v1, %v708_v17 }
 0x1c6   : > { %v742_v3 = vpop.permute.xlu0 %741 }
 0x1c7   : > { %v747_v16 = vadd.f32 %v742_v3, %v727_v13 }
 0x1ca   : > { %v744_v5 = vpop.permute.xlu1 %743  ;;  %v762_v9 = vpop.permute.xlu0 %761 }
 0x1cb   : > { %v767_v19 = vadd.f32 %v762_v9, %v747_v16  ;;  %v748_v25 = vadd.f32 %v744_v5, %v728_v20 }
 0x1cf   : > { %v764_v12 = vpop.permute.xlu1 %763 }
 0x1d0   : > { %v768_v27 = vadd.f32 %v764_v12, %v748_v25 }
 0x1d3   : > { %v784_v22 = vpop.permute.xlu1 %783 }
 0x1d4   : > { %v782_v14 = vpop.permute.xlu0 %781  ;;  %v788_v30 = vadd.f32 %v784_v22, %v768_v27 }
 0x1d5   : > { %v787_v24 = vadd.f32 %v782_v14, %v767_v19 }
 0x1d9   : > { %v802_v23 = vpop.permute.xlu0 %801 }
 0x1da   : > { %v807_v26 = vadd.f32 %v802_v23, %v787_v24 }
 0x1dd   : > { %v804_v18 = vpop.permute.xlu1 %803  ;;  %v822_v28 = vpop.permute.xlu0 %821 }
 0x1de   : > { %v827_v29 = vadd.f32 %v822_v28, %v807_v26  ;;  %v808_v21 = vadd.f32 %v804_v18, %v788_v30  ;;  %v921_v18 = vld [vmem:[#allocation5] sm:$0xff]  ;;  %v922_v28 = vld [vmem:[#allocation5 + $0x8] sm:$0xff] }
 0x1e0   : > { %v841_v31 = vadd.f32 %v834_v60, %v827_v29  ;;  %v4973_v29 = vpack.c.bf16 %v922_v28, %v921_v18 }
 0x1e2   : > { %v845_v32 = vmul.f32 0.044715, %v841_v31  ;;  %v824_v33 = vpop.permute.xlu1 %823  ;;  %v843_v47 = vmul.f32 0.5, %v841_v31  ;;  %4974 = vmatprep.subr.bf16.mxu1 %v4973_v29 }
 0x1e3   : > { %v828_v34 = vadd.f32 %v824_v33, %v808_v21  ;;  %4976 = vmatpush3.bf16.msra.mxu1 %v4973_v29  ;;  %v1052_v33 = vld [vmem:[%s7025_s7 + $0x8] sm:$0xff] }
 0x1e4   : > { %v847_v35 = vmul.f32 %v845_v32, %v841_v31 }
 0x1e5   : > { %v842_v36 = vadd.f32 %v839_v57, %v828_v34  ;;  %v1054_v34 = vld [vmem:[%s7025_s7 + $0x18] sm:$0xff] }
 0x1e6   : > { %v849_v37 = vmul.f32 %v847_v35, %v841_v31  ;;  %v4977_v35 = vpack.c.bf16 %v1054_v34, %v1052_v33 }
 0x1e7   : > { %v846_v38 = vmul.f32 0.044715, %v842_v36  ;;  %v844_v50 = vmul.f32 0.5, %v842_v36 }
 0x1e8   : > { %v851_v39 = vadd.f32 %v849_v37, %v841_v31  ;;  %v1053_v37 = vld [vmem:[%s7025_s7 + $0x10] sm:$0xff]  ;;  %4978 = vmatprep.subr.bf16.mxu1 %v4977_v35 }
 0x1e9   : > { %v848_v40 = vmul.f32 %v846_v38, %v842_v36 }
 0x1ea   : > { %v853_v41 = vmul.f32 0.7978846, %v851_v39  ;;  %v1056_v39 = vld [vmem:[%s7025_s7 + $0x28] sm:$0xff] }
 0x1eb   : > { %v850_v42 = vmul.f32 %v848_v40, %v842_v36  ;;  %v1058_v40 = vld [vmem:[%s7025_s7 + $0x38] sm:$0xff] }
 0x1ec   : > { %5368 = vtanh.f32 %v853_v41  ;;  %v4981_v41 = vpack.c.bf16 %v1058_v40, %v1056_v39 }
 0x1ed   : > { %v852_v43 = vadd.f32 %v850_v42, %v842_v36  ;;  %v1051_v36 = vld [vmem:[%s7025_s7] sm:$0xff] }
 0x1ee   : > { %v898_v17 = vpop.permute.xlu0 %897  ;;  %v4979_v38 = vpack.c.bf16 %v1053_v37, %v1051_v36  ;;  %v1055_v42 = vld [vmem:[%s7025_s7 + $0x20] sm:$0xff] }
 0x1ef   : > { %v854_v44 = vmul.f32 0.7978846, %v852_v43  ;;  %v1057_v43 = vld [vmem:[%s7025_s7 + $0x30] sm:$0xff] }
 0x1f1   : > { %5370 = vtanh.f32 %v854_v44  ;;  %v4983_v44 = vpack.c.bf16 %v1057_v43, %v1055_v42 }
 0x1f2   : > { %v912_v25 = vpop.permute.xlu0 %911 }
 0x1f3   : > { %v903_v23 = vpop.permute.xlu1 %902 }
 0x1f6   : > { %v5369_v45 = vpop.eup %5368 }
 0x1f7   : > { %v857_v46 = vadd.f32 1.0, %v5369_v45  ;;  %v917_v30 = vpop.permute.xlu1 %916  ;;  %v1060_v45 = vld [vmem:[%s7025_s7 + $0x48] sm:$0xff] }
 0x1f9   : > { %v859_v48 = vmul.f32 %v857_v46, %v843_v47  ;;  %v1062_v46 = vld [vmem:[%s7025_s7 + $0x58] sm:$0xff]  ;;  %v1059_v47 = vld [vmem:[%s7025_s7 + $0x40] sm:$0xff] }
 0x1fb   : > { %v5371_v49 = vpop.eup %5370  ;;  %v861_v52 = vadd.f32 %v859_v48, %v6108_v4  ;;  %v5761_v48 = vmov -5.0  }
 0x1fc   : > { %v858_v51 = vadd.f32 1.0, %v5371_v49  ;;  %1044 = vst.msk [vmem:[#allocation3] sm:$0x1] %vm1043_vm3, %v5761_v48  ;;  %v4985_v49 = vpack.c.bf16 %v1062_v46, %v1060_v45  ;;  %vm2431_vm3 = vcmask 523264  }
 0x1fd   : > { %v864_v55 = vsel %vm863_vm2, %v861_v52, 0.0 }
 0x1fe   : > { %v860_v53 = vmul.f32 %v858_v51, %v844_v50  ;;  %v1061_v50 = vld [vmem:[%s7025_s7 + $0x50] sm:$0xff] }
 0x1ff   : > { %v4987_v51 = vpack.c.bf16 %v1061_v50, %v1059_v47 }
 0x200   : > { %v862_v54 = vadd.f32 %v860_v53, %v6114_v6 }
 0x202   : > { %v865_v56 = vsel %vm863_vm2, %v862_v54, 0.0 }
 0x203   : > { %v866_v57 = vadd.f32 %v865_v56, %v864_v55 }
 0x205   : > { %v867_v58 = vrot.slane %v866_v57, 4 }
 0x207   : > { %v868_v59 = vadd.f32 %v867_v58, %v866_v57 }
 0x209   : > { %v869_v60 = vrot.slane %v868_v59, 2 }
 0x20b   : > { %v870_v61 = vadd.f32 %v869_v60, %v868_v59  ;;  %v1085_v60 = vlaneseq }
 0x20d   : > { %v871_v62 = vrot.slane %v870_v61, 1 }
 0x20f   : > { %v872_v63 = vadd.f32 %v871_v62, %v870_v61  ;;  %v6217_v61 = vshrl.u32 %v1085_v60, 7 }
 0x211   : > { %v874_v0 = vmul.f32 0.0625, %v872_v63  ;;  %v1087_v62 = vsub.s32 0, %v6217_v61  ;;  %v1083_v63 = vld [vmem:[%s7026_s8] sm:$0x3] }
 0x213   : > { %v876_v1 = vsub.f32 %v862_v54, %v874_v0  ;;  %v875_v3 = vsub.f32 %v861_v52, %v874_v0  ;;  %v4273_v52 = vld [vmem:[%s7024_s6] ss:$0 sm:$0xff]  ;;  %v1091_v0 = vsub.s32 1, %v6217_v61 }
 0x215   : > { %v877_v5 = vmul.f32 %v875_v3, %v875_v3  ;;  %v878_v4 = vmul.f32 %v876_v1, %v876_v1 }
 0x217   : > { %v879_v7 = vsel %vm863_vm2, %v877_v5, 0.0  ;;  %v880_v6 = vsel %vm863_vm2, %v878_v4, 0.0  ;;  %v5762_v5 = vmov 0.0|0.0  }
 0x218   : > { %v881_v8 = vadd.f32 %v880_v6, %v879_v7  ;;  %4989 = vmatprep.subr.bf16.mxu0 %v5762_v5 }
 0x21a   : > { %v882_v9 = vrot.slane %v881_v8, 4 }
 0x21c   : > { %v883_v10 = vadd.f32 %v882_v9, %v881_v8 }
 0x21e   : > { %v884_v11 = vrot.slane %v883_v10, 2 }
 0x220   : > { %v885_v12 = vadd.f32 %v884_v11, %v883_v10 }
 0x222   : > { %v886_v13 = vrot.slane %v885_v12, 1 }
 0x224   : > { %v887_v14 = vadd.f32 %v886_v13, %v885_v12 }
 0x226   : > { %v888_v15 = vmul.f32 0.0625, %v887_v14 }
 0x228   : > { %v889_v16 = vadd.f32 1e-05, %v888_v15 }
 0x22a   : > { %5372 = vrsqrt.f32 %v889_v16 }
 0x234   : > { %v5373_v19 = vpop.eup %5372 }
 0x235   : > { %v891_v20 = vmul.f32 %v5373_v19, %v875_v3  ;;  %v892_v22 = vmul.f32 %v5373_v19, %v876_v1  ;;  %v1088_v1 = vrot.slane %v1083_v63, %v1087_v62  ;;  %v1092_v3 = vrot.slane %v1083_v63, %v1091_v0 }
 0x237   : > { %v905_v24 = vmul.f32 %v898_v17, %v891_v20  ;;  %v906_v27 = vmul.f32 %v903_v23, %v892_v22 }
 0x239   : > { %v919_v26 = vadd.f32 %v912_v25, %v905_v24  ;;  %v920_v31 = vadd.f32 %v917_v30, %v906_v27 }
 0x23b   : > { %930 = vxpose.xlu0.b32.start [1/2] (short) (narrow) %v919_v26, 16 }
 0x23f   : > { %931 = vxpose.xlu0.b32.end [2/2] (short) (narrow) %v920_v31, 16 }
 0x2bb   : > { %v946_v21 = vpop.trf.xlu0 }
 0x2bc   : > { %4587 = vmatprep.mubr.msk.f32.mxu1 %vm863_vm2, %v946_v21 }
 0x2bf   : > { %v947_v32 = vpop.trf.xlu0 }
 0x2c0   : > { %4588 = vmatmul.mubr.msk.f32.vlgmr.msra.gmra.mrb[0].mxu1 %vm863_vm2, %v947_v32  ;;  %vm2204_vm2 = vcmask 385312  }
 0x2c1   : > { %1168 = vmatprep.mubr.f32.mxu1 %v5744_v2  ;;  %4980 = vmatpush1.bf16.msra.mxu1 %v4979_v38 }
 0x2c2   : > { %4982 = vmatprep.subr.bf16.mxu1 %v4981_v41 }
 0x2c5   : > { %4984 = vmatpush1.bf16.msra.mxu1 %v4983_v44 }
 0x2c6   : > { %4986 = vmatprep.subr.bf16.mxu1 %v4985_v49 }
 0x2c9   : > { %4988 = vmatpush1.bf16.msra.mxu1 %v4987_v51 }
 0x2ca   : > { %4993 = vmatprep.subr.bf16.mxu1 %v5762_v5 }
 0x393   : > { %v4589_v53 = vpop.f32.mrb[0].mxu1 }
 0x394   : > { %v1040_v54 = vadd.f32 %v4589_v53, %v4273_v52  ;;  %v1034_v55 = vpop.f32.mrb[1].mxu1 }
 0x395   : > { %v1035_v56 = vadd.f32 %v4273_v52, %v1034_v55 }
 0x396   : > { %1047 = vst.msk [vmem:[#allocation3 + $0x9] sm:$0xff] %vm1045_vm4, %v1040_v54 }
 0x397   : > { %1046 = vst.msk [vmem:[#allocation3 + $0x1] sm:$0xff] %vm1045_vm4, %v1035_v56 }
 0x39d   : > { %v1050_v59 = vld [vmem:[#allocation3 + $0x10] sm:$0x1] }
 0x39e   : > { %v6209_v57 = vld [vmem:[#allocation3] sm:$0xff]  ;;  %v1049_v58 = vld [vmem:[#allocation3 + $0x8] sm:$0xff] }
 0x39f   : > { %4276 = vmatmul.mubr.msk.f32.vlgmr.msra.gmra.mrb[2].mxu1 %vm1045_vm4, %v6209_v57 }
 0x3a0   : > { %1174 = vmatprep.mubr.f32.mxu1 %v5744_v2 }
 0x3a3   : > { %4277 = vmatmul.mubr.msk.f32.gmra.mrb[4].mxu1 %vm1045_vm4, %v1049_v58 }
 0x3a4   : > { %1180 = vmatprep.mubr.f32.mxu1 %v5744_v2 }
 0x3a7   : > { %4278 = vmatmul.mubr.msk.f32.gmra.mrb[6].mxu1 %vm1045_vm4, %v1050_v59 }
 0x3a8   : > { %4611 = vmatprep.mubr.msk.f32.mxu1 %vm5765_vm5, %v5744_v2 }
 0x472   : > { %v1170_v4 = vpop.f32.mrb[2].mxu1 }
 0x473   : > { %v1171_v7 = vadd.f32 %v1170_v4, %v1088_v1  ;;  %v1172_v6 = vpop.f32.mrb[3].mxu1 }
 0x474   : > { %v6230_v8 = vadd.f32 %v1172_v6, %v1092_v3 }
 0x475   : > { %v1187_v23 = vmul.f32 0.28867513, %v1171_v7 }
 0x476   : > { %v5308_v9 = vpack.i.bf16 %v6230_v8, %v1171_v7  ;;  %v1176_v10 = vpop.f32.mrb[4].mxu1 }
 0x477   : > { %v1177_v11 = vadd.f32 %v1176_v10, %v1088_v1  ;;  %v1178_v12 = vpop.f32.mrb[5].mxu1 }
 0x478   : > { %v6233_v13 = vadd.f32 %v1178_v12, %v1092_v3 }
 0x479   : > { %v5293_v14 = vpack.i.bf16 %v1177_v11, %v1171_v7  ;;  %v1188_v24 = vmul.f32 0.28867513, %v1177_v11 }
 0x47a   : > { %v5313_v15 = vpack.i.bf16 %v6233_v13, %v1177_v11  ;;  %v5318_v16 = vpack.i.bf16 %v6233_v13, %v6230_v8  ;;  %v1182_v17 = vpop.f32.mrb[6].mxu1 }
 0x47b   : > { %v1184_v19 = vpop.f32.mrb[7].mxu1  ;;  %5294 = vrot.lane.b32.xlu0 %v5293_v14, %s7070_s22  ;;  %5279 = vrot.lane.b32.xlu1 %v5293_v14, %s5764_s1  ;;  %v6250_v22 = vadd.f32 %v1182_v17, %v1088_v1 }
 0x47c   : > { %v6240_v20 = vadd.f32 %v1184_v19, %v1092_v3 }
 0x47d   : > { %v1189_v25 = vmul.f32 0.28867513, %v6250_v22 }
 0x47f   : > { %5299 = vrot.lane.b32.xlu0 %v5293_v14, %s7066_s0  ;;  %5284 = vrot.lane.b32.xlu1 %v5293_v14, %s5767_s17 }
 0x483   : > { %5304 = vrot.lane.b32.xlu0 %v5293_v14, %s7064_s21  ;;  %5289 = vrot.lane.b32.xlu1 %v5293_v14, %s5769_s19 }
 0x487   : > { %1197 = vrot.lane.b32.xlu1 %v6250_v22, %s5764_s1 }
 0x48b   : > { %1434 = vrot.lane.b32.xlu1 %v1187_v23, %s5770_s24 }
 0x48f   : > { %1436 = vrot.lane.b32.xlu1 %v1188_v24, %s5770_s24 }
 0x493   : > { %1444 = vrot.lane.b32.xlu1 %v6250_v22, %s5767_s17 }
 0x497   : > { %1687 = vrot.lane.b32.xlu1 %v1187_v23, %s5771_s20 }
 0x49b   : > { %1697 = vrot.lane.b32.xlu1 %v6250_v22, %s5769_s19 }
 0x49f   : > { %1438 = vrot.lane.b32.xlu1 %v1189_v25, %s5770_s24 }
 0x4a3   : > { %1689 = vrot.lane.b32.xlu1 %v1188_v24, %s5771_s20 }
 0x4a7   : > { %1963 = vrot.lane.b32.xlu1 %v6250_v22, %s7070_s22 }
 0x4ab   : > { %1691 = vrot.lane.b32.xlu1 %v1189_v25, %s5771_s20 }
 0x4af   : > { %1953 = vrot.lane.b32.xlu1 %v1187_v23, %s7068_s30 }
 0x4b3   : > { %1955 = vrot.lane.b32.xlu1 %v1188_v24, %s7068_s30 }
 0x4b7   : > { %1957 = vrot.lane.b32.xlu1 %v1189_v25, %s7068_s30  ;;  %s7105_s30 = sld [smem:[#allocation32_spill]] }
 0x4bb   : > { %1328 = vrot.lane.b32.xlu1 %v6250_v22, %s7066_s0  ;;  %s4419_s0 = sshll.u32 %s5890_s28, 8 }
 0x4bf   : > { %1569 = vrot.lane.b32.xlu1 %v6250_v22, %s7064_s21  ;;  %s7113_s21 = smov 24  }
 0x4c3   : > { %5309 = vrot.lane.b32.xlu1 %v5308_v9, %s7062_s27 }
 0x4c7   : > { %5314 = vrot.lane.b32.xlu1 %v5313_v15, %s7062_s27 }
 0x4ed   : > { %v5295_v26 = vpop.permute.xlu0 %5294  ;;  %v5280_v27 = vpop.permute.xlu1 %5279 }
 0x4ee   : > { %v5282_v18 = vunpack.i.h.bf16 %v5280_v27  ;;  %v5281_v28 = vunpack.i.l.bf16 %v5280_v27  ;;  %v5297_v48 = vunpack.i.h.bf16 %v5295_v26  ;;  %v5296_v49 = vunpack.i.l.bf16 %v5295_v26 }
 0x4f0   : > { %v4990_v30 = vpack.c.bf16 %v5282_v18, %v5281_v28  ;;  %v5011_v51 = vpack.c.bf16 %v5297_v48, %v5296_v49 }
 0x4f1   : > { %v5300_v31 = vpop.permute.xlu0 %5299  ;;  %v5285_v21 = vpop.permute.xlu1 %5284 }
 0x4f2   : > { %v5302_v32 = vunpack.i.h.bf16 %v5300_v31  ;;  %v5301_v33 = vunpack.i.l.bf16 %v5300_v31  ;;  %4992 = vmatpush3.bf16.xpose.msk.msra.mxu0 %vm6278_vm7, %v4990_v30  ;;  %v5287_v36 = vunpack.i.h.bf16 %v5285_v21  ;;  %v5286_v37 = vunpack.i.l.bf16 %v5285_v21 }
 0x4f3   : > { %4594 = vmatprep.subr.mxu0 %v5744_v2 }
 0x4f4   : > { %v4994_v34 = vpack.c.bf16 %v5302_v32, %v5301_v33  ;;  %v4997_v39 = vpack.c.bf16 %v5287_v36, %v5286_v37 }
 0x4f5   : > { %v5290_v35 = vpop.permute.xlu1 %5289 }
 0x4f6   : > { %4995 = vmatpush3.bf16.msra.mxu1 %v4994_v34  ;;  %v5292_v42 = vunpack.i.h.bf16 %v5290_v35  ;;  %v5291_v43 = vunpack.i.l.bf16 %v5290_v35 }
 0x4f7   : > { %4609 = vmatprep.subr.mxu1 %v5744_v2 }
 0x4f8   : > { %v5004_v45 = vpack.c.bf16 %v5292_v42, %v5291_v43 }
 0x4f9   : > { %v1198_v38 = vpop.permute.xlu1 %1197 }
 0x4fa   : > { %4595 = vmatpush3.xpose.msk.msra.mxu0 %vm1199_vm6, %v1198_v38 }
 0x4fb   : > { %4996 = vmatprep.subr.bf16.mxu0 %v5762_v5 }
 0x4fd   : > { %v1435_v40 = vpop.permute.xlu1 %1434  ;;  %4597 = vmatmul.mubr.msk.f32.vlgmr.msra.gmra.mrb[0].mxu0 %vm1199_vm6, %v1187_v23 }
 0x4fe   : > { %4999 = vmatpush3.bf16.xpose.msk.msra.mxu0 %vm6278_vm7, %v4997_v39  ;;  %4599 = vmatprep.mubr.msk.f32.mxu0 %vm5765_vm5, %v5744_v2 }
 0x4ff   : > { %4624 = vmatprep.subr.mxu0 %v5744_v2 }
 0x501   : > { %v1437_v41 = vpop.permute.xlu1 %1436  ;;  %4600 = vmatmul.mubr.msk.f32.gmra.mrb[2].mxu0 %vm1199_vm6, %v1188_v24 }
 0x502   : > { %4602 = vmatprep.mubr.msk.f32.mxu0 %vm5765_vm5, %v5744_v2 }
 0x505   : > { %v1445_v44 = vpop.permute.xlu1 %1444  ;;  %4603 = vmatmul.mubr.msk.f32.gmra.mrb[4].mxu0 %vm1199_vm6, %v1189_v25 }
 0x506   : > { %4625 = vmatpush3.xpose.msk.msra.mxu0 %vm1199_vm6, %v1445_v44  ;;  %4626 = vmatprep.mubr.msk.f32.mxu0 %vm5765_vm5, %v5744_v2 }
 0x507   : > { %5003 = vmatprep.subr.bf16.mxu0 %v5762_v5 }
 0x509   : > { %v1688_v46 = vpop.permute.xlu1 %1687  ;;  %4627 = vmatmul.mubr.msk.f32.vlgmr.msra.gmra.mrb[6].mxu0 %vm1199_vm6, %v1435_v40 }
 0x50a   : > { %5006 = vmatpush3.bf16.xpose.msk.msra.mxu0 %vm6278_vm7, %v5004_v45  ;;  %4629 = vmatprep.mubr.msk.f32.mxu0 %vm5765_vm5, %v5744_v2  ;;  %v5305_v45 = vpop.permute.xlu0 %5304 }
 0x50b   : > { %4654 = vmatprep.subr.mxu0 %v5744_v2  ;;  %v5306_v8 = vunpack.i.l.bf16 %v5305_v45 }
 0x50d   : > { %v1698_v47 = vpop.permute.xlu1 %1697  ;;  %4630 = vmatmul.mubr.msk.f32.gmra.mrb[8].mxu0 %vm1199_vm6, %v1437_v41 }
 0x50e   : > { %4632 = vmatprep.mubr.msk.f32.mxu0 %vm5765_vm5, %v5744_v2 }
 0x511   : > { %v1439_v50 = vpop.permute.xlu1 %1438 }
 0x512   : > { %4633 = vmatmul.mubr.msk.f32.gmra.mrb[10].mxu0 %vm1199_vm6, %v1439_v50 }
 0x513   : > { %4655 = vmatpush3.xpose.msk.msra.mxu0 %vm1199_vm6, %v1698_v47  ;;  %4656 = vmatprep.mubr.msk.f32.mxu0 %vm5765_vm5, %v5744_v2 }
 0x514   : > { %5010 = vmatprep.subr.bf16.mxu0 %v5762_v5 }
 0x515   : > { %v1690_v52 = vpop.permute.xlu1 %1689 }
 0x516   : > { %4657 = vmatmul.mubr.msk.f32.vlgmr.msra.gmra.mrb[12].mxu0 %vm1199_vm6, %v1688_v46 }
 0x517   : > { %5013 = vmatpush3.bf16.xpose.msk.msra.mxu0 %vm6278_vm7, %v5011_v51  ;;  %4659 = vmatprep.mubr.msk.f32.mxu0 %vm5765_vm5, %v5744_v2 }
 0x518   : > { %4684 = vmatprep.subr.mxu0 %v5744_v2 }
 0x519   : > { %v1964_v53 = vpop.permute.xlu1 %1963 }
 0x51a   : > { %4660 = vmatmul.mubr.msk.f32.gmra.mrb[14].mxu0 %vm1199_vm6, %v1690_v52 }
 0x51b   : > { %4662 = vmatprep.mubr.msk.f32.mxu0 %vm5765_vm5, %v5744_v2 }
 0x51d   : > { %v1692_v54 = vpop.permute.xlu1 %1691 }
 0x51e   : > { %4663 = vmatmul.mubr.msk.f32.gmra.mrb[16].mxu0 %vm1199_vm6, %v1692_v54  ;;  %v5307_v54 = vunpack.i.h.bf16 %v5305_v45 }
 0x51f   : > { %4685 = vmatpush3.xpose.msk.msra.mxu0 %vm1199_vm6, %v1964_v53  ;;  %4686 = vmatprep.mubr.msk.f32.mxu0 %vm5765_vm5, %v5744_v2 }
 0x520   : > { %5017 = vmatprep.subr.bf16.mxu0 %v5762_v5 }
 0x521   : > { %v1954_v55 = vpop.permute.xlu1 %1953 }
 0x522   : > { %4687 = vmatmul.mubr.msk.f32.vlgmr.msra.gmra.mrb[18].mxu0 %vm1199_vm6, %v1954_v55 }
 0x523   : > { %4689 = vmatprep.mubr.msk.f32.mxu0 %vm5765_vm5, %v5744_v2 }
 0x525   : > { %v1956_v56 = vpop.permute.xlu1 %1955 }
 0x526   : > { %4690 = vmatmul.mubr.msk.f32.gmra.mrb[20].mxu0 %vm1199_vm6, %v1956_v56  ;;  %v5001_v56 = vpack.c.bf16 %v5307_v54, %v5306_v8 }
 0x527   : > { %4692 = vmatprep.mubr.msk.f32.mxu0 %vm5765_vm5, %v5744_v2 }
 0x529   : > { %v1958_v58 = vpop.permute.xlu1 %1957 }
 0x52a   : > { %4693 = vmatmul.mubr.msk.f32.gmra.mrb[22].mxu0 %vm1199_vm6, %v1958_v58 }
 0x52b   : > { %4722 = vmatprep.mubr.msk.f32.mxu0 %vm5765_vm5, %v5744_v2 }
 0x52d   : > { %v1329_v59 = vpop.permute.xlu1 %1328 }
 0x52e   : > { %4610 = vmatpush3.msk.msra.mxu1 %vm1341_vm8, %v1329_v59 }
 0x52f   : > { %5000 = vmatprep.subr.bf16.mxu1 %v5762_v5 }
 0x531   : > { %v1570_v42 = vpop.permute.xlu1 %1569 }
 0x535   : > { %v5310_v43 = vpop.permute.xlu1 %5309 }
 0x539   : > { %v5315_v44 = vpop.permute.xlu1 %5314 }
 0x5d0   : > { %v1281_v60 = vpop.f32.mrb[0].mxu0 }
 0x5d1   : > { %v4598_v63 = vpop.f32.mrb[1].mxu0  ;;  %v1296_v1 = vsel %vm1295_vm9, %v1281_v60, -inf }
 0x5d2   : > { %1297 = vmax.xlane.f32.xlu1 %v1296_v1 }
 0x5d4   : > { %v1286_v3 = vpop.f32.mrb[2].mxu0 }
 0x5d5   : > { %v4601_v4 = vpop.f32.mrb[3].mxu0  ;;  %v1299_v7 = vsel %vm1295_vm9, %v1286_v3, -inf }
 0x5d6   : > { %1300 = vmax.xlane.f32.xlu0 %v1299_v7  ;;  %v5316_v4 = vunpack.i.l.bf16 %v5315_v44 }
 0x5d8   : > { %v1291_v6 = vpop.f32.mrb[4].mxu0 }
 0x5d9   : > { %v4604_v9 = vpop.f32.mrb[5].mxu0  ;;  %v1303_v10 = vsel %vm1302_vm10, %v1291_v6, -inf }
 0x5da   : > { %1304 = vmax.xlane.f32.xlu1 %v1303_v10  ;;  %v5311_v9 = vunpack.i.l.bf16 %v5310_v43 }
 0x5dc   : > { %v1524_v11 = vpop.f32.mrb[6].mxu0 }
 0x5dd   : > { %v4628_v12 = vpop.f32.mrb[7].mxu0  ;;  %v1538_v14 = vsel %vm1295_vm9, %v1524_v11, -inf }
 0x5de   : > { %1539 = vmax.xlane.f32.xlu1 %v1538_v14 }
 0x5e0   : > { %v6345_v15 = vpop.f32.mrb[8].mxu0 }
 0x5e1   : > { %v4631_v17 = vpop.f32.mrb[9].mxu0  ;;  %v1541_v19 = vsel %vm1295_vm9, %v6345_v15, -inf }
 0x5e2   : > { %1542 = vmax.xlane.f32.xlu0 %v1541_v19 }
 0x5e5   : > { %v6349_v23 = vpop.f32.mrb[10].mxu0 }
 0x5e6   : > { %v4634_v24 = vpop.f32.mrb[11].mxu0  ;;  %v1544_v25 = vsel %vm1302_vm10, %v6349_v23, -inf }
 0x5e7   : > { %1545 = vmax.xlane.f32.xlu1 %v1544_v25 }
 0x5e9   : > { %v6353_v26 = vpop.f32.mrb[12].mxu0 }
 0x5ea   : > { %v4658_v27 = vpop.f32.mrb[13].mxu0  ;;  %v1791_v18 = vsel %vm1295_vm9, %v6353_v26, -inf }
 0x5eb   : > { %1792 = vmax.xlane.f32.xlu1 %v1791_v18 }
 0x5ed   : > { %v6357_v28 = vpop.f32.mrb[14].mxu0 }
 0x5ee   : > { %v4661_v30 = vpop.f32.mrb[15].mxu0  ;;  %v1794_v41 = vsel %vm1295_vm9, %v6357_v28, -inf }
 0x5f1   : > { %v6359_v31 = vpop.f32.mrb[16].mxu0 }
 0x5f2   : > { %v4664_v21 = vpop.f32.mrb[17].mxu0  ;;  %v1797_v32 = vsel %vm1302_vm10, %v6359_v31, -inf }
 0x5f3   : > { %1798 = vmax.xlane.f32.xlu1 %v1797_v32 }
 0x5f5   : > { %v6363_v33 = vpop.f32.mrb[18].mxu0 }
 0x5f6   : > { %v4688_v34 = vpop.f32.mrb[19].mxu0  ;;  %v2057_v35 = vsel %vm1295_vm9, %v6363_v33, -inf }
 0x5f7   : > { %2058 = vmax.xlane.f32.xlu1 %v2057_v35 }
 0x5f8   : > { %1829 = vrot.lane.b32.xlu0 %v6250_v22, %s7062_s27 }
 0x5f9   : > { %v6369_v36 = vpop.f32.mrb[20].mxu0 }
 0x5fa   : > { %v4691_v37 = vpop.f32.mrb[21].mxu0  ;;  %v2060_v22 = vsel %vm1295_vm9, %v6369_v36, -inf }
 0x5fd   : > { %v6371_v38 = vpop.f32.mrb[22].mxu0 }
 0x5fe   : > { %v4694_v39 = vpop.f32.mrb[23].mxu0  ;;  %v2063_v40 = vsel %vm1302_vm10, %v6371_v38, -inf }
 0x5ff   : > { %2064 = vmax.xlane.f32.xlu1 %v2063_v40 }
 0x610   : > { %1831 = vrot.lane.b32.xlu1 %v6240_v20, %s7062_s27  ;;  %s7114_s27 = smov 36  }
 0x617   : > { %1795 = vmax.xlane.f32.xlu0 %v1794_v41 }
 0x61b   : > { %2061 = vmax.xlane.f32.xlu0 %v2060_v22 }
 0x631   : > { %5319 = vrot.lane.b32.xlu0 %v5318_v16, %s7060_s29 }
 0x635   : > { %2088 = vrot.lane.b32.xlu0 %v6240_v20, %s7060_s29  ;;  %s7111_s29 = smov 124  }
 0x65f   : > { %v1298_v46 = vpop.xlane.xlu1 %1297 }
 0x660   : > { %v1306_v47 = vsub.f32 %v1281_v60, %v1298_v46 }
 0x662   : > { %v1309_v48 = vmul.f32 1.442695, %v1306_v47 }
 0x663   : > { %v1301_v49 = vpop.xlane.xlu0 %1300 }
 0x664   : > { %5374 = vpow2.f32 %v1309_v48  ;;  %v1307_v50 = vsub.f32 %v1286_v3, %v1301_v49  ;;  %v5317_v3 = vunpack.i.h.bf16 %v5315_v44 }
 0x666   : > { %v1311_v51 = vmul.f32 1.442695, %v1307_v50  ;;  %v1835_v12 = vsel %vm1833_vm11, %v5316_v4, %v5317_v3 }
 0x667   : > { %v1305_v52 = vpop.xlane.xlu1 %1304 }
 0x668   : > { %5376 = vpow2.f32 %v1311_v51  ;;  %v1308_v53 = vsub.f32 %v1291_v6, %v1305_v52  ;;  %v5312_v6 = vunpack.i.h.bf16 %v5310_v43 }
 0x66a   : > { %v1313_v13 = vmul.f32 1.442695, %v1308_v53  ;;  %v1834_v17 = vsel %vm1833_vm11, %v5311_v9, %v5312_v6 }
 0x66b   : > { %v1540_v16 = vpop.xlane.xlu1 %1539  ;;  %v5008_v24 = vpack.c.bf16 %v1835_v12, %v1834_v17 }
 0x66c   : > { %5378 = vpow2.f32 %v1313_v13  ;;  %v1547_v20 = vsub.f32 %v1524_v11, %v1540_v16 }
 0x66e   : > { %v6387_v55 = vpop.eup %5374  ;;  %v1550_v58 = vmul.f32 1.442695, %v1547_v20 }
 0x66f   : > { %4612 = vmatmul.mubr.msk.f32.vlgmr.msra.gmra.mrb[8].mxu1 %vm1295_vm9, %v6387_v55  ;;  %v1543_v59 = vpop.xlane.xlu0 %1542  ;;  %v1315_v3 = vsel %vm1295_vm9, %v6387_v55, 0.0 }
 0x670   : > { %5380 = vpow2.f32 %v1550_v58  ;;  %5002 = vmatpush3.bf16.msra.mxu1 %v5001_v56  ;;  %v1548_v60 = vsub.f32 %v6345_v15, %v1543_v59  ;;  %4614 = vmatprep.mubr.msk.f32.mxu1 %vm5765_vm5, %v5744_v2 }
 0x671   : > { %4639 = vmatprep.subr.mxu1 %v5744_v2 }
 0x672   : > { %v6395_v63 = vpop.eup %5376  ;;  %v1552_v1 = vmul.f32 1.442695, %v1548_v60 }
 0x673   : > { %4615 = vmatmul.mubr.msk.f32.gmra.mrb[10].mxu1 %vm1295_vm9, %v6395_v63  ;;  %v1830_v41 = vpop.permute.xlu0 %1829  ;;  %v1318_v4 = vsel %vm1295_vm9, %v6395_v63, 0.0 }
 0x674   : > { %5382 = vpow2.f32 %v1552_v1  ;;  %4640 = vmatpush3.msk.msra.mxu1 %vm1341_vm8, %v1570_v42  ;;  %v1546_v7 = vpop.xlane.xlu1 %1545  ;;  %4617 = vmatprep.mubr.msk.f32.mxu1 %vm5765_vm5, %v5744_v2 }
 0x675   : > { %v1549_v10 = vsub.f32 %v6349_v23, %v1546_v7  ;;  %5007 = vmatprep.subr.bf16.mxu1 %v5762_v5 }
 0x676   : > { %v6404_v11 = vpop.eup %5378 }
 0x677   : > { %v1554_v14 = vmul.f32 1.442695, %v1549_v10  ;;  %4618 = vmatmul.mubr.msk.f32.gmra.mrb[12].mxu1 %vm1295_vm9, %v6404_v11  ;;  %v1321_v7 = vsel %vm1302_vm10, %v6404_v11, 0.0 }
 0x678   : > { %v1793_v15 = vpop.xlane.xlu1 %1792  ;;  %4641 = vmatprep.mubr.msk.f32.mxu1 %vm5765_vm5, %v5744_v2 }
 0x679   : > { %5384 = vpow2.f32 %v1554_v14  ;;  %v1800_v19 = vsub.f32 %v6353_v26, %v1793_v15 }
 0x67a   : > { %v5381_v23 = vpop.eup %5380 }
 0x67b   : > { %v1803_v25 = vmul.f32 1.442695, %v1800_v19  ;;  %4642 = vmatmul.mubr.msk.f32.vlgmr.msra.gmra.mrb[14].mxu1 %vm1295_vm9, %v5381_v23  ;;  %v1556_v27 = vsel %vm1295_vm9, %v5381_v23, 0.0 }
 0x67c   : > { %5009 = vmatpush3.bf16.msra.mxu1 %v5008_v24  ;;  %1557 = vadd.xlane.f32.xlu0 %v1556_v27 }
 0x67d   : > { %5386 = vpow2.f32 %v1803_v25  ;;  %4644 = vmatprep.mubr.msk.f32.mxu1 %vm5765_vm5, %v5744_v2  ;;  %4669 = vmatprep.subr.mxu1 %v5744_v2 }
 0x67e   : > { %v5383_v18 = vpop.eup %5382 }
 0x67f   : > { %4645 = vmatmul.mubr.msk.f32.gmra.mrb[16].mxu1 %vm1295_vm9, %v5383_v18  ;;  %v1559_v26 = vsel %vm1295_vm9, %v5383_v18, 0.0 }
 0x680   : > { %v1799_v30 = vpop.xlane.xlu1 %1798  ;;  %1560 = vadd.xlane.f32.xlu0 %v1559_v26  ;;  %4647 = vmatprep.mubr.msk.f32.mxu1 %vm5765_vm5, %v5744_v2 }
 0x681   : > { %v1802_v44 = vsub.f32 %v6359_v31, %v1799_v30 }
 0x683   : > { %v5385_v21 = vpop.eup %5384  ;;  %v1807_v49 = vmul.f32 1.442695, %v1802_v44 }
 0x684   : > { %4648 = vmatmul.mubr.msk.f32.gmra.mrb[18].mxu1 %vm1295_vm9, %v5385_v21  ;;  %v2059_v32 = vpop.xlane.xlu1 %2058  ;;  %v1562_v56 = vsel %vm1302_vm10, %v5385_v21, 0.0 }
 0x685   : > { %v2066_v34 = vsub.f32 %v6363_v33, %v2059_v32  ;;  %4671 = vmatprep.mubr.msk.f32.mxu1 %vm5765_vm5, %v5744_v2 }
 0x687   : > { %v5387_v35 = vpop.eup %5386  ;;  %v2069_v37 = vmul.f32 1.442695, %v2066_v34 }
 0x688   : > { %v1809_v39 = vsel %vm1295_vm9, %v5387_v35, 0.0 }
 0x689   : > { %5388 = vpow2.f32 %v2069_v37  ;;  %1810 = vadd.xlane.f32.xlu1 %v1809_v39 }
 0x68c   : > { %v2065_v40 = vpop.xlane.xlu1 %2064 }
 0x68d   : > { %v2068_v47 = vsub.f32 %v6371_v38, %v2065_v40 }
 0x68f   : > { %v2073_v52 = vmul.f32 1.442695, %v2068_v47 }
 0x690   : > { %v1832_v22 = vpop.permute.xlu1 %1831 }
 0x691   : > { %v1836_v42 = vsel %vm1833_vm11, %v1830_v41, %v1832_v22 }
 0x692   : > { %4670 = vmatpush3.msk.msra.mxu1 %vm1341_vm8, %v1836_v42 }
 0x693   : > { %v5389_v43 = vpop.eup %5388  ;;  %4672 = vmatmul.mubr.msk.f32.vlgmr.msra.gmra.mrb[20].mxu1 %vm1295_vm9, %v5387_v35  ;;  %5014 = vmatprep.subr.bf16.mxu1 %v5762_v5 }
 0x694   : > { %v2075_v33 = vsel %vm1295_vm9, %v5389_v43, 0.0  ;;  %4674 = vmatprep.mubr.msk.f32.mxu1 %vm5765_vm5, %v5744_v2 }
 0x695   : > { %2076 = vadd.xlane.f32.xlu0 %v2075_v33 }
 0x6a4   : > { %v1796_v45 = vpop.xlane.xlu0 %1795 }
 0x6a5   : > { %v1801_v46 = vsub.f32 %v6357_v28, %v1796_v45 }
 0x6a7   : > { %v1805_v48 = vmul.f32 1.442695, %v1801_v46 }
 0x6a8   : > { %v2062_v50 = vpop.xlane.xlu0 %2061 }
 0x6a9   : > { %5390 = vpow2.f32 %v1805_v48  ;;  %v2067_v51 = vsub.f32 %v6369_v36, %v2062_v50  ;;  %v1063_v48 = vld [vmem:[#allocation8] sm:$0xff] }
 0x6aa   : > { %5392 = vpow2.f32 %v1807_v49  ;;  %v1064_v49 = vld [vmem:[#allocation8 + $0x8] sm:$0xff] }
 0x6ab   : > { %v2071_v53 = vmul.f32 1.442695, %v2067_v51  ;;  %v5018_v50 = vpack.c.bf16 %v1064_v49, %v1063_v48 }
 0x6ac   : > { %v5320_v54 = vpop.permute.xlu0 %5319 }
 0x6ad   : > { %5394 = vpow2.f32 %v2071_v53  ;;  %v5322_v8 = vunpack.i.h.bf16 %v5320_v54  ;;  %v5321_v13 = vunpack.i.l.bf16 %v5320_v54  ;;  %5019 = vmatpush3.bf16.msra.mxu0 %v5018_v50 }
 0x6ae   : > { %5396 = vpow2.f32 %v2073_v52  ;;  %5020 = vmatprep.subr.bf16.mxu0 %v5762_v5 }
 0x6af   : > { %v5015_v31 = vpack.c.bf16 %v5322_v8, %v5321_v13 }
 0x6b0   : > { %v2089_v38 = vpop.permute.xlu0 %2088 }
 0x6b1   : > { %5016 = vmatpush3.bf16.msra.mxu1 %v5015_v31  ;;  %v1065_v31 = vld [vmem:[#allocation8 + $0x10] sm:$0xff] }
 0x6b2   : > { %4699 = vmatprep.subr.mxu1 %v5744_v2 }
 0x6b3   : > { %v5391_v28 = vpop.eup %5390 }
 0x6b4   : > { %4675 = vmatmul.mubr.msk.f32.gmra.mrb[22].mxu1 %vm1295_vm9, %v5391_v28  ;;  %v1812_v16 = vsel %vm1295_vm9, %v5391_v28, 0.0  ;;  %v5393_v36 = vpop.eup %5392  ;;  %v1066_v28 = vld [vmem:[#allocation8 + $0x18] sm:$0xff] }
 0x6b5   : > { %1813 = vadd.xlane.f32.xlu0 %v1812_v16  ;;  %4700 = vmatpush3.msk.msra.mxu1 %vm1341_vm8, %v2089_v38  ;;  %v1815_v60 = vsel %vm1302_vm10, %v5393_v36, 0.0  ;;  %v5021_v38 = vpack.c.bf16 %v1066_v28, %v1065_v31 }
 0x6b6   : > { %4677 = vmatprep.mubr.msk.f32.mxu1 %vm5765_vm5, %v5744_v2  ;;  %5026 = vmatprep.subr.bf16.mxu1 %v5762_v5 }
 0x6b7   : > { %v5395_v20 = vpop.eup %5394  ;;  %5022 = vmatpush3.bf16.msra.mxu0 %v5021_v38  ;;  %v5483_v38 = vld [vmem:[#allocation3 + $0x10] sm:$0x1] }
 0x6b8   : > { %4678 = vmatmul.mubr.msk.f32.gmra.mrb[24].mxu1 %vm1295_vm9, %v5393_v36  ;;  %v2078_v58 = vsel %vm1295_vm9, %v5395_v20, 0.0  ;;  %v5397_v59 = vpop.eup %5396  ;;  %5023 = vmatprep.subr.bf16.mxu0 %v5762_v5 }
 0x6b9   : > { %1563 = vadd.xlane.f32.xlu0 %v1562_v56  ;;  %2079 = vadd.xlane.f32.xlu1 %v2078_v58  ;;  %v2081_v1 = vsel %vm1302_vm10, %v5397_v59, 0.0  ;;  %v1067_v58 = vld [vmem:[#allocation8 + $0x20] sm:$0xff] }
 0x6ba   : > { %4701 = vmatprep.mubr.msk.f32.mxu1 %vm5765_vm5, %v5744_v2 }
 0x6bc   : > { %4702 = vmatmul.mubr.msk.f32.vlgmr.msra.gmra.mrb[26].mxu1 %vm1295_vm9, %v5389_v43 }
 0x6bd   : > { %1816 = vadd.xlane.f32.xlu1 %v1815_v60  ;;  %2082 = vadd.xlane.f32.xlu0 %v2081_v1 }
 0x6be   : > { %4704 = vmatprep.mubr.msk.f32.mxu1 %vm5765_vm5, %v5744_v2 }
 0x6c0   : > { %4705 = vmatmul.mubr.msk.f32.gmra.mrb[28].mxu1 %vm1295_vm9, %v5395_v20 }
 0x6c1   : > { %1316 = vadd.xlane.f32.xlu1 %v1315_v3  ;;  %1319 = vadd.xlane.f32.xlu0 %v1318_v4 }
 0x6c2   : > { %4707 = vmatprep.mubr.msk.f32.mxu1 %vm5765_vm5, %v5744_v2 }
 0x6c4   : > { %4708 = vmatmul.mubr.msk.f32.gmra.mrb[30].mxu1 %vm1295_vm9, %v5397_v59  ;;  %v1068_v59 = vld [vmem:[#allocation8 + $0x28] sm:$0xff] }
 0x6c5   : > { %1322 = vadd.xlane.f32.xlu1 %v1321_v7  ;;  %4743 = vmatprep.mubr.msk.f32.mxu1 %vm5765_vm5, %v5744_v2  ;;  %v5024_v60 = vpack.c.bf16 %v1068_v59, %v1067_v58  ;;  %v1077_v58 = vld [vmem:[%s7031_s13 + $0x10] sm:$0xff]  ;;  %v1078_v59 = vld [vmem:[%s7031_s13 + $0x18] sm:$0xff] }
 0x6c7   : > { %5025 = vmatpush3.bf16.msra.mxu0 %v5024_v60  ;;  %v5039_v60 = vpack.c.bf16 %v1078_v59, %v1077_v58 }
 0x6c8   : > { %5035 = vmatprep.subr.bf16.mxu0 %v5762_v5 }
 0x709   : > { %v1558_v6 = vpop.xlane.xlu0 %1557 }
 0x70a   : > { %5398 = vrcp.f32 %v1558_v6 }
 0x70d   : > { %v1561_v9 = vpop.xlane.xlu0 %1560 }
 0x70e   : > { %5400 = vrcp.f32 %v1561_v9 }
 0x714   : > { %v5399_v18 = vpop.eup %5398 }
 0x716   : > { %v1811_v63 = vpop.xlane.xlu1 %1810 }
 0x718   : > { %v5401_v35 = vpop.eup %5400 }
 0x722   : > { %v2077_v55 = vpop.xlane.xlu0 %2076 }
 0x742   : > { %v1410_v10 = vpop.f32.mrb[8].mxu1  ;;  %v1814_v12 = vpop.xlane.xlu0 %1813 }
 0x743   : > { %v4613_v14 = vpop.f32.mrb[9].mxu1 }
 0x746   : > { %v1415_v15 = vpop.f32.mrb[10].mxu1  ;;  %v1564_v17 = vpop.xlane.xlu0 %1563 }
 0x747   : > { %v2080_v19 = vpop.xlane.xlu1 %2079  ;;  %v4616_v23 = vpop.f32.mrb[11].mxu1  ;;  %5402 = vrcp.f32 %v1564_v17 }
 0x74a   : > { %v1420_v24 = vpop.f32.mrb[12].mxu1  ;;  %v6467_v25 = vpop.xlane.xlu0 %2082 }
 0x74b   : > { %v1817_v11 = vpop.xlane.xlu1 %1816  ;;  %v4619_v27 = vpop.f32.mrb[13].mxu1 }
 0x74c   : > { %v1071_v27 = vld [vmem:[#allocation11 + $0x10] sm:$0xff] }
 0x74e   : > { %v1650_v26 = vpop.f32.mrb[14].mxu1  ;;  %v1320_v30 = vpop.xlane.xlu0 %1319 }
 0x74f   : > { %v1667_v21 = vmul.f32 %v5399_v18, %v1650_v26  ;;  %5404 = vrcp.f32 %v1320_v30  ;;  %v1317_v32 = vpop.xlane.xlu1 %1316  ;;  %v4643_v34 = vpop.f32.mrb[15].mxu1  ;;  %v1072_v26 = vld [vmem:[#allocation11 + $0x18] sm:$0xff] }
 0x750   : > { %5406 = vrcp.f32 %v1317_v32  ;;  %v5030_v30 = vpack.c.bf16 %v1072_v26, %v1071_v27  ;;  %v4323_v27 = vld [vmem:[#allocation13] ss:$0 sm:$0xff] }
 0x751   : > { %1673 = vrot.lane.b32.xlu0 %v1667_v21, %s7058_s26  ;;  %v5403_v22 = vpop.eup %5402 }
 0x752   : > { %v1655_v37 = vpop.f32.mrb[16].mxu1 }
 0x753   : > { %v1668_v39 = vmul.f32 %v5401_v35, %v1655_v37  ;;  %v1323_v40 = vpop.xlane.xlu1 %1322  ;;  %v4646_v41 = vpop.f32.mrb[17].mxu1 }
 0x754   : > { %5408 = vrcp.f32 %v1323_v40 }
 0x755   : > { %1675 = vrot.lane.b32.xlu0 %v1668_v39, %s7058_s26  ;;  %5410 = vrcp.f32 %v1811_v63 }
 0x756   : > { %5412 = vrcp.f32 %v1814_v12 }
 0x757   : > { %v1660_v42 = vpop.f32.mrb[18].mxu1  ;;  %5414 = vrcp.f32 %v1817_v11  ;;  %v1070_v11 = vld [vmem:[#allocation11 + $0x8] sm:$0xff] }
 0x758   : > { %v6471_v43 = vmul.f32 %v5403_v22, %v1660_v42  ;;  %v4649_v33 = vpop.f32.mrb[19].mxu1  ;;  %5416 = vrcp.f32 %v2077_v55 }
 0x759   : > { %v5405_v44 = vpop.eup %5404  ;;  %5418 = vrcp.f32 %v2080_v19 }
 0x75a   : > { %v5407_v45 = vpop.eup %5406  ;;  %v1428_v46 = vmul.f32 %v5405_v44, %v1415_v15  ;;  %5420 = vrcp.f32 %v6467_v25  ;;  %v1069_v25 = vld [vmem:[#allocation11] sm:$0xff] }
 0x75b   : > { %v1427_v47 = vmul.f32 %v5407_v45, %v1410_v10  ;;  %v5027_v18 = vpack.c.bf16 %v1070_v11, %v1069_v25  ;;  %v1073_v44 = vld [vmem:[#allocation11 + $0x20] sm:$0xff]  ;;  %v1074_v45 = vld [vmem:[#allocation11 + $0x28] sm:$0xff] }
 0x75c   : > { %1431 = vst.msk [vmem:[#allocation4 + $0x8] sm:$0xff] %vm1199_vm6, %v1428_v46  ;;  %v5033_v46 = vpack.c.bf16 %v1074_v45, %v1073_v44  ;;  %v4337_v25 = vld [vmem:[%s7025_s7 + $0x90] sm:$0xff] }
 0x75d   : > { %1430 = vst.msk [vmem:[#allocation4] sm:$0xff] %vm1199_vm6, %v1427_v47  ;;  %5028 = vmatpush3.bf16.msra.mxu1 %v5027_v18  ;;  %v4319_v47 = vld [vmem:[#allocation10] ss:$0 sm:$0xff] }
 0x75e   : > { %v5409_v51 = vpop.eup %5408  ;;  %5029 = vmatprep.subr.bf16.mxu1 %v5762_v5 }
 0x75f   : > { %v1429_v52 = vmul.f32 %v5409_v51, %v1420_v24  ;;  %v5411_v53 = vpop.eup %5410 }
 0x760   : > { %v5413_v16 = vpop.eup %5412 }
 0x761   : > { %1433 = vst.msk [vmem:[#allocation4 + $0x10] sm:$0x1] %vm1432_vm12, %v1429_v52  ;;  %v5415_v1 = vpop.eup %5414  ;;  %5031 = vmatpush3.bf16.msra.mxu1 %v5030_v30 }
 0x762   : > { %v5417_v6 = vpop.eup %5416  ;;  %5032 = vmatprep.subr.bf16.mxu1 %v5762_v5 }
 0x763   : > { %v5419_v12 = vpop.eup %5418 }
 0x764   : > { %v5421_v17 = vpop.eup %5420 }
 0x765   : > { %5034 = vmatpush3.bf16.msra.mxu1 %v5033_v46 }
 0x766   : > { %v1916_v54 = vpop.f32.mrb[20].mxu1 }
 0x767   : > { %v1933_v8 = vmul.f32 %v5411_v53, %v1916_v54  ;;  %v4673_v13 = vpop.f32.mrb[21].mxu1 }
 0x769   : > { %1939 = vrot.lane.b32.xlu1 %v1933_v8, %s7056_s16  ;;  %v5482_v8 = vld [vmem:[#allocation3 + $0x8] sm:$0xff] }
 0x787   : > { %v1921_v36 = vpop.f32.mrb[22].mxu1 }
 0x788   : > { %v1934_v20 = vmul.f32 %v5413_v16, %v1921_v36  ;;  %v4676_v56 = vpop.f32.mrb[23].mxu1  ;;  %v1075_v36 = vld [vmem:[%s7031_s13] sm:$0xff] }
 0x78b   : > { %v1926_v3 = vpop.f32.mrb[24].mxu1 }
 0x78c   : > { %v1935_v4 = vmul.f32 %v5415_v1, %v1926_v3  ;;  %v4679_v7 = vpop.f32.mrb[25].mxu1  ;;  %v1079_v1 = vld [vmem:[%s7031_s13 + $0x20] sm:$0xff]  ;;  %v1080_v3 = vld [vmem:[%s7031_s13 + $0x28] sm:$0xff] }
 0x78d   : > { %v1081_v7 = vld [vmem:[%s7031_s13 + $0x30] sm:$0xff] }
 0x78f   : > { %v2169_v9 = vpop.f32.mrb[26].mxu1 }
 0x790   : > { %v2186_v55 = vmul.f32 %v5417_v6, %v2169_v9  ;;  %v4703_v10 = vpop.f32.mrb[27].mxu1  ;;  %v1082_v6 = vld [vmem:[%s7031_s13 + $0x38] sm:$0xff] }
 0x791   : > { %v5045_v9 = vpack.c.bf16 %v1082_v6, %v1081_v7  ;;  %v4334_v10 = vld [vmem:[%s7025_s7 + $0x78] sm:$0xff]  ;;  %v4339_v7 = vld [vmem:[%s7025_s7 + $0xa0] sm:$0xff]  ;;  %v4341_v6 = vld [vmem:[%s7025_s7 + $0xb0] sm:$0xff] }
 0x792   : > { %2192 = vrot.lane.b32.xlu1 %v2186_v55, %s7054_s25  ;;  %v4332_v55 = vld [vmem:[%s7025_s7 + $0x68] sm:$0xff] }
 0x793   : > { %v2174_v63 = vpop.f32.mrb[28].mxu1 }
 0x794   : > { %v2187_v14 = vmul.f32 %v5419_v12, %v2174_v63  ;;  %v4706_v15 = vpop.f32.mrb[29].mxu1  ;;  %v4331_v12 = vld [vmem:[%s7025_s7 + $0x60] sm:$0xff]  ;;  %v5047_v63 = vpack.c.bf16 %v4334_v10, %v4332_v55 }
 0x795   : > { %v4336_v15 = vld [vmem:[%s7025_s7 + $0x88] sm:$0xff]  ;;  %v4330_v10 = vld [vmem:[%s7105_s30] ss:$0 sm:$0xff] }
 0x796   : > { %1941 = vrot.lane.b32.xlu1 %v1934_v20, %s7056_s16  ;;  %2194 = vrot.lane.b32.xlu0 %v2187_v14, %s7054_s25  ;;  %v1076_v20 = vld [vmem:[%s7031_s13 + $0x8] sm:$0xff]  ;;  %v4333_v14 = vld [vmem:[%s7025_s7 + $0x70] sm:$0xff] }
 0x797   : > { %v2179_v19 = vpop.f32.mrb[30].mxu1  ;;  %v5036_v56 = vpack.c.bf16 %v1076_v20, %v1075_v36  ;;  %5048 = vmatprep.subr.bf16.mxu1 %v5047_v63 }
 0x798   : > { %v2188_v23 = vmul.f32 %v5421_v17, %v2179_v19  ;;  %v4709_v24 = vpop.f32.mrb[31].mxu1  ;;  %v4338_v17 = vld [vmem:[%s7025_s7 + $0x98] sm:$0xff]  ;;  %v5049_v19 = vpack.c.bf16 %v4333_v14, %v4331_v12 }
 0x799   : > { %v4335_v24 = vld [vmem:[%s7025_s7 + $0x80] sm:$0xff] }
 0x79a   : > { %1677 = vrot.lane.b32.xlu1 %v6471_v43, %s7058_s26  ;;  %1943 = vrot.lane.b32.xlu0 %v1935_v4, %s7056_s16  ;;  %v5042_v4 = vpack.c.bf16 %v1080_v3, %v1079_v1  ;;  %v5053_v11 = vpack.c.bf16 %v4337_v25, %v4335_v24  ;;  %v4340_v1 = vld [vmem:[%s7025_s7 + $0xa8] sm:$0xff]  ;;  %v4342_v3 = vld [vmem:[%s7025_s7 + $0xb8] sm:$0xff]  ;;  %s7112_s26 = smov 12   ;;  %s7115_s16 = sld [smem:[#allocation33_spill]] }
 0x79e   : > { %2196 = vrot.lane.b32.xlu1 %v2188_v23, %s7054_s25  ;;  %v5051_v23 = vpack.c.bf16 %v4338_v17, %v4336_v15 }
 0x7c3   : > { %v1674_v21 = vpop.permute.xlu0 %1673 }
 0x7c4   : > { %1683 = vst.msk [vmem:[#allocation4] sm:$0xff] %vm1682_vm13, %v1674_v21 }
 0x7c7   : > { %v1676_v32 = vpop.permute.xlu0 %1675 }
 0x7c8   : > { %1684 = vst.msk [vmem:[#allocation4 + $0x8] sm:$0xff] %vm1682_vm13, %v1676_v32 }
 0x7db   : > { %v1940_v34 = vpop.permute.xlu1 %1939 }
 0x7dc   : > { %1949 = vst.msk [vmem:[#allocation4] sm:$0xff] %vm1948_vm14, %v1940_v34 }
 0x804   : > { %v2193_v35 = vpop.permute.xlu1 %2192 }
 0x805   : > { %2202 = vst.msk [vmem:[#allocation4] sm:$0xff] %vm2201_vm15, %v2193_v35 }
 0x808   : > { %v2195_v37 = vpop.permute.xlu0 %2194  ;;  %v1942_v39 = vpop.permute.xlu1 %1941 }
 0x809   : > { %1950 = vst.msk [vmem:[#allocation4 + $0x8] sm:$0xff] %vm1948_vm14, %v1942_v39 }
 0x80a   : > { %2203 = vst.msk [vmem:[#allocation4 + $0x8] sm:$0xff] %vm2201_vm15, %v2195_v37 }
 0x80c   : > { %v1944_v40 = vpop.permute.xlu0 %1943  ;;  %v1678_v41 = vpop.permute.xlu1 %1677  ;;  %v2206_v22 = vld [vmem:[#allocation4] sm:$0xff] }
 0x80d   : > { %1686 = vst.msk [vmem:[#allocation4 + $0x10] sm:$0x1] %vm1685_vm0, %v1678_v41  ;;  %4723 = vmatmul.mubr.msk.f32.vlgmr.msra.gmra.mrb[24].mxu0 %vm1045_vm4, %v2206_v22 }
 0x80e   : > { %1952 = vst.msk [vmem:[#allocation4 + $0x10] sm:$0x1] %vm1951_vm1, %v1944_v40  ;;  %4725 = vmatprep.mubr.msk.f32.mxu0 %vm5765_vm5, %v5744_v2  ;;  %5037 = vmatpush3.bf16.msra.mxu0 %v5036_v56 }
 0x80f   : > { %5038 = vmatprep.subr.bf16.mxu0 %v5762_v5 }
 0x810   : > { %v2197_v42 = vpop.permute.xlu1 %2196 }
 0x811   : > { %2205 = vst.msk [vmem:[#allocation4 + $0x10] sm:$0x1] %vm2204_vm2, %v2197_v42  ;;  %v2207_v43 = vld [vmem:[#allocation4 + $0x8] sm:$0xff] }
 0x812   : > { %4726 = vmatmul.mubr.msk.f32.gmra.mrb[26].mxu0 %vm1045_vm4, %v2207_v43 }
 0x813   : > { %4728 = vmatprep.mubr.msk.f32.mxu0 %vm5765_vm5, %v5744_v2  ;;  %5040 = vmatpush3.bf16.msra.mxu0 %v5039_v60 }
 0x814   : > { %5041 = vmatprep.subr.bf16.mxu0 %v5762_v5 }
 0x817   : > { %5043 = vmatpush3.bf16.msra.mxu0 %v5042_v4  ;;  %v5055_v4 = vpack.c.bf16 %v4342_v3, %v4340_v1 }
 0x818   : > { %v2208_v33 = vld [vmem:[#allocation4 + $0x10] sm:$0x1]  ;;  %5044 = vmatprep.subr.bf16.mxu0 %v5762_v5 }
 0x819   : > { %4729 = vmatmul.mubr.msk.f32.gmra.mrb[28].mxu0 %vm1045_vm4, %v2208_v33 }
 0x81a   : > { %4768 = vmatprep.mubr.msk.f32.mxu0 %vm5765_vm5, %v5744_v2 }
 0x81b   : > { %5046 = vmatpush3.bf16.msra.mxu0 %v5045_v9  ;;  %v5057_v9 = vpack.c.bf16 %v4341_v6, %v4339_v7 }
 0x81c   : > { %5059 = vmatprep.subr.bf16.mxu0 %v5762_v5 }
 0x8e0   : > { %v2291_v48 = vpop.f32.mrb[24].mxu0 }
 0x8e1   : > { %v2292_v49 = vadd.f32 %v4319_v47, %v2291_v48  ;;  %v4724_v50 = vpop.f32.mrb[25].mxu0 }
 0x8e3   : > { %v6509_v51 = vadd.f32 %v2292_v49, %v6209_v57 }
 0x8e5   : > { %v2296_v52 = vpop.f32.mrb[26].mxu0  ;;  %4744 = vmatmul.mubr.msk.f32.vlgmr.msra.gmra.mrb[32].mxu1 %vm1045_vm4, %v6509_v51 }
 0x8e6   : > { %v2297_v53 = vadd.f32 %v4319_v47, %v2296_v52  ;;  %v4727_v54 = vpop.f32.mrb[27].mxu0  ;;  %4746 = vmatprep.mubr.msk.f32.mxu1 %vm5765_vm5, %v5744_v2  ;;  %5050 = vmatpush1.bf16.msra.mxu1 %v5049_v19 }
 0x8e7   : > { %5052 = vmatprep.subr.bf16.mxu1 %v5051_v23 }
 0x8e8   : > { %v6515_v13 = vadd.f32 %v5482_v8, %v2297_v53 }
 0x8ea   : > { %4747 = vmatmul.mubr.msk.f32.gmra.mrb[34].mxu1 %vm1045_vm4, %v6515_v13 }
 0x8eb   : > { %4749 = vmatprep.mubr.msk.f32.mxu1 %vm5765_vm5, %v5744_v2  ;;  %5054 = vmatpush1.bf16.msra.mxu1 %v5053_v11 }
 0x8ec   : > { %v2301_v57 = vpop.f32.mrb[28].mxu0  ;;  %5056 = vmatprep.subr.bf16.mxu1 %v5055_v4 }
 0x8ed   : > { %v2302_v31 = vadd.f32 %v4319_v47, %v2301_v57  ;;  %v4730_v28 = vpop.f32.mrb[29].mxu0 }
 0x8ef   : > { %v6521_v16 = vadd.f32 %v5483_v38, %v2302_v31  ;;  %5058 = vmatpush1.bf16.msra.mxu1 %v5057_v9 }
 0x8f0   : > { %5063 = vmatprep.subr.bf16.mxu1 %v5762_v5 }
 0x8f1   : > { %4750 = vmatmul.mubr.msk.f32.gmra.mrb[36].mxu1 %vm1045_vm4, %v6521_v16 }
 0x8f2   : > { %2656 = vmatprep.mubr.f32.mxu1 %v5744_v2 }
 0x9b8   : > { %v2390_v18 = vpop.f32.mrb[32].mxu1 }
 0x9b9   : > { %v2391_v26 = vadd.f32 %v4323_v27, %v2390_v18  ;;  %v4745_v30 = vpop.f32.mrb[33].mxu1 }
 0x9bb   : > { %v2407_v21 = vmul.f32 0.044715, %v2391_v26  ;;  %v2404_v8 = vmul.f32 0.5, %v2391_v26 }
 0x9bd   : > { %v2410_v32 = vmul.f32 %v2407_v21, %v2391_v26  ;;  %v2395_v34 = vpop.f32.mrb[34].mxu1 }
 0x9be   : > { %v2396_v35 = vadd.f32 %v4323_v27, %v2395_v34  ;;  %v4748_v37 = vpop.f32.mrb[35].mxu1 }
 0x9bf   : > { %v2413_v39 = vmul.f32 %v2410_v32, %v2391_v26 }
 0x9c0   : > { %v2408_v40 = vmul.f32 0.044715, %v2396_v35  ;;  %v2405_v38 = vmul.f32 0.5, %v2396_v35 }
 0x9c1   : > { %v2416_v41 = vadd.f32 %v2413_v39, %v2391_v26 }
 0x9c2   : > { %v2411_v22 = vmul.f32 %v2408_v40, %v2396_v35 }
 0x9c3   : > { %v2419_v42 = vmul.f32 0.7978846, %v2416_v41 }
 0x9c4   : > { %v2414_v43 = vmul.f32 %v2411_v22, %v2396_v35  ;;  %v2400_v33 = vpop.f32.mrb[36].mxu1 }
 0x9c5   : > { %5422 = vtanh.f32 %v2419_v42  ;;  %v2401_v44 = vadd.f32 %v4323_v27, %v2400_v33  ;;  %v4751_v45 = vpop.f32.mrb[37].mxu1 }
 0x9c6   : > { %v2417_v46 = vadd.f32 %v2414_v43, %v2396_v35 }
 0x9c7   : > { %v2409_v47 = vmul.f32 0.044715, %v2401_v44  ;;  %v2406_v58 = vmul.f32 0.5, %v2401_v44 }
 0x9c8   : > { %v2420_v48 = vmul.f32 0.7978846, %v2417_v46 }
 0x9c9   : > { %v2412_v49 = vmul.f32 %v2409_v47, %v2401_v44 }
 0x9ca   : > { %5424 = vtanh.f32 %v2420_v48 }
 0x9cb   : > { %v2415_v50 = vmul.f32 %v2412_v49, %v2401_v44 }
 0x9cd   : > { %v2418_v52 = vadd.f32 %v2415_v50, %v2401_v44 }
 0x9cf   : > { %v5423_v53 = vpop.eup %5422  ;;  %v2421_v54 = vmul.f32 0.7978846, %v2418_v52 }
 0x9d0   : > { %v2425_v57 = vadd.f32 1.0, %v5423_v53 }
 0x9d1   : > { %5426 = vtanh.f32 %v2421_v54 }
 0x9d2   : > { %v2428_v31 = vmul.f32 %v2425_v57, %v2404_v8 }
 0x9d4   : > { %v5425_v28 = vpop.eup %5424  ;;  %4769 = vmatmul.mubr.msk.f32.vlgmr.msra.gmra.mrb[30].mxu0 %vm2431_vm3, %v2428_v31 }
 0x9d5   : > { %4771 = vmatprep.mubr.msk.f32.mxu0 %vm5765_vm5, %v5744_v2  ;;  %v2426_v36 = vadd.f32 1.0, %v5425_v28 }
 0x9d7   : > { %v2429_v20 = vmul.f32 %v2426_v36, %v2405_v38 }
 0x9d9   : > { %4772 = vmatmul.mubr.msk.f32.gmra.mrb[32].mxu0 %vm2431_vm3, %v2429_v20 }
 0x9da   : > { %4774 = vmatprep.mubr.msk.f32.mxu0 %vm5765_vm5, %v5744_v2 }
 0x9db   : > { %v5427_v56 = vpop.eup %5426 }
 0x9dc   : > { %v2427_v59 = vadd.f32 1.0, %v5427_v56 }
 0x9de   : > { %v2430_v60 = vmul.f32 %v2427_v59, %v2406_v58 }
 0x9e0   : > { %4775 = vmatmul.mubr.msk.f32.gmra.mrb[34].mxu0 %vm2431_vm3, %v2430_v60 }
 0x9e1   : > { %4783 = vmatprep.mubr.msk.f32.mxu0 %vm5765_vm5, %v5744_v2 }
 0xaa7   : > { %v2507_v55 = vpop.f32.mrb[30].mxu0 }
 0xaa8   : > { %v2521_v12 = vadd.f32 %v2507_v55, %v6509_v51  ;;  %v4770_v63 = vpop.f32.mrb[31].mxu0 }
 0xaaa   : > { %v6604_v14 = vadd.f32 %v4330_v10, %v2521_v12 }
 0xaac   : > { %v2512_v15 = vpop.f32.mrb[32].mxu0  ;;  %4352 = vmatmul.mubr.msk.f32.vlgmr.msra.gmra.mrb[38].mxu1 %vm1045_vm4, %v6604_v14 }
 0xaad   : > { %v2522_v17 = vadd.f32 %v2512_v15, %v6515_v13  ;;  %v4773_v19 = vpop.f32.mrb[33].mxu0  ;;  %2662 = vmatprep.mubr.f32.mxu1 %v5744_v2  ;;  %v4351_v13 = vld [vmem:[%s7026_s8 + $0x2] sm:$0x3] }
 0xaae   : > { %v2576_v27 = vrot.slane %v4351_v13, %v1087_v62  ;;  %v2580_v18 = vrot.slane %v4351_v13, %v1091_v0 }
 0xaaf   : > { %v6610_v23 = vadd.f32 %v4330_v10, %v2522_v17 }
 0xab1   : > { %4353 = vmatmul.mubr.msk.f32.gmra.mrb[40].mxu1 %vm1045_vm4, %v6610_v23 }
 0xab2   : > { %2668 = vmatprep.mubr.f32.mxu1 %v5744_v2 }
 0xab3   : > { %v2517_v51 = vpop.f32.mrb[34].mxu0 }
 0xab4   : > { %v2523_v24 = vadd.f32 %v2517_v51, %v6521_v16  ;;  %v4776_v25 = vpop.f32.mrb[35].mxu0 }
 0xab6   : > { %v6616_v11 = vadd.f32 %v4330_v10, %v2523_v24 }
 0xab8   : > { %4354 = vmatmul.mubr.msk.f32.gmra.mrb[42].mxu1 %vm1045_vm4, %v6616_v11 }
 0xab9   : > { %4798 = vmatprep.mubr.msk.f32.mxu1 %vm5765_vm5, %v5744_v2 }
 0xb7f   : > { %v2658_v16 = vpop.f32.mrb[38].mxu1 }
 0xb80   : > { %v2659_v26 = vadd.f32 %v2658_v16, %v2576_v27  ;;  %v2660_v30 = vpop.f32.mrb[39].mxu1 }
 0xb81   : > { %v6629_v21 = vadd.f32 %v2660_v30, %v2580_v18 }
 0xb82   : > { %v2675_v33 = vmul.f32 0.28867513, %v2659_v26 }
 0xb83   : > { %v5353_v32 = vpack.i.bf16 %v6629_v21, %v2659_v26 }
 0xb84   : > { %v2664_v34 = vpop.f32.mrb[40].mxu1 }
 0xb85   : > { %v2665_v35 = vadd.f32 %v2664_v34, %v2576_v27  ;;  %v2666_v37 = vpop.f32.mrb[41].mxu1 }
 0xb86   : > { %v6632_v39 = vadd.f32 %v2666_v37, %v2580_v18 }
 0xb87   : > { %v5323_v40 = vpack.i.bf16 %v2665_v35, %v2659_v26  ;;  %v2676_v43 = vmul.f32 0.28867513, %v2665_v35 }
 0xb88   : > { %v5363_v41 = vpack.i.bf16 %v6632_v39, %v6629_v21  ;;  %v5358_v62 = vpack.i.bf16 %v6632_v39, %v2665_v35 }
 0xb89   : > { %5324 = vrot.lane.b32.xlu0 %v5323_v40, %s5764_s1 }
 0xb8b   : > { %v2670_v61 = vpop.f32.mrb[42].mxu1 }
 0xb8c   : > { %v6638_v0 = vadd.f32 %v2670_v61, %v2576_v27  ;;  %v2672_v22 = vpop.f32.mrb[43].mxu1 }
 0xb8d   : > { %v6640_v42 = vadd.f32 %v2672_v22, %v2580_v18  ;;  %5329 = vrot.lane.b32.xlu0 %v5323_v40, %s5767_s17 }
 0xb8e   : > { %2685 = vrot.lane.b32.xlu1 %v6638_v0, %s5764_s1  ;;  %v2677_v44 = vmul.f32 0.28867513, %v6638_v0  ;;  %s7106_s1 = smov 44  }
 0xb91   : > { %5334 = vrot.lane.b32.xlu0 %v5323_v40, %s5769_s19 }
 0xb92   : > { %2927 = vrot.lane.b32.xlu1 %v6638_v0, %s5767_s17  ;;  %s7107_s17 = smov 92  }
 0xb95   : > { %2919 = vrot.lane.b32.xlu0 %v2676_v43, %s5770_s24 }
 0xb96   : > { %2917 = vrot.lane.b32.xlu1 %v2675_v33, %s5770_s24 }
 0xb99   : > { %3178 = vrot.lane.b32.xlu0 %v6638_v0, %s5769_s19  ;;  %s7108_s19 = smov 32  }
 0xb9a   : > { %2921 = vrot.lane.b32.xlu1 %v2677_v44, %s5770_s24  ;;  %s7109_s24 = smov 20  }
 0xb9d   : > { %3168 = vrot.lane.b32.xlu0 %v2675_v33, %s5771_s20 }
 0xb9e   : > { %5339 = vrot.lane.b32.xlu1 %v5323_v40, %s7106_s1 }
 0xba1   : > { %3172 = vrot.lane.b32.xlu0 %v2677_v44, %s5771_s20 }
 0xba2   : > { %3170 = vrot.lane.b32.xlu1 %v2676_v43, %s5771_s20  ;;  %s7110_s20 = smov 8  }
 0xba5   : > { %3431 = vrot.lane.b32.xlu0 %v2675_v33, %s7107_s17 }
 0xba6   : > { %3441 = vrot.lane.b32.xlu1 %v6638_v0, %s7106_s1  ;;  %s7118_s1 = sld [smem:[#allocation34_spill]] }
 0xba9   : > { %3435 = vrot.lane.b32.xlu0 %v2677_v44, %s7107_s17 }
 0xbaa   : > { %3433 = vrot.lane.b32.xlu1 %v2676_v43, %s7107_s17 }
 0xbac   : > { %s6972_s17 = scalar_lea.hbm %s7118_s1, %s4419_s0 }
 0xbad   : > { %5344 = vrot.lane.b32.xlu0 %v5323_v40, %s7108_s19 }
 0xbae   : > { %2813 = vrot.lane.b32.xlu1 %v6638_v0, %s7108_s19 }
 0xbb1   : > { %5349 = vrot.lane.b32.xlu0 %v5323_v40, %s7109_s24 }
 0xbb2   : > { %3052 = vrot.lane.b32.xlu1 %v6638_v0, %s7109_s24  ;;  %s5777_s24 = smov [#allocation16]  }
 0xbb6   : > { %5354 = vrot.lane.b32.xlu1 %v5353_v32, %s7110_s20 }
 0xbba   : > { %5359 = vrot.lane.b32.xlu1 %v5358_v62, %s7110_s20 }
 0xbfb   : > { %v5325_v45 = vpop.permute.xlu0 %5324 }
 0xbfc   : > { %v5327_v46 = vunpack.i.h.bf16 %v5325_v45  ;;  %v5326_v47 = vunpack.i.l.bf16 %v5325_v45 }
 0xbfe   : > { %v5060_v48 = vpack.c.bf16 %v5327_v46, %v5326_v47 }
 0xbff   : > { %v5330_v49 = vpop.permute.xlu0 %5329 }
 0xc00   : > { %5062 = vmatpush3.bf16.xpose.msk.msra.mxu0 %vm6278_vm7, %v5060_v48  ;;  %v2686_v50 = vpop.permute.xlu1 %2685  ;;  %v5332_v54 = vunpack.i.h.bf16 %v5330_v49  ;;  %v5331_v8 = vunpack.i.l.bf16 %v5330_v49 }
 0xc01   : > { %4781 = vmatprep.subr.mxu0 %v5744_v2 }
 0xc02   : > { %v5067_v28 = vpack.c.bf16 %v5332_v54, %v5331_v8 }
 0xc03   : > { %v5335_v52 = vpop.permute.xlu0 %5334 }
 0xc04   : > { %v2928_v53 = vpop.permute.xlu1 %2927  ;;  %v5337_v58 = vunpack.i.h.bf16 %v5335_v52  ;;  %v5336_v59 = vunpack.i.l.bf16 %v5335_v52 }
 0xc06   : > { %v5074_v3 = vpack.c.bf16 %v5337_v58, %v5336_v59 }
 0xc07   : > { %v2920_v57 = vpop.permute.xlu0 %2919 }
 0xc08   : > { %4782 = vmatpush3.xpose.msk.msra.mxu0 %vm1199_vm6, %v2686_v50  ;;  %v2918_v31 = vpop.permute.xlu1 %2917 }
 0xc09   : > { %5066 = vmatprep.subr.bf16.mxu0 %v5762_v5 }
 0xc0b   : > { %v3179_v38 = vpop.permute.xlu0 %3178  ;;  %4784 = vmatmul.mubr.msk.f32.vlgmr.msra.gmra.mrb[36].mxu0 %vm1199_vm6, %v2675_v33 }
 0xc0c   : > { %5069 = vmatpush3.bf16.xpose.msk.msra.mxu0 %vm6278_vm7, %v5067_v28  ;;  %v2922_v36 = vpop.permute.xlu1 %2921  ;;  %4786 = vmatprep.mubr.msk.f32.mxu0 %vm5765_vm5, %v5744_v2 }
 0xc0d   : > { %4811 = vmatprep.subr.mxu0 %v5744_v2 }
 0xc0f   : > { %v3169_v20 = vpop.permute.xlu0 %3168  ;;  %4787 = vmatmul.mubr.msk.f32.gmra.mrb[38].mxu0 %vm1199_vm6, %v2676_v43 }
 0xc10   : > { %v5340_v56 = vpop.permute.xlu1 %5339  ;;  %4789 = vmatprep.mubr.msk.f32.mxu0 %vm5765_vm5, %v5744_v2 }
 0xc11   : > { %v5342_v9 = vunpack.i.h.bf16 %v5340_v56  ;;  %v5341_v55 = vunpack.i.l.bf16 %v5340_v56 }
 0xc13   : > { %v3173_v60 = vpop.permute.xlu0 %3172  ;;  %4790 = vmatmul.mubr.msk.f32.gmra.mrb[40].mxu0 %vm1199_vm6, %v2677_v44  ;;  %v5081_v17 = vpack.c.bf16 %v5342_v9, %v5341_v55 }
 0xc14   : > { %4812 = vmatpush3.xpose.msk.msra.mxu0 %vm1199_vm6, %v2928_v53  ;;  %4813 = vmatprep.mubr.msk.f32.mxu0 %vm5765_vm5, %v5744_v2  ;;  %v3171_v1 = vpop.permute.xlu1 %3170 }
 0xc15   : > { %5073 = vmatprep.subr.bf16.mxu0 %v5762_v5 }
 0xc17   : > { %v3432_v4 = vpop.permute.xlu0 %3431  ;;  %4814 = vmatmul.mubr.msk.f32.vlgmr.msra.gmra.mrb[42].mxu0 %vm1199_vm6, %v2918_v31 }
 0xc18   : > { %5076 = vmatpush3.bf16.xpose.msk.msra.mxu0 %vm6278_vm7, %v5074_v3  ;;  %4816 = vmatprep.mubr.msk.f32.mxu0 %vm5765_vm5, %v5744_v2  ;;  %v3442_v7 = vpop.permute.xlu1 %3441 }
 0xc19   : > { %4841 = vmatprep.subr.mxu0 %v5744_v2 }
 0xc1b   : > { %v3436_v6 = vpop.permute.xlu0 %3435  ;;  %4817 = vmatmul.mubr.msk.f32.gmra.mrb[44].mxu0 %vm1199_vm6, %v2920_v57 }
 0xc1c   : > { %4819 = vmatprep.mubr.msk.f32.mxu0 %vm5765_vm5, %v5744_v2  ;;  %v3434_v15 = vpop.permute.xlu1 %3433 }
 0xc1f   : > { %v5345_v10 = vpop.permute.xlu0 %5344  ;;  %4820 = vmatmul.mubr.msk.f32.gmra.mrb[46].mxu0 %vm1199_vm6, %v2922_v36 }
 0xc20   : > { %v5347_v12 = vunpack.i.h.bf16 %v5345_v10  ;;  %v5346_v63 = vunpack.i.l.bf16 %v5345_v10  ;;  %4842 = vmatpush3.xpose.msk.msra.mxu0 %vm1199_vm6, %v3179_v38  ;;  %4843 = vmatprep.mubr.msk.f32.mxu0 %vm5765_vm5, %v5744_v2  ;;  %v2814_v51 = vpop.permute.xlu1 %2813 }
 0xc21   : > { %5080 = vmatprep.subr.bf16.mxu0 %v5762_v5 }
 0xc22   : > { %v5064_v19 = vpack.c.bf16 %v5347_v12, %v5346_v63 }
 0xc23   : > { %4844 = vmatmul.mubr.msk.f32.vlgmr.msra.gmra.mrb[48].mxu0 %vm1199_vm6, %v3169_v20  ;;  %v5350_v59 = vpop.permute.xlu0 %5349 }
 0xc24   : > { %5065 = vmatpush3.bf16.msra.mxu1 %v5064_v19  ;;  %5083 = vmatpush3.bf16.xpose.msk.msra.mxu0 %vm6278_vm7, %v5081_v17  ;;  %v3053_v20 = vpop.permute.xlu1 %3052  ;;  %v5352_v10 = vunpack.i.h.bf16 %v5350_v59  ;;  %v5351_v21 = vunpack.i.l.bf16 %v5350_v59 }
 0xc25   : > { %4846 = vmatprep.mubr.msk.f32.mxu0 %vm5765_vm5, %v5744_v2  ;;  %4796 = vmatprep.subr.mxu1 %v5744_v2 }
 0xc26   : > { %4871 = vmatprep.subr.mxu0 %v5744_v2  ;;  %v5071_v63 = vpack.c.bf16 %v5352_v10, %v5351_v21 }
 0xc27   : > { %4847 = vmatmul.mubr.msk.f32.gmra.mrb[50].mxu0 %vm1199_vm6, %v3171_v1 }
 0xc28   : > { %4797 = vmatpush3.msk.msra.mxu1 %vm1341_vm8, %v2814_v51  ;;  %4849 = vmatprep.mubr.msk.f32.mxu0 %vm5765_vm5, %v5744_v2  ;;  %v5355_v56 = vpop.permute.xlu1 %5354 }
 0xc29   : > { %5070 = vmatprep.subr.bf16.mxu1 %v5762_v5 }
 0xc2b   : > { %4850 = vmatmul.mubr.msk.f32.gmra.mrb[52].mxu0 %vm1199_vm6, %v3173_v60 }
 0xc2c   : > { %4872 = vmatpush3.xpose.msk.msra.mxu0 %vm1199_vm6, %v3442_v7  ;;  %4873 = vmatprep.mubr.msk.f32.mxu0 %vm5765_vm5, %v5744_v2  ;;  %v5360_v58 = vpop.permute.xlu1 %5359 }
 0xc2d   : > { %5087 = vmatprep.subr.bf16.mxu0 %v5762_v5 }
 0xc2f   : > { %4874 = vmatmul.mubr.msk.f32.vlgmr.msra.gmra.mrb[54].mxu0 %vm1199_vm6, %v3432_v4 }
 0xc30   : > { %4876 = vmatprep.mubr.msk.f32.mxu0 %vm5765_vm5, %v5744_v2 }
 0xc33   : > { %4877 = vmatmul.mubr.msk.f32.gmra.mrb[56].mxu0 %vm1199_vm6, %v3434_v15 }
 0xc34   : > { %4879 = vmatprep.mubr.msk.f32.mxu0 %vm5765_vm5, %v5744_v2 }
 0xc37   : > { %4880 = vmatmul.mubr.msk.f32.gmra.mrb[58].mxu0 %vm1199_vm6, %v3436_v6 }
 0xc38   : > { %4909 = vmatprep.mubr.msk.f32.mxu0 %vm5765_vm5, %v5744_v2 }
 0xcde   : > { %v2768_v29 = vpop.f32.mrb[36].mxu0 }
 0xcdf   : > { %v4785_v24 = vpop.f32.mrb[37].mxu0  ;;  %v2782_v25 = vsel %vm1295_vm9, %v2768_v29, -inf }
 0xce0   : > { %2783 = vmax.xlane.f32.xlu1 %v2782_v25  ;;  %v5362_v24 = vunpack.i.h.bf16 %v5360_v58  ;;  %v5361_v25 = vunpack.i.l.bf16 %v5360_v58 }
 0xce2   : > { %v2773_v13 = vpop.f32.mrb[38].mxu0 }
 0xce3   : > { %v4788_v27 = vpop.f32.mrb[39].mxu0  ;;  %v2785_v18 = vsel %vm1295_vm9, %v2773_v13, -inf }
 0xce4   : > { %2786 = vmax.xlane.f32.xlu0 %v2785_v18  ;;  %v5357_v18 = vunpack.i.h.bf16 %v5355_v56 }
 0xce6   : > { %v2778_v16 = vpop.f32.mrb[40].mxu0 }
 0xce7   : > { %v4791_v26 = vpop.f32.mrb[41].mxu0  ;;  %v2788_v30 = vsel %vm1302_vm10, %v2778_v16, -inf }
 0xce8   : > { %2789 = vmax.xlane.f32.xlu0 %v2788_v30 }
 0xcea   : > { %v3007_v32 = vpop.f32.mrb[42].mxu0 }
 0xceb   : > { %v4815_v34 = vpop.f32.mrb[43].mxu0  ;;  %v3021_v35 = vsel %vm1295_vm9, %v3007_v32, -inf }
 0xcec   : > { %3022 = vmax.xlane.f32.xlu1 %v3021_v35 }
 0xcee   : > { %v6734_v37 = vpop.f32.mrb[44].mxu0 }
 0xcef   : > { %v4818_v40 = vpop.f32.mrb[45].mxu0  ;;  %v3024_v62 = vsel %vm1295_vm9, %v6734_v37, -inf }
 0xcf0   : > { %3025 = vmax.xlane.f32.xlu0 %v3024_v62 }
 0xcf2   : > { %v6738_v61 = vpop.f32.mrb[46].mxu0 }
 0xcf3   : > { %v4821_v22 = vpop.f32.mrb[47].mxu0  ;;  %v3027_v43 = vsel %vm1302_vm10, %v6738_v61, -inf }
 0xcf4   : > { %3028 = vmax.xlane.f32.xlu1 %v3027_v43 }
 0xcf6   : > { %v6742_v33 = vpop.f32.mrb[48].mxu0 }
 0xcf7   : > { %v4845_v44 = vpop.f32.mrb[49].mxu0  ;;  %v3272_v45 = vsel %vm1295_vm9, %v6742_v33, -inf }
 0xcf8   : > { %3273 = vmax.xlane.f32.xlu1 %v3272_v45 }
 0xcfa   : > { %v6746_v46 = vpop.f32.mrb[50].mxu0 }
 0xcfb   : > { %v4848_v47 = vpop.f32.mrb[51].mxu0  ;;  %v3275_v36 = vsel %vm1295_vm9, %v6746_v46, -inf }
 0xcfe   : > { %v6748_v48 = vpop.f32.mrb[52].mxu0 }
 0xcff   : > { %v4851_v49 = vpop.f32.mrb[53].mxu0  ;;  %v3278_v50 = vsel %vm1302_vm10, %v6748_v48, -inf }
 0xd00   : > { %3279 = vmax.xlane.f32.xlu1 %v3278_v50 }
 0xd02   : > { %v6752_v52 = vpop.f32.mrb[54].mxu0 }
 0xd03   : > { %v4875_v53 = vpop.f32.mrb[55].mxu0  ;;  %v3535_v54 = vsel %vm1295_vm9, %v6752_v52, -inf }
 0xd04   : > { %3536 = vmax.xlane.f32.xlu1 %v3535_v54 }
 0xd06   : > { %3310 = vrot.lane.b32.xlu0 %v6638_v0, %s7110_s20  ;;  %v6758_v8 = vpop.f32.mrb[56].mxu0 }
 0xd07   : > { %v4878_v57 = vpop.f32.mrb[57].mxu0  ;;  %v3538_v0 = vsel %vm1295_vm9, %v6758_v8, -inf }
 0xd0a   : > { %v6760_v31 = vpop.f32.mrb[58].mxu0 }
 0xd0b   : > { %v4881_v28 = vpop.f32.mrb[59].mxu0  ;;  %v3541_v38 = vsel %vm1302_vm10, %v6760_v31, -inf }
 0xd0c   : > { %3542 = vmax.xlane.f32.xlu1 %v3541_v38 }
 0xd1d   : > { %3312 = vrot.lane.b32.xlu1 %v6640_v42, %s7110_s20 }
 0xd25   : > { %3276 = vmax.xlane.f32.xlu0 %v3275_v36 }
 0xd29   : > { %3539 = vmax.xlane.f32.xlu0 %v3538_v0 }
 0xd3f   : > { %5364 = vrot.lane.b32.xlu0 %v5363_v41, %s7111_s29 }
 0xd43   : > { %3566 = vrot.lane.b32.xlu0 %v6640_v42, %s7111_s29  ;;  %s7116_s29 = sld [smem:[#allocation23_spill]] }
 0xd6d   : > { %v2784_v60 = vpop.xlane.xlu1 %2783 }
 0xd6e   : > { %v2791_v1 = vsub.f32 %v2768_v29, %v2784_v60 }
 0xd70   : > { %v2794_v3 = vmul.f32 1.442695, %v2791_v1 }
 0xd71   : > { %v2787_v4 = vpop.xlane.xlu0 %2786 }
 0xd72   : > { %5428 = vpow2.f32 %v2794_v3  ;;  %v2792_v7 = vsub.f32 %v2773_v13, %v2787_v4 }
 0xd74   : > { %v2796_v6 = vmul.f32 1.442695, %v2792_v7 }
 0xd75   : > { %v2790_v9 = vpop.xlane.xlu0 %2789 }
 0xd76   : > { %5430 = vpow2.f32 %v2796_v6  ;;  %v2793_v55 = vsub.f32 %v2778_v16, %v2790_v9  ;;  %v5356_v16 = vunpack.i.l.bf16 %v5355_v56 }
 0xd78   : > { %v2798_v39 = vmul.f32 1.442695, %v2793_v55 }
 0xd79   : > { %v3023_v41 = vpop.xlane.xlu1 %3022 }
 0xd7a   : > { %5432 = vpow2.f32 %v2798_v39  ;;  %v3030_v42 = vsub.f32 %v3007_v32, %v3023_v41  ;;  %v3315_v32 = vsel %vm1833_vm11, %v5361_v25, %v5362_v24 }
 0xd7c   : > { %v6776_v12 = vpop.eup %5428  ;;  %v3033_v15 = vmul.f32 1.442695, %v3030_v42 }
 0xd7d   : > { %4799 = vmatmul.mubr.msk.f32.vlgmr.msra.gmra.mrb[44].mxu1 %vm1295_vm9, %v6776_v12  ;;  %v3026_v17 = vpop.xlane.xlu0 %3025 }
 0xd7e   : > { %5434 = vpow2.f32 %v3033_v15  ;;  %5072 = vmatpush3.bf16.msra.mxu1 %v5071_v63  ;;  %v3031_v19 = vsub.f32 %v6734_v37, %v3026_v17  ;;  %4801 = vmatprep.mubr.msk.f32.mxu1 %vm5765_vm5, %v5744_v2  ;;  %v3314_v37 = vsel %vm1833_vm11, %v5356_v16, %v5357_v18 }
 0xd7f   : > { %4826 = vmatprep.subr.mxu1 %v5744_v2  ;;  %v5078_v62 = vpack.c.bf16 %v3315_v32, %v3314_v37 }
 0xd80   : > { %v6784_v51 = vpop.eup %5430  ;;  %v3035_v29 = vmul.f32 1.442695, %v3031_v19  ;;  %v2800_v19 = vsel %vm1295_vm9, %v6776_v12, 0.0 }
 0xd81   : > { %4802 = vmatmul.mubr.msk.f32.gmra.mrb[46].mxu1 %vm1295_vm9, %v6784_v51  ;;  %v3029_v13 = vpop.xlane.xlu1 %3028  ;;  %v3311_v28 = vpop.permute.xlu0 %3310 }
 0xd82   : > { %5436 = vpow2.f32 %v3035_v29  ;;  %4827 = vmatpush3.msk.msra.mxu1 %vm1341_vm8, %v3053_v20  ;;  %v3032_v27 = vsub.f32 %v6738_v61, %v3029_v13  ;;  %4804 = vmatprep.mubr.msk.f32.mxu1 %vm5765_vm5, %v5744_v2  ;;  %v2803_v29 = vsel %vm1295_vm9, %v6784_v51, 0.0 }
 0xd83   : > { %5077 = vmatprep.subr.bf16.mxu1 %v5762_v5 }
 0xd84   : > { %v6793_v26 = vpop.eup %5432  ;;  %v3037_v30 = vmul.f32 1.442695, %v3032_v27 }
 0xd85   : > { %4805 = vmatmul.mubr.msk.f32.gmra.mrb[48].mxu1 %vm1295_vm9, %v6793_v26  ;;  %v3274_v34 = vpop.xlane.xlu1 %3273  ;;  %v2806_v24 = vsel %vm1302_vm10, %v6793_v26, 0.0 }
 0xd86   : > { %5438 = vpow2.f32 %v3037_v30  ;;  %v3281_v35 = vsub.f32 %v6742_v33, %v3274_v34  ;;  %4828 = vmatprep.mubr.msk.f32.mxu1 %vm5765_vm5, %v5744_v2 }
 0xd88   : > { %v5435_v40 = vpop.eup %5434  ;;  %v3284_v61 = vmul.f32 1.442695, %v3281_v35 }
 0xd89   : > { %4829 = vmatmul.mubr.msk.f32.vlgmr.msra.gmra.mrb[50].mxu1 %vm1295_vm9, %v5435_v40  ;;  %v3039_v22 = vsel %vm1295_vm9, %v5435_v40, 0.0 }
 0xd8a   : > { %5440 = vpow2.f32 %v3284_v61  ;;  %5079 = vmatpush3.bf16.msra.mxu1 %v5078_v62  ;;  %3040 = vadd.xlane.f32.xlu0 %v3039_v22 }
 0xd8b   : > { %4831 = vmatprep.mubr.msk.f32.mxu1 %vm5765_vm5, %v5744_v2  ;;  %4856 = vmatprep.subr.mxu1 %v5744_v2 }
 0xd8c   : > { %v5437_v43 = vpop.eup %5436 }
 0xd8d   : > { %4832 = vmatmul.mubr.msk.f32.gmra.mrb[52].mxu1 %vm1295_vm9, %v5437_v43  ;;  %v3280_v33 = vpop.xlane.xlu1 %3279  ;;  %v3042_v44 = vsel %vm1295_vm9, %v5437_v43, 0.0 }
 0xd8e   : > { %3043 = vadd.xlane.f32.xlu0 %v3042_v44  ;;  %4834 = vmatprep.mubr.msk.f32.mxu1 %vm5765_vm5, %v5744_v2  ;;  %v3283_v20 = vsub.f32 %v6748_v48, %v3280_v33 }
 0xd90   : > { %v5439_v45 = vpop.eup %5438  ;;  %v3288_v1 = vmul.f32 1.442695, %v3283_v20 }
 0xd91   : > { %4835 = vmatmul.mubr.msk.f32.gmra.mrb[54].mxu1 %vm1295_vm9, %v5439_v45  ;;  %v3537_v47 = vpop.xlane.xlu1 %3536  ;;  %v3045_v41 = vsel %vm1302_vm10, %v5439_v45, 0.0 }
 0xd92   : > { %v3544_v49 = vsub.f32 %v6752_v52, %v3537_v47  ;;  %4858 = vmatprep.mubr.msk.f32.mxu1 %vm5765_vm5, %v5744_v2 }
 0xd94   : > { %v5441_v50 = vpop.eup %5440  ;;  %v3547_v53 = vmul.f32 1.442695, %v3544_v49 }
 0xd95   : > { %v3290_v54 = vsel %vm1295_vm9, %v5441_v50, 0.0 }
 0xd96   : > { %5442 = vpow2.f32 %v3547_v53  ;;  %3291 = vadd.xlane.f32.xlu1 %v3290_v54 }
 0xd99   : > { %v3543_v57 = vpop.xlane.xlu1 %3542 }
 0xd9a   : > { %v3546_v59 = vsub.f32 %v6760_v31, %v3543_v57 }
 0xd9c   : > { %v3551_v7 = vmul.f32 1.442695, %v3546_v59  ;;  %v2549_v59 = vld [vmem:[#allocation8 + $0x38] sm:$0xff] }
 0xd9d   : > { %v3313_v38 = vpop.permute.xlu1 %3312 }
 0xd9e   : > { %v3316_v36 = vsel %vm1833_vm11, %v3311_v28, %v3313_v38 }
 0xd9f   : > { %4857 = vmatpush3.msk.msra.mxu1 %vm1341_vm8, %v3316_v36 }
 0xda0   : > { %v5443_v0 = vpop.eup %5442  ;;  %4859 = vmatmul.mubr.msk.f32.vlgmr.msra.gmra.mrb[56].mxu1 %vm1295_vm9, %v5441_v50  ;;  %5084 = vmatprep.subr.bf16.mxu1 %v5762_v5 }
 0xda1   : > { %v3553_v52 = vsel %vm1295_vm9, %v5443_v0, 0.0  ;;  %4861 = vmatprep.mubr.msk.f32.mxu1 %vm5765_vm5, %v5744_v2 }
 0xda2   : > { %3554 = vadd.xlane.f32.xlu0 %v3553_v52 }
 0xdb2   : > { %v3277_v56 = vpop.xlane.xlu0 %3276 }
 0xdb3   : > { %v3282_v58 = vsub.f32 %v6746_v46, %v3277_v56 }
 0xdb5   : > { %v3286_v60 = vmul.f32 1.442695, %v3282_v58  ;;  %v2548_v58 = vld [vmem:[#allocation8 + $0x30] sm:$0xff] }
 0xdb6   : > { %v3540_v3 = vpop.xlane.xlu0 %3539 }
 0xdb7   : > { %5444 = vpow2.f32 %v3286_v60  ;;  %v3545_v4 = vsub.f32 %v6758_v8, %v3540_v3  ;;  %v5088_v60 = vpack.c.bf16 %v2549_v59, %v2548_v58 }
 0xdb8   : > { %5446 = vpow2.f32 %v3288_v1 }
 0xdb9   : > { %v3549_v6 = vmul.f32 1.442695, %v3545_v4  ;;  %5089 = vmatpush3.bf16.msra.mxu0 %v5088_v60 }
 0xdba   : > { %v5365_v9 = vpop.permute.xlu0 %5364  ;;  %5090 = vmatprep.subr.bf16.mxu0 %v5762_v5 }
 0xdbb   : > { %5448 = vpow2.f32 %v3549_v6  ;;  %v5367_v55 = vunpack.i.h.bf16 %v5365_v9  ;;  %v5366_v10 = vunpack.i.l.bf16 %v5365_v9 }
 0xdbc   : > { %5450 = vpow2.f32 %v3551_v7 }
 0xdbd   : > { %v5085_v48 = vpack.c.bf16 %v5367_v55, %v5366_v10  ;;  %v2550_v55 = vld [vmem:[#allocation8 + $0x40] sm:$0xff]  ;;  %v2551_v10 = vld [vmem:[#allocation8 + $0x48] sm:$0xff] }
 0xdbe   : > { %v3567_v31 = vpop.permute.xlu0 %3566 }
 0xdbf   : > { %5086 = vmatpush3.bf16.msra.mxu1 %v5085_v48  ;;  %v5091_v48 = vpack.c.bf16 %v2551_v10, %v2550_v55 }
 0xdc0   : > { %4886 = vmatprep.subr.mxu1 %v5744_v2 }
 0xdc1   : > { %v5445_v46 = vpop.eup %5444  ;;  %5092 = vmatpush3.bf16.msra.mxu0 %v5091_v48  ;;  %v4344_v48 = vld [vmem:[%s7031_s13 + $0x48] sm:$0xff] }
 0xdc2   : > { %4862 = vmatmul.mubr.msk.f32.gmra.mrb[58].mxu1 %vm1295_vm9, %v5445_v46  ;;  %v3293_v21 = vsel %vm1295_vm9, %v5445_v46, 0.0  ;;  %v5447_v8 = vpop.eup %5446  ;;  %5093 = vmatprep.subr.bf16.mxu0 %v5762_v5 }
 0xdc3   : > { %3294 = vadd.xlane.f32.xlu0 %v3293_v21  ;;  %4887 = vmatpush3.msk.msra.mxu1 %vm1341_vm8, %v3567_v31  ;;  %v3296_v15 = vsel %vm1302_vm10, %v5447_v8, 0.0 }
 0xdc4   : > { %4864 = vmatprep.mubr.msk.f32.mxu1 %vm5765_vm5, %v5744_v2  ;;  %5096 = vmatprep.subr.bf16.mxu1 %v5762_v5 }
 0xdc5   : > { %v5449_v39 = vpop.eup %5448 }
 0xdc6   : > { %4865 = vmatmul.mubr.msk.f32.gmra.mrb[60].mxu1 %vm1295_vm9, %v5447_v8  ;;  %v3556_v42 = vsel %vm1295_vm9, %v5449_v39, 0.0  ;;  %v5451_v63 = vpop.eup %5450 }
 0xdc7   : > { %3046 = vadd.xlane.f32.xlu0 %v3045_v41  ;;  %3557 = vadd.xlane.f32.xlu1 %v3556_v42  ;;  %v3559_v17 = vsel %vm1302_vm10, %v5451_v63, 0.0  ;;  %v2553_v41 = vld [vmem:[#allocation8 + $0x58] sm:$0xff] }
 0xdc8   : > { %4888 = vmatprep.mubr.msk.f32.mxu1 %vm5765_vm5, %v5744_v2 }
 0xdca   : > { %4889 = vmatmul.mubr.msk.f32.vlgmr.msra.gmra.mrb[62].mxu1 %vm1295_vm9, %v5443_v0 }
 0xdcb   : > { %3297 = vadd.xlane.f32.xlu1 %v3296_v15  ;;  %3560 = vadd.xlane.f32.xlu0 %v3559_v17 }
 0xdcc   : > { %4891 = vmatprep.mubr.msk.f32.mxu1 %vm5765_vm5, %v5744_v2 }
 0xdce   : > { %4892 = vmatmul.mubr.msk.f32.gmra.mrb[64].mxu1 %vm1295_vm9, %v5449_v39  ;;  %v2552_v39 = vld [vmem:[#allocation8 + $0x50] sm:$0xff] }
 0xdcf   : > { %2801 = vadd.xlane.f32.xlu1 %v2800_v19  ;;  %2804 = vadd.xlane.f32.xlu0 %v2803_v29  ;;  %v5094_v42 = vpack.c.bf16 %v2553_v41, %v2552_v39  ;;  %v4348_v39 = vld [vmem:[%s7031_s13 + $0x68] sm:$0xff] }
 0xdd0   : > { %4894 = vmatprep.mubr.msk.f32.mxu1 %vm5765_vm5, %v5744_v2 }
 0xdd1   : > { %5095 = vmatpush3.bf16.msra.mxu0 %v5094_v42  ;;  %v4349_v42 = vld [vmem:[%s7031_s13 + $0x70] sm:$0xff] }
 0xdd2   : > { %4895 = vmatmul.mubr.msk.f32.gmra.mrb[66].mxu1 %vm1295_vm9, %v5451_v63  ;;  %5105 = vmatprep.subr.bf16.mxu0 %v5762_v5 }
 0xdd3   : > { %2807 = vadd.xlane.f32.xlu1 %v2806_v24  ;;  %4930 = vmatprep.mubr.msk.f32.mxu1 %vm5765_vm5, %v5744_v2 }
 0xe17   : > { %v3041_v25 = vpop.xlane.xlu0 %3040 }
 0xe18   : > { %5452 = vrcp.f32 %v3041_v25 }
 0xe1b   : > { %v3044_v13 = vpop.xlane.xlu0 %3043 }
 0xe1c   : > { %5454 = vrcp.f32 %v3044_v13 }
 0xe22   : > { %v5453_v61 = vpop.eup %5452 }
 0xe23   : > { %v3292_v51 = vpop.xlane.xlu1 %3291 }
 0xe26   : > { %v5455_v47 = vpop.eup %5454 }
 0xe2f   : > { %v3555_v12 = vpop.xlane.xlu0 %3554 }
 0xe50   : > { %v2894_v27 = vpop.f32.mrb[44].mxu1  ;;  %v3295_v18 = vpop.xlane.xlu0 %3294 }
 0xe51   : > { %v4800_v16 = vpop.f32.mrb[45].mxu1 }
 0xe54   : > { %v2899_v30 = vpop.f32.mrb[46].mxu1  ;;  %v3047_v32 = vpop.xlane.xlu0 %3046 }
 0xe55   : > { %v3558_v34 = vpop.xlane.xlu1 %3557  ;;  %v4803_v35 = vpop.f32.mrb[47].mxu1  ;;  %5456 = vrcp.f32 %v3047_v32 }
 0xe56   : > { %v4014_v35 = vld [vmem:[%s7115_s16] sm:$0xff] }
 0xe58   : > { %v2904_v37 = vpop.f32.mrb[48].mxu1  ;;  %v6856_v40 = vpop.xlane.xlu0 %3560 }
 0xe59   : > { %v3298_v26 = vpop.xlane.xlu1 %3297  ;;  %v4806_v62 = vpop.f32.mrb[49].mxu1 }
 0xe5a   : > { %v2557_v62 = vld [vmem:[#allocation11 + $0x40] sm:$0xff] }
 0xe5c   : > { %v3133_v22 = vpop.f32.mrb[50].mxu1  ;;  %v2805_v43 = vpop.xlane.xlu0 %2804 }
 0xe5d   : > { %v3150_v33 = vmul.f32 %v5453_v61, %v3133_v22  ;;  %5458 = vrcp.f32 %v2805_v43  ;;  %v2802_v44 = vpop.xlane.xlu1 %2801  ;;  %v4830_v45 = vpop.f32.mrb[51].mxu1  ;;  %v2558_v22 = vld [vmem:[#allocation11 + $0x48] sm:$0xff] }
 0xe5e   : > { %5460 = vrcp.f32 %v2802_v44  ;;  %v5100_v43 = vpack.c.bf16 %v2558_v22, %v2557_v62 }
 0xe5f   : > { %3156 = vrot.lane.b32.xlu0 %v3150_v33, %s7112_s26  ;;  %v5457_v57 = vpop.eup %5456 }
 0xe60   : > { %v3138_v49 = vpop.f32.mrb[52].mxu1 }
 0xe61   : > { %v3151_v50 = vmul.f32 %v5455_v47, %v3138_v49  ;;  %v2808_v53 = vpop.xlane.xlu1 %2807  ;;  %v4833_v54 = vpop.f32.mrb[53].mxu1 }
 0xe62   : > { %5462 = vrcp.f32 %v2808_v53 }
 0xe63   : > { %3158 = vrot.lane.b32.xlu0 %v3151_v50, %s7112_s26  ;;  %5464 = vrcp.f32 %v3292_v51 }
 0xe64   : > { %v3143_v28 = vpop.f32.mrb[54].mxu1  ;;  %5466 = vrcp.f32 %v3295_v18 }
 0xe65   : > { %v3152_v38 = vmul.f32 %v5457_v57, %v3143_v28  ;;  %v4836_v36 = vpop.f32.mrb[55].mxu1  ;;  %5468 = vrcp.f32 %v3298_v26  ;;  %v2556_v26 = vld [vmem:[#allocation11 + $0x38] sm:$0xff] }
 0xe66   : > { %5470 = vrcp.f32 %v3555_v12 }
 0xe67   : > { %v5459_v0 = vpop.eup %5458  ;;  %5472 = vrcp.f32 %v3558_v34 }
 0xe68   : > { %v5461_v52 = vpop.eup %5460  ;;  %v2912_v20 = vmul.f32 %v5459_v0, %v2899_v30  ;;  %5474 = vrcp.f32 %v6856_v40  ;;  %v2555_v40 = vld [vmem:[#allocation11 + $0x30] sm:$0xff] }
 0xe69   : > { %v2911_v56 = vmul.f32 %v5461_v52, %v2894_v27  ;;  %v5097_v61 = vpack.c.bf16 %v2556_v26, %v2555_v40  ;;  %v2559_v0 = vld [vmem:[#allocation11 + $0x50] sm:$0xff]  ;;  %v2560_v52 = vld [vmem:[#allocation11 + $0x58] sm:$0xff] }
 0xe6a   : > { %2915 = vst.msk [vmem:[#allocation4 + $0x8] sm:$0xff] %vm1199_vm6, %v2912_v20  ;;  %v5103_v20 = vpack.c.bf16 %v2560_v52, %v2559_v0 }
 0xe6b   : > { %2914 = vst.msk [vmem:[#allocation4] sm:$0xff] %vm1199_vm6, %v2911_v56  ;;  %5098 = vmatpush3.bf16.msra.mxu1 %v5097_v61  ;;  %v4395_v56 = vld [vmem:[#allocation10 + $0x1] ss:$0 sm:$0xff] }
 0xe6c   : > { %v5463_v1 = vpop.eup %5462  ;;  %5099 = vmatprep.subr.bf16.mxu1 %v5762_v5 }
 0xe6d   : > { %v2913_v3 = vmul.f32 %v5463_v1, %v2904_v37  ;;  %v5465_v4 = vpop.eup %5464  ;;  %v4015_v37 = vld [vmem:[%s7115_s16 + $0x8] sm:$0xff] }
 0xe6e   : > { %v5467_v46 = vpop.eup %5466 }
 0xe6f   : > { %2916 = vst.msk [vmem:[#allocation4 + $0x10] sm:$0x1] %vm1432_vm12, %v2913_v3  ;;  %v5469_v63 = vpop.eup %5468  ;;  %5101 = vmatpush3.bf16.msra.mxu1 %v5100_v43 }
 0xe70   : > { %v5471_v29 = vpop.eup %5470  ;;  %5102 = vmatprep.subr.bf16.mxu1 %v5762_v5 }
 0xe71   : > { %v5473_v12 = vpop.eup %5472 }
 0xe72   : > { %v5475_v16 = vpop.eup %5474 }
 0xe73   : > { %v3396_v7 = vpop.f32.mrb[56].mxu1  ;;  %5104 = vmatpush3.bf16.msra.mxu1 %v5103_v20  ;;  %v4012_v20 = vld [vmem:[#allocation14] sm:$0xff] }
 0xe74   : > { %v3413_v6 = vmul.f32 %v5465_v4, %v3396_v7  ;;  %v4860_v9 = vpop.f32.mrb[57].mxu1 }
 0xe76   : > { %3419 = vrot.lane.b32.xlu1 %v3413_v6, %s7113_s21 }
 0xe95   : > { %v3401_v31 = vpop.f32.mrb[58].mxu1 }
 0xe96   : > { %v3414_v21 = vmul.f32 %v5467_v46, %v3401_v31  ;;  %v4863_v8 = vpop.f32.mrb[59].mxu1  ;;  %v4346_v31 = vld [vmem:[%s7031_s13 + $0x58] sm:$0xff] }
 0xe97   : > { %v4347_v8 = vld [vmem:[%s7031_s13 + $0x60] sm:$0xff] }
 0xe98   : > { %v5112_v41 = vpack.c.bf16 %v4348_v39, %v4347_v8 }
 0xe99   : > { %v3406_v15 = vpop.f32.mrb[60].mxu1 }
 0xe9a   : > { %v3415_v17 = vmul.f32 %v5469_v63, %v3406_v15  ;;  %v4866_v19 = vpop.f32.mrb[61].mxu1  ;;  %v4350_v63 = vld [vmem:[%s7031_s13 + $0x78] sm:$0xff] }
 0xe9b   : > { %v5115_v15 = vpack.c.bf16 %v4350_v63, %v4349_v42 }
 0xe9d   : > { %v3647_v24 = vpop.f32.mrb[62].mxu1 }
 0xe9e   : > { %v3664_v25 = vmul.f32 %v5471_v29, %v3647_v24  ;;  %v4890_v13 = vpop.f32.mrb[63].mxu1 }
 0xea0   : > { %3670 = vrot.lane.b32.xlu1 %v3664_v25, %s7114_s27 }
 0xea1   : > { %v3652_v27 = vpop.f32.mrb[64].mxu1 }
 0xea2   : > { %v3665_v18 = vmul.f32 %v5473_v12, %v3652_v27  ;;  %v4893_v51 = vpop.f32.mrb[65].mxu1 }
 0xea4   : > { %3421 = vrot.lane.b32.xlu1 %v3414_v21, %s7113_s21  ;;  %3672 = vrot.lane.b32.xlu0 %v3665_v18, %s7114_s27 }
 0xea5   : > { %v3657_v30 = vpop.f32.mrb[66].mxu1 }
 0xea6   : > { %v3666_v32 = vmul.f32 %v5475_v16, %v3657_v30  ;;  %v4896_v34 = vpop.f32.mrb[67].mxu1 }
 0xea8   : > { %3160 = vrot.lane.b32.xlu1 %v3152_v38, %s7112_s26  ;;  %3423 = vrot.lane.b32.xlu0 %v3415_v17, %s7113_s21  ;;  %v4399_v17 = vld [vmem:[#allocation13 + $0x1] ss:$0 sm:$0xff]  ;;  %s627_s26 = sand.u32 1, %s7116_s29   ;;  %s5656_s29 = sshll.u32 %s5777_s24, 4  ;;  %s5657_s29 = int_to_ptr.vmem [resolvable:$false] %s5656_s29 }
 0xea9   : > { %s4270_s21 = sshll.u32 %s627_s26, 4  ;;  %s6976_s28 = scalar_lea.sflag [#allocation7], %s627_s26 }
 0xeac   : > { %3674 = vrot.lane.b32.xlu1 %v3666_v32, %s7114_s27  ;;  %4018 = vperm.xlu0 %5277, %v4014_v35   ;;  %s629_s27 = scalar_lea.vmem [#allocation16], %s4270_s21  ;;  %s5658_s21 = scalar_lea.vmem %s5657_s29, 512 }
 0xead   : > { %s4132_s14 = sshll.u32 %s629_s27, 4  ;;  %s6967_s14 = int_to_ptr.vmem [resolvable:$true] %s4132_s14 }
 0xeae   : > { %s5652_s19 = scalar_lea.vmem %s6967_s14, 256  ;;  %p5659_p5 = scmp.lt.s32.totalorder %s6967_s14, %s5657_s29 }
 0xeaf   : > { %p5653_p13 = scmp.ne.s32.totalorder %s6967_s14, %s5652_s19  ;;  %p5660_p0 = scmp.lt.s32.totalorder %s5658_s21, %s5652_s19 }
 0xeb0   : > { %4023 = vperm.xlu1 %5276, %v4015_v37  }
 0xeb1   : > { %p5654_p6 = pnand %p5653_p13, %p7119_p1  ;;  %p5661_p10 = por %p5660_p0, %p5659_p5 }
 0xeb3   : > { %p5655_p9 = pneg %p5654_p6 }
 0xeb5   : > { %p5662_p2 = pnand %p5661_p10, %p5655_p9 }
 0xed1   : > { %v3157_v33 = vpop.permute.xlu0 %3156 }
 0xed2   : > { %3165 = vst.msk [vmem:[#allocation4] sm:$0xff] %vm1682_vm13, %v3157_v33 }
 0xed5   : > { %v3159_v44 = vpop.permute.xlu0 %3158 }
 0xed6   : > { %3166 = vst.msk [vmem:[#allocation4 + $0x8] sm:$0xff] %vm1682_vm13, %v3159_v44 }
 0xee8   : > { %v3420_v45 = vpop.permute.xlu1 %3419 }
 0xee9   : > { %3428 = vst.msk [vmem:[#allocation4] sm:$0xff] %vm1948_vm14, %v3420_v45 }
 0xf12   : > { %v3671_v47 = vpop.permute.xlu1 %3670 }
 0xf13   : > { %3679 = vst.msk [vmem:[#allocation4] sm:$0xff] %vm2201_vm15, %v3671_v47 }
 0xf16   : > { %v3673_v49 = vpop.permute.xlu0 %3672  ;;  %v3422_v50 = vpop.permute.xlu1 %3421 }
 0xf17   : > { %3429 = vst.msk [vmem:[#allocation4 + $0x8] sm:$0xff] %vm1948_vm14, %v3422_v50 }
 0xf18   : > { %3680 = vst.msk [vmem:[#allocation4 + $0x8] sm:$0xff] %vm2201_vm15, %v3673_v49 }
 0xf1a   : > { %v3424_v53 = vpop.permute.xlu0 %3423  ;;  %v3161_v54 = vpop.permute.xlu1 %3160  ;;  %v3682_v57 = vld [vmem:[#allocation4] sm:$0xff] }
 0xf1b   : > { %3167 = vst.msk [vmem:[#allocation4 + $0x10] sm:$0x1] %vm1685_vm0, %v3161_v54  ;;  %4910 = vmatmul.mubr.msk.f32.vlgmr.msra.gmra.mrb[60].mxu0 %vm1045_vm4, %v3682_v57 }
 0xf1c   : > { %3430 = vst.msk [vmem:[#allocation4 + $0x10] sm:$0x1] %vm1951_vm1, %v3424_v53  ;;  %4912 = vmatprep.mubr.msk.f32.mxu0 %vm5765_vm5, %v5744_v2 }
 0xf1e   : > { %v3675_v28 = vpop.permute.xlu1 %3674 }
 0xf1f   : > { %3681 = vst.msk [vmem:[#allocation4 + $0x10] sm:$0x1] %vm2204_vm2, %v3675_v28  ;;  %v3683_v38 = vld [vmem:[#allocation4 + $0x8] sm:$0xff] }
 0xf20   : > { %4913 = vmatmul.mubr.msk.f32.gmra.mrb[62].mxu0 %vm1045_vm4, %v3683_v38 }
 0xf21   : > { %4915 = vmatprep.mubr.msk.f32.mxu0 %vm5765_vm5, %v5744_v2 }
 0xf26   : > { %v3684_v36 = vld [vmem:[#allocation4 + $0x10] sm:$0x1] }
 0xf27   : > { %4916 = vmatmul.mubr.msk.f32.gmra.mrb[64].mxu0 %vm1045_vm4, %v3684_v36 }
 0xf28   : > { %4955 = vmatprep.mubr.msk.f32.mxu0 %vm5765_vm5, %v5744_v2 }
 0xfee   : > { %v3768_v58 = vpop.f32.mrb[60].mxu0 }
 0xfef   : > { %v3769_v59 = vadd.f32 %v4395_v56, %v3768_v58  ;;  %v4911_v60 = vpop.f32.mrb[61].mxu0 }
 0xff0   : > { %v4407_v60 = vld [vmem:[%s7105_s30 + $0x1] ss:$0 sm:$0xff] }
 0xff1   : > { %v6901_v1 = vadd.f32 %v3769_v59, %v6604_v14 }
 0xff3   : > { %v3773_v3 = vpop.f32.mrb[62].mxu0  ;;  %4931 = vmatmul.mubr.msk.f32.vlgmr.msra.gmra.mrb[68].mxu1 %vm1045_vm4, %v6901_v1 }
 0xff4   : > { %v3774_v4 = vadd.f32 %v4395_v56, %v3773_v3  ;;  %v4914_v7 = vpop.f32.mrb[63].mxu0  ;;  %4933 = vmatprep.mubr.msk.f32.mxu1 %vm5765_vm5, %v5744_v2 }
 0xff6   : > { %v6908_v6 = vadd.f32 %v3774_v4, %v6610_v23  ;;  %v4343_v23 = vld [vmem:[%s7031_s13 + $0x40] sm:$0xff] }
 0xff7   : > { %v5106_v46 = vpack.c.bf16 %v4344_v48, %v4343_v23 }
 0xff8   : > { %4934 = vmatmul.mubr.msk.f32.gmra.mrb[70].mxu1 %vm1045_vm4, %v6908_v6 }
 0xff9   : > { %4936 = vmatprep.mubr.msk.f32.mxu1 %vm5765_vm5, %v5744_v2  ;;  %5107 = vmatpush3.bf16.msra.mxu0 %v5106_v46  ;;  %v4024_v46 = vpop.permute.xlu1 %4023 }
 0xffa   : > { %v3778_v14 = vpop.f32.mrb[64].mxu0  ;;  %5108 = vmatprep.subr.bf16.mxu0 %v5762_v5 }
 0xffb   : > { %v3779_v9 = vadd.f32 %v4395_v56, %v3778_v14  ;;  %v4917_v55 = vpop.f32.mrb[65].mxu0 }
 0xffd   : > { %v6915_v10 = vadd.f32 %v3779_v9, %v6616_v11  ;;  %v4345_v11 = vld [vmem:[%s7031_s13 + $0x50] sm:$0xff] }
 0xffe   : > { %v5109_v21 = vpack.c.bf16 %v4346_v31, %v4345_v11  ;;  %v4019_v31 = vpop.permute.xlu0 %4018 }
 0xfff   : > { %4937 = vmatmul.mubr.msk.f32.gmra.mrb[72].mxu1 %vm1045_vm4, %v6915_v10 }
0x1000   : > { %5110 = vmatpush3.bf16.msra.mxu0 %v5109_v21  ;;  %4970 = vmatprep.mubr.msk.f32.mxu1 %vm1045_vm4, %v4012_v20 }
0x1001   : > { %5111 = vmatprep.subr.bf16.mxu0 %v5762_v5 }
0x1004   : > { %5113 = vmatpush3.bf16.msra.mxu0 %v5112_v41 }
0x1005   : > { %5114 = vmatprep.subr.bf16.mxu0 %v5762_v5 }
0x1008   : > { %5116 = vmatpush3.bf16.msra.mxu0 %v5115_v15 }
0x10c6   : > { %v3868_v19 = vpop.f32.mrb[68].mxu1 }
0x10c7   : > { %v3869_v29 = vadd.f32 %v4399_v17, %v3868_v19  ;;  %v4932_v24 = vpop.f32.mrb[69].mxu1 }
0x10c9   : > { %v3885_v25 = vmul.f32 0.044715, %v3869_v29  ;;  %v3882_v47 = vmul.f32 0.5, %v3869_v29 }
0x10cb   : > { %v3888_v13 = vmul.f32 %v3885_v25, %v3869_v29  ;;  %v3873_v12 = vpop.f32.mrb[70].mxu1 }
0x10cc   : > { %v3874_v27 = vadd.f32 %v4399_v17, %v3873_v12  ;;  %v4935_v18 = vpop.f32.mrb[71].mxu1 }
0x10cd   : > { %v3891_v5 = vmul.f32 %v3888_v13, %v3869_v29 }
0x10ce   : > { %v3886_v51 = vmul.f32 0.044715, %v3874_v27  ;;  %v3883_v54 = vmul.f32 0.5, %v3874_v27 }
0x10cf   : > { %v3894_v16 = vadd.f32 %v3891_v5, %v3869_v29 }
0x10d0   : > { %v3889_v30 = vmul.f32 %v3886_v51, %v3874_v27 }
0x10d1   : > { %v3897_v32 = vmul.f32 0.7978846, %v3894_v16 }
0x10d2   : > { %v3892_v34 = vmul.f32 %v3889_v30, %v3874_v27  ;;  %v3878_v35 = vpop.f32.mrb[72].mxu1 }
0x10d3   : > { %5476 = vtanh.f32 %v3897_v32  ;;  %v3879_v37 = vadd.f32 %v4399_v17, %v3878_v35  ;;  %v4938_v40 = vpop.f32.mrb[73].mxu1 }
0x10d4   : > { %v3895_v26 = vadd.f32 %v3892_v34, %v3874_v27 }
0x10d5   : > { %v3887_v62 = vmul.f32 0.044715, %v3879_v37  ;;  %v3884_v36 = vmul.f32 0.5, %v3879_v37 }
0x10d6   : > { %v3898_v61 = vmul.f32 0.7978846, %v3895_v26 }
0x10d7   : > { %v3890_v22 = vmul.f32 %v3887_v62, %v3879_v37 }
0x10d8   : > { %5478 = vtanh.f32 %v3898_v61 }
0x10d9   : > { %v3893_v43 = vmul.f32 %v3890_v22, %v3879_v37 }
0x10db   : > { %v3896_v33 = vadd.f32 %v3893_v43, %v3879_v37 }
0x10dd   : > { %v5477_v44 = vpop.eup %5476  ;;  %v3899_v45 = vmul.f32 0.7978846, %v3896_v33 }
0x10de   : > { %v3903_v49 = vadd.f32 1.0, %v5477_v44 }
0x10df   : > { %5480 = vtanh.f32 %v3899_v45 }
0x10e0   : > { %v3906_v50 = vmul.f32 %v3903_v49, %v3882_v47 }
0x10e2   : > { %v5479_v53 = vpop.eup %5478  ;;  %4956 = vmatmul.mubr.msk.f32.vlgmr.msra.gmra.mrb[66].mxu0 %vm2431_vm3, %v3906_v50 }
0x10e3   : > { %4958 = vmatprep.mubr.msk.f32.mxu0 %vm5765_vm5, %v5744_v2  ;;  %v3904_v57 = vadd.f32 1.0, %v5479_v53 }
0x10e5   : > { %v3907_v28 = vmul.f32 %v3904_v57, %v3883_v54 }
0x10e7   : > { %4959 = vmatmul.mubr.msk.f32.gmra.mrb[68].mxu0 %vm2431_vm3, %v3907_v28 }
0x10e8   : > { %4961 = vmatprep.mubr.msk.f32.mxu0 %vm5765_vm5, %v5744_v2  ;;  %vm5118_vm5 = vmpackc.low %vm1045_vm4, %vm1045_vm4 }
0x10e9   : > { %v5481_v38 = vpop.eup %5480 }
0x10ea   : > { %v3905_v0 = vadd.f32 1.0, %v5481_v38 }
0x10ec   : > { %v3908_v52 = vmul.f32 %v3905_v0, %v3884_v36 }
0x10ee   : > { %4962 = vmatmul.mubr.msk.f32.gmra.mrb[70].mxu0 %vm2431_vm3, %v3908_v52 }
0x11b5   : > { %v3984_v56 = vpop.f32.mrb[66].mxu0 }
0x11b6   : > { %v4957_v58 = vpop.f32.mrb[67].mxu0  ;;  %v3998_v59 = vadd.f32 %v3984_v56, %v6901_v1 }
0x11b8   : > { %v4009_v7 = vadd.f32 %v4407_v60, %v3998_v59 }
0x11ba   : > { %v3989_v3 = vpop.f32.mrb[68].mxu0 }
0x11bb   : > { %v3999_v2 = vadd.f32 %v3989_v3, %v6908_v6  ;;  %v4960_v4 = vpop.f32.mrb[69].mxu0  ;;  %v4013_v6 = vld [vmem:[#allocation14 + $0x8] sm:$0xff] }
0x11bd   : > { %v4010_v14 = vadd.f32 %v4407_v60, %v3999_v2 }
0x11bf   : > { %v5117_v9 = vpack.c.bf16 %v4010_v14, %v4009_v7 }
0x11c1   : > { %v3994_v55 = vpop.f32.mrb[70].mxu0  ;;  %5119 = vmatprep.subr.msk.bf16.mxu1 %vm5118_vm5, %v5117_v9 }
0x11c2   : > { %v4000_v1 = vadd.f32 %v3994_v55, %v6915_v10  ;;  %v4963_v23 = vpop.f32.mrb[71].mxu0  ;;  %5122 = vmatpush3.bf16.xpose.msk.msra.mxu1 %vm5118_vm5, %v5117_v9 }
0x11c4   : > { %v4011_v48 = vadd.f32 %v4407_v60, %v4000_v1 }
0x11c6   : > { %4968 = vmatprep.subr.msk.mxu1 %vm1045_vm4, %v4011_v48 }
0x11ca   : > { %4969 = vmatpush3.xpose.msk.msra.mxu1 %vm1045_vm4, %v4011_v48 }
0x11cd   : > { %4971 = vmatmul.mubr.msk.f32.vlgmr.msra.gmra.mrb[74].mxu1 %vm1045_vm4, %v4013_v6 }
0x12a0   : > { %v4972_v11 = vpop.f32.mrb[74].mxu1 }
0x12a1   : > { %v4113_v10 = vadd.f32 %v4972_v11, %v4024_v46  ;;  %v4107_v21 = vpop.f32.mrb[75].mxu1 }
0x12a2   : > { %v4108_v8 = vadd.f32 %v4107_v21, %v4019_v31 }
0x12a3   : > { %4117 = vst.msk [vmem:[%s629_s27 + $0x8] sm:$0xff] %vm1295_vm9, %v4113_v10 }
0x12a4   : > { %4116 = vst.msk [vmem:[%s629_s27] sm:$0xff] %vm1295_vm9, %v4108_v8 }
0x12a5   : > { %5665 = shalt.err (!%p5662_p2)
}
0x12a6   : > { %s5666_s26 = scalar_lea.hbm %s6972_s17, 256  ;;  %s5670_s22 = scalar_lea.hbm %s7118_s1, 512 }
0x12a7   : > { %p5667_p3 = scmp.ne.s32.totalorder %s6972_s17, %s5666_s26  ;;  %p5671_p7 = scmp.lt.u32.totalorder %s6972_s17, %s7118_s1 }
0x12a8   : > { %p5672_p8 = scmp.lt.u32.totalorder %s5670_s22, %s5666_s26  ;;  %p5674_p13 = scmp.lt.u32.totalorder %s5666_s26, %s6972_s17 }
0x12a9   : > { %p5668_p4 = pnand %p5667_p3, %p7119_p1 }
0x12aa   : > { %p5673_p11 = por %p5672_p8, %p5671_p7 }
0x12ab   : > { %p5669_p12 = pneg %p5668_p4 }
0x12ac   : > { %p5675_p6 = por %p5674_p13, %p5673_p11 }
0x12ae   : > { %p5676_p9 = pnand %p5675_p6, %p5669_p12 }
0x12b0   : > { %5679 = shalt.err (!%p5676_p9)
}
0x12b1   : > { %s5778_s19 = smov 128  }
0x12b2   : > { %5147 = dma.vmem_to_hbm [thread:$0]  (%p7119_p1), %s6967_s14, 256, %s6972_s17, %s6976_s28, %s5778_s19, %s5778_s19, %s7110_s20  }
0x12b3 PF: > { %s7120_s29 = sld [smem:[#allocation25_spill]]  ;;  %s7121_s21 = sld [smem:[#allocation22_spill]] }
0x12b4   : > { %s7122_s27 = sld [smem:[#allocation29_spill]] }
0x12b9   : > { %p5184_p5 = scmp.ge.s32.totalorder %s7120_s29, 2  ;;  %s4147_s0 = sand.u32 1, %s7121_s21  }
0x12ba   : > { %p7123_p0 = scmp.ne.s32.totalorder %s7122_s27, 0  ;;  %s4148_s26 = scalar_lea.sflag [#allocation7], %s4147_s0 }
0x12bc   : > { %p5169_p10 = pnand %p5184_p5, %p7123_p0 }
0x12be   : > { %5713 = dma.done.wait (!%p5169_p10), %s4148_s26, 256  }
0x12bf   : > { %5715 = vsyncadd (!%p5169_p10), %s4148_s26, 4294967040  ;;  %s7124_s27 = sld [smem:[#allocation26_spill]]  ;;  %s7125_s24 = sld [smem:[#allocation23_spill]] }
0x12c0   : > { %s7126_s25 = sld [smem:[#allocation24_spill]]  ;;  %s7127_s26 = sld [smem:[#allocation27_spill]] }
0x12c5   : > { %p31_p2 = scmp.ge.s32.totalorder %s7124_s27, 4  }
0x12c7   :  { %33 = sbr.rel (!%p31_p2) target bundleno = 13 (0xd), region = 156 }
0x12ce   :  { %4153 = vsyncpa [#allocation6], 1 }
0x12cf   :  { %4155 = vsyncpa [#allocation6 + $0x1], 1 }
0x12d0   :  { %4156 = vsyncpa [#allocation9], 1 }
0x12d1   :  { %4157 = vsyncpa [#allocation12], 1 }
0x12d2   :  { %4158 = vsyncpa [#allocation15], 1 }
0x12d3   :  { %4159 = vsyncpa [#allocation7], 1 }
0x12d4   :  { %4161 = vsyncpa [#allocation7 + $0x1], 1 }

</bundles_post_ra>
